<compile_context>
chip_gen: v6e
topology: v6e:2x2x1
jax: 0.10.0
libtpu: 0.0.40
codegen_flags: <defaults>
</compile_context>

<pallas_src>
import functools

import jax
import jax.numpy as jnp
from jax.experimental import pallas as pl
from jax.experimental.pallas import tpu as pltpu


# ---------------------------------------------------------------------------
# Fused kernel builder: one kernel invocation runs the full GRU stack + head.
# NOTE: the recurrence is inherently sequential in time; everything here is
# straight-line code in a single invocation, so no grid axis may be marked
# parallel over time.
# ---------------------------------------------------------------------------
def _make_fused_rnn_kernel(T, B, D, H, num_layers, d, n_seq_groups):
    n_pairs = num_layers * d
    n_inputs = 1 + 4 * n_pairs + 2   # x, (w_ih_t, w_hh_t, b_mix, b_hn)*pairs, lin_w, lin_b

    def kernel(*refs):
        x_ref = refs[0]                               # (T*B, D), row = t*B + b
        w_refs = refs[1:1 + 4 * n_pairs]
        lin_w_ref = refs[1 + 4 * n_pairs]             # (L*d*H, C)
        lin_b_ref = refs[2 + 4 * n_pairs]             # (1, C)
        out_ref = refs[n_inputs]                      # (B, C)
        seq_refs = refs[n_inputs + 1:]                # n_seq_groups*d VMEM (T*B, H)

        h_lasts = []
        for layer in range(num_layers):
            last_layer = layer == num_layers - 1

            # ---- this layer's input sequence (values held in VMEM/vregs) ----
            if layer == 0:
                in_parts = [x_ref[...]]                                # [(T*B, D)]
            else:
                g_in = (layer - 1) % n_seq_groups
                in_parts = [seq_refs[g_in * d + j][...] for j in range(d)]

            for direction in range(d):
                base = 4 * (layer * d + direction)
                w_ih_ref, w_hh_ref, b_mix_ref, b_hn_ref = w_refs[base:base + 4]

                # Input projections for ALL timesteps in one MXU pass
                # (hoisted out of the sequential recurrence; rows = T*B).
                w_ih = w_ih_ref[...]                                   # (D_in, 3H)
                gi = None
                off = 0
                for part in in_parts:
                    c = jnp.dot(part, w_ih[off:off + part.shape[1], :],
                                preferred_element_type=jnp.float32)
                    gi = c if gi is None else gi + c
                    off += part.shape[1]
                gi = gi + b_mix_ref[...]                               # (T*B, 3H)

                w_hh = w_hh_ref[...]                                   # (H, 3H)
                b_hn = b_hn_ref[...]                                   # (1, H)

                if last_layer:
                    out_seq = None          # y of the last layer is never consumed
                else:
                    g_out = layer % n_seq_groups
                    out_seq = seq_refs[g_out * d + direction]

                reverse = direction == 1
                h = jnp.zeros((B, H), jnp.float32)                     # PyTorch h0 = 0
                # Fully unrolled time recurrence (small static T): no grid
                # bookkeeping, full scheduler visibility.
                for s in range(T):
                    t = T - 1 - s if reverse else s                    # reversal = index math
                    gi_t = gi[t * B:(t + 1) * B, :]                    # (B, 3H)
                    gh = jnp.dot(h, w_hh, preferred_element_type=jnp.float32)
                    r = jax.nn.sigmoid(gi_t[:, 0:H] + gh[:, 0:H])
                    z = jax.nn.sigmoid(gi_t[:, H:2 * H] + gh[:, H:2 * H])
                    n = jnp.tanh(gi_t[:, 2 * H:3 * H]
                                 + r * (gh[:, 2 * H:3 * H] + b_hn))
                    h = (1.0 - z) * n + z * h
                    if out_seq is not None:
                        out_seq[t * B:(t + 1) * B, :] = h              # VMEM-resident y
                h_lasts.append(h)                                      # h_last: no per-step store

        # h_n -> permute(1,0,2).reshape(B, L*d*H): features concatenated in
        # (layer, direction) order; fused Linear head, single HBM write.
        flat = jnp.concatenate(h_lasts, axis=1)                        # (B, L*d*H)
        out_ref[...] = (jnp.dot(flat, lin_w_ref[...],
                                preferred_element_type=jnp.float32)
                        + lin_b_ref[...])

    return kernel


# ---------------------------------------------------------------------------
# Forward pass wrapper: one gather (frozen embedding) + one pallas_call.
# ---------------------------------------------------------------------------
def rnn_forward(params, batch, *, num_layers, bidirectional):
    B, T = batch.shape
    d = 2 if bidirectional else 1
    emb = params["emb"]
    D = emb.shape[1]
    H = params["gru"][0][1].shape[0]              # w_hh_t: (H, 3H)
    C = params["lin_b"].shape[1]

    # Embedding lookup (frozen table), gathered directly in time-major
    # flattened row order (row = t*B + b). Only non-Pallas op in the forward.
    # TODO(synk): optionally move this row-gather in-kernel via scalar-prefetched ids.
    x = jnp.take(emb, jnp.transpose(batch).reshape(-1), axis=0)        # (T*B, D)

    inputs = [x]
    for pack in params["gru"]:                    # (w_ih_t, w_hh_t, b_mix, b_hn)
        inputs.extend(pack)
    inputs.append(params["lin_w_t"])
    inputs.append(params["lin_b"])

    # Ping-pong VMEM buffers for intermediate per-layer sequences (the last
    # layer's sequence is never stored).
    n_seq_groups = min(num_layers - 1, 2)
    scratch = [pltpu.VMEM((T * B, H), jnp.float32)
               for _ in range(n_seq_groups * d)]

    kernel = _make_fused_rnn_kernel(T, B, D, H, num_layers, d,
                                    max(n_seq_groups, 1))

    vmem = pltpu.MemorySpace.VMEM
    return pl.pallas_call(
        kernel,
        out_shape=jax.ShapeDtypeStruct((B, C), jnp.float32),
        in_specs=[pl.BlockSpec(memory_space=vmem)] * len(inputs),
        out_specs=pl.BlockSpec(memory_space=vmem),
        scratch_shapes=scratch,
        compiler_params=pltpu.CompilerParams(
            vmem_limit_bytes=32 * 1024 * 1024),   # explicit budget (safe on v7x's 64 MiB)
    )(*inputs)


# ---------------------------------------------------------------------------
# Deterministic parameter construction (synthetic, matches module __init__
# shapes: Embedding(V, D), GRU(D, D, num_layers, bidirectional), Linear).
# Weights are pre-transposed / pre-folded for the in-kernel formulation:
#   gi = x @ W_ih^T + (b_ih + [b_hr, b_hz, 0]);   n uses b_hn separately.
# ---------------------------------------------------------------------------
def make_params(key, n_of_words, dim, n_of_classes, num_layers, bidirectional):
    d = 2 if bidirectional else 1
    H = dim
    k = 1.0 / jnp.sqrt(jnp.float32(H))
    keys = jax.random.split(key, 3 + 4 * num_layers * d)
    ki = iter(range(len(keys)))

    emb = jax.random.normal(keys[next(ki)], (n_of_words, dim), jnp.float32)

    gru = []
    for layer in range(num_layers):
        d_in = dim if layer == 0 else dim * d
        for _direction in range(d):
            w_ih = jax.random.uniform(keys[next(ki)], (3 * H, d_in),
                                      jnp.float32, -k, k)
            w_hh = jax.random.uniform(keys[next(ki)], (3 * H, H),
                                      jnp.float32, -k, k)
            b_ih = jax.random.uniform(keys[next(ki)], (3 * H,),
                                      jnp.float32, -k, k)
            b_hh = jax.random.uniform(keys[next(ki)], (3 * H,),
                                      jnp.float32, -k, k)
            b_mix = b_ih + jnp.concatenate(
                [b_hh[:2 * H], jnp.zeros((H,), jnp.float32)])
            gru.append((
                jnp.transpose(w_ih),              # (d_in, 3H)
                jnp.transpose(w_hh),              # (H, 3H)
                b_mix.reshape(1, 3 * H),          # folded bias for r/z (+ b_in)
                b_hh[2 * H:].reshape(1, H),       # b_hn (multiplied by r)
            ))

    feat = dim * num_layers * d
    kl = 1.0 / jnp.sqrt(jnp.float32(feat))
    lin_w = jax.random.uniform(keys[next(ki)], (n_of_classes, feat),
                               jnp.float32, -kl, kl)
    lin_b = jax.random.uniform(keys[next(ki)], (n_of_classes,),
                               jnp.float32, -kl, kl)

    return {
        "emb": emb,
        "gru": gru,
        "lin_w_t": jnp.transpose(lin_w),          # (feat, n_classes)
        "lin_b": lin_b.reshape(1, n_of_classes),
    }


if __name__ == "__main__":
    n_of_words = 50
    dim = 32            # embedding dim == GRU hidden size
    n_of_classes = 5
    num_layers = 2
    bidirectional = True
    B, T = 2, 8

    key = jax.random.PRNGKey(0)
    pkey, bkey = jax.random.split(key)
    params = make_params(pkey, n_of_words, dim, n_of_classes,
                         num_layers, bidirectional)
    batch = jax.random.randint(bkey, (B, T), 0, n_of_words, dtype=jnp.int32)

    fwd = jax.jit(functools.partial(rnn_forward,
                                    num_layers=num_layers,
                                    bidirectional=bidirectional))
    out = fwd(params, batch)
    out = jax.block_until_ready(out)
    assert out.shape == (B, n_of_classes), out.shape
    print("KERNEL_OK")
</pallas_src>

<mosaic_0001>
module attributes {stable_mosaic.version = 11 : i64} {
  func.func @kernel(%arg0: memref<16x32xf32, #tpu.memory_space<vmem>>, %arg1: memref<32x96xf32, #tpu.memory_space<vmem>>, %arg2: memref<32x96xf32, #tpu.memory_space<vmem>>, %arg3: memref<1x96xf32, #tpu.memory_space<vmem>>, %arg4: memref<1x32xf32, #tpu.memory_space<vmem>>, %arg5: memref<32x96xf32, #tpu.memory_space<vmem>>, %arg6: memref<32x96xf32, #tpu.memory_space<vmem>>, %arg7: memref<1x96xf32, #tpu.memory_space<vmem>>, %arg8: memref<1x32xf32, #tpu.memory_space<vmem>>, %arg9: memref<64x96xf32, #tpu.memory_space<vmem>>, %arg10: memref<32x96xf32, #tpu.memory_space<vmem>>, %arg11: memref<1x96xf32, #tpu.memory_space<vmem>>, %arg12: memref<1x32xf32, #tpu.memory_space<vmem>>, %arg13: memref<64x96xf32, #tpu.memory_space<vmem>>, %arg14: memref<32x96xf32, #tpu.memory_space<vmem>>, %arg15: memref<1x96xf32, #tpu.memory_space<vmem>>, %arg16: memref<1x32xf32, #tpu.memory_space<vmem>>, %arg17: memref<128x5xf32, #tpu.memory_space<vmem>>, %arg18: memref<1x5xf32, #tpu.memory_space<vmem>>, %arg19: memref<2x5xf32, #tpu.memory_space<vmem>>, %arg20: memref<16x32xf32, #tpu.memory_space<vmem>>, %arg21: memref<16x32xf32, #tpu.memory_space<vmem>>) attributes {dimension_semantics = [], scalar_prefetch = 0 : i64, scratch_operands = 2 : i64, tpu.core_type = #tpu.core_type<tc>} {
    %c0 = arith.constant 0 : index
    %c0_0 = arith.constant 0 : index
    %0 = vector.load %arg0[%c0, %c0_0] : memref<16x32xf32, #tpu.memory_space<vmem>>, vector<16x32xf32>
    %c0_1 = arith.constant 0 : index
    %c0_2 = arith.constant 0 : index
    %1 = vector.load %arg1[%c0_1, %c0_2] : memref<32x96xf32, #tpu.memory_space<vmem>>, vector<32x96xf32>
    %cst = arith.constant dense<0.000000e+00> : vector<16x96xf32>
    %2 = tpu.matmul %0, %1, %cst {dimension_numbers = #tpu.dot_dimension_numbers<[1], [0], [0], [1], [0, 0, 1, 1], [], []>} : vector<16x32xf32>, vector<32x96xf32>, vector<16x96xf32> -> vector<16x96xf32>
    %c0_3 = arith.constant 0 : index
    %c0_4 = arith.constant 0 : index
    %3 = vector.load %arg3[%c0_3, %c0_4] : memref<1x96xf32, #tpu.memory_space<vmem>>, vector<1x96xf32>
    %4 = vector.broadcast %3 : vector<1x96xf32> to vector<16x96xf32>
    %5 = arith.addf %2, %4 : vector<16x96xf32>
    %c0_5 = arith.constant 0 : index
    %c0_6 = arith.constant 0 : index
    %6 = vector.load %arg2[%c0_5, %c0_6] : memref<32x96xf32, #tpu.memory_space<vmem>>, vector<32x96xf32>
    %c0_7 = arith.constant 0 : index
    %c0_8 = arith.constant 0 : index
    %7 = vector.load %arg4[%c0_7, %c0_8] : memref<1x32xf32, #tpu.memory_space<vmem>>, vector<1x32xf32>
    %cst_9 = arith.constant 0.000000e+00 : f32
    %8 = vector.broadcast %cst_9 : f32 to vector<2x32xf32>
    %9 = vector.extract_strided_slice %5 {offsets = [0, 0], sizes = [2, 96], strides = [1, 1]} : vector<16x96xf32> to vector<2x96xf32>
    %cst_10 = arith.constant dense<0.000000e+00> : vector<2x96xf32>
    %10 = tpu.matmul %8, %6, %cst_10 {dimension_numbers = #tpu.dot_dimension_numbers<[1], [0], [0], [1], [0, 0, 1, 1], [], []>} : vector<2x32xf32>, vector<32x96xf32>, vector<2x96xf32> -> vector<2x96xf32>
    %11 = vector.extract_strided_slice %9 {offsets = [0, 0], sizes = [2, 32], strides = [1, 1]} : vector<2x96xf32> to vector<2x32xf32>
    %12 = vector.extract_strided_slice %10 {offsets = [0, 0], sizes = [2, 32], strides = [1, 1]} : vector<2x96xf32> to vector<2x32xf32>
    %13 = arith.addf %11, %12 : vector<2x32xf32>
    %14 = arith.negf %13 : vector<2x32xf32>
    %15 = math.exp %14 : vector<2x32xf32>
    %cst_11 = arith.constant 1.000000e+00 : f32
    %16 = vector.broadcast %cst_11 : f32 to vector<2x32xf32>
    %17 = arith.addf %16, %15 : vector<2x32xf32>
    %18 = arith.divf %16, %17 : vector<2x32xf32>
    %19 = vector.extract_strided_slice %9 {offsets = [0, 32], sizes = [2, 32], strides = [1, 1]} : vector<2x96xf32> to vector<2x32xf32>
    %20 = vector.extract_strided_slice %10 {offsets = [0, 32], sizes = [2, 32], strides = [1, 1]} : vector<2x96xf32> to vector<2x32xf32>
    %21 = arith.addf %19, %20 : vector<2x32xf32>
    %22 = arith.negf %21 : vector<2x32xf32>
    %23 = math.exp %22 : vector<2x32xf32>
    %cst_12 = arith.constant 1.000000e+00 : f32
    %24 = vector.broadcast %cst_12 : f32 to vector<2x32xf32>
    %25 = arith.addf %24, %23 : vector<2x32xf32>
    %26 = arith.divf %24, %25 : vector<2x32xf32>
    %27 = vector.extract_strided_slice %9 {offsets = [0, 64], sizes = [2, 32], strides = [1, 1]} : vector<2x96xf32> to vector<2x32xf32>
    %28 = vector.extract_strided_slice %10 {offsets = [0, 64], sizes = [2, 32], strides = [1, 1]} : vector<2x96xf32> to vector<2x32xf32>
    %29 = vector.broadcast %7 : vector<1x32xf32> to vector<2x32xf32>
    %30 = arith.addf %28, %29 : vector<2x32xf32>
    %31 = arith.mulf %18, %30 : vector<2x32xf32>
    %32 = arith.addf %27, %31 : vector<2x32xf32>
    %33 = math.tanh %32 : vector<2x32xf32>
    %cst_13 = arith.constant 1.000000e+00 : f32
    %34 = vector.broadcast %cst_13 : f32 to vector<2x32xf32>
    %35 = arith.subf %34, %26 : vector<2x32xf32>
    %36 = arith.mulf %35, %33 : vector<2x32xf32>
    %37 = arith.mulf %26, %8 : vector<2x32xf32>
    %38 = arith.addf %36, %37 : vector<2x32xf32>
    %c0_14 = arith.constant 0 : index
    %c0_15 = arith.constant 0 : index
    %39 = vector.load %arg20[%c0_14, %c0_15] : memref<16x32xf32, #tpu.memory_space<vmem>>, vector<2x32xf32>
    tpu.vector_store %arg20[%c0_14, %c0_15], %38 {strides = array<i32>} : memref<16x32xf32, #tpu.memory_space<vmem>>, vector<2x32xf32>,
    %40 = vector.extract_strided_slice %5 {offsets = [2, 0], sizes = [2, 96], strides = [1, 1]} : vector<16x96xf32> to vector<2x96xf32>
    %cst_16 = arith.constant dense<0.000000e+00> : vector<2x96xf32>
    %41 = tpu.matmul %38, %6, %cst_16 {dimension_numbers = #tpu.dot_dimension_numbers<[1], [0], [0], [1], [0, 0, 1, 1], [], []>} : vector<2x32xf32>, vector<32x96xf32>, vector<2x96xf32> -> vector<2x96xf32>
    %42 = vector.extract_strided_slice %40 {offsets = [0, 0], sizes = [2, 32], strides = [1, 1]} : vector<2x96xf32> to vector<2x32xf32>
    %43 = vector.extract_strided_slice %41 {offsets = [0, 0], sizes = [2, 32], strides = [1, 1]} : vector<2x96xf32> to vector<2x32xf32>
    %44 = arith.addf %42, %43 : vector<2x32xf32>
    %45 = arith.negf %44 : vector<2x32xf32>
    %46 = math.exp %45 : vector<2x32xf32>
    %cst_17 = arith.constant 1.000000e+00 : f32
    %47 = vector.broadcast %cst_17 : f32 to vector<2x32xf32>
    %48 = arith.addf %47, %46 : vector<2x32xf32>
    %49 = arith.divf %47, %48 : vector<2x32xf32>
    %50 = vector.extract_strided_slice %40 {offsets = [0, 32], sizes = [2, 32], strides = [1, 1]} : vector<2x96xf32> to vector<2x32xf32>
    %51 = vector.extract_strided_slice %41 {offsets = [0, 32], sizes = [2, 32], strides = [1, 1]} : vector<2x96xf32> to vector<2x32xf32>
    %52 = arith.addf %50, %51 : vector<2x32xf32>
    %53 = arith.negf %52 : vector<2x32xf32>
    %54 = math.exp %53 : vector<2x32xf32>
    %cst_18 = arith.constant 1.000000e+00 : f32
    %55 = vector.broadcast %cst_18 : f32 to vector<2x32xf32>
    %56 = arith.addf %55, %54 : vector<2x32xf32>
    %57 = arith.divf %55, %56 : vector<2x32xf32>
    %58 = vector.extract_strided_slice %40 {offsets = [0, 64], sizes = [2, 32], strides = [1, 1]} : vector<2x96xf32> to vector<2x32xf32>
    %59 = vector.extract_strided_slice %41 {offsets = [0, 64], sizes = [2, 32], strides = [1, 1]} : vector<2x96xf32> to vector<2x32xf32>
    %60 = vector.broadcast %7 : vector<1x32xf32> to vector<2x32xf32>
    %61 = arith.addf %59, %60 : vector<2x32xf32>
    %62 = arith.mulf %49, %61 : vector<2x32xf32>
    %63 = arith.addf %58, %62 : vector<2x32xf32>
    %64 = math.tanh %63 : vector<2x32xf32>
    %cst_19 = arith.constant 1.000000e+00 : f32
    %65 = vector.broadcast %cst_19 : f32 to vector<2x32xf32>
    %66 = arith.subf %65, %57 : vector<2x32xf32>
    %67 = arith.mulf %66, %64 : vector<2x32xf32>
    %68 = arith.mulf %57, %38 : vector<2x32xf32>
    %69 = arith.addf %67, %68 : vector<2x32xf32>
    %c2 = arith.constant 2 : index
    %c0_20 = arith.constant 0 : index
    %70 = vector.load %arg20[%c2, %c0_20] : memref<16x32xf32, #tpu.memory_space<vmem>>, vector<2x32xf32>
    tpu.vector_store %arg20[%c2, %c0_20], %69 {strides = array<i32>} : memref<16x32xf32, #tpu.memory_space<vmem>>, vector<2x32xf32>,
    %71 = vector.extract_strided_slice %5 {offsets = [4, 0], sizes = [2, 96], strides = [1, 1]} : vector<16x96xf32> to vector<2x96xf32>
    %cst_21 = arith.constant dense<0.000000e+00> : vector<2x96xf32>
    %72 = tpu.matmul %69, %6, %cst_21 {dimension_numbers = #tpu.dot_dimension_numbers<[1], [0], [0], [1], [0, 0, 1, 1], [], []>} : vector<2x32xf32>, vector<32x96xf32>, vector<2x96xf32> -> vector<2x96xf32>
    %73 = vector.extract_strided_slice %71 {offsets = [0, 0], sizes = [2, 32], strides = [1, 1]} : vector<2x96xf32> to vector<2x32xf32>
    %74 = vector.extract_strided_slice %72 {offsets = [0, 0], sizes = [2, 32], strides = [1, 1]} : vector<2x96xf32> to vector<2x32xf32>
    %75 = arith.addf %73, %74 : vector<2x32xf32>
    %76 = arith.negf %75 : vector<2x32xf32>
    %77 = math.exp %76 : vector<2x32xf32>
    %cst_22 = arith.constant 1.000000e+00 : f32
    %78 = vector.broadcast %cst_22 : f32 to vector<2x32xf32>
    %79 = arith.addf %78, %77 : vector<2x32xf32>
    %80 = arith.divf %78, %79 : vector<2x32xf32>
    %81 = vector.extract_strided_slice %71 {offsets = [0, 32], sizes = [2, 32], strides = [1, 1]} : vector<2x96xf32> to vector<2x32xf32>
    %82 = vector.extract_strided_slice %72 {offsets = [0, 32], sizes = [2, 32], strides = [1, 1]} : vector<2x96xf32> to vector<2x32xf32>
    %83 = arith.addf %81, %82 : vector<2x32xf32>
    %84 = arith.negf %83 : vector<2x32xf32>
    %85 = math.exp %84 : vector<2x32xf32>
    %cst_23 = arith.constant 1.000000e+00 : f32
    %86 = vector.broadcast %cst_23 : f32 to vector<2x32xf32>
    %87 = arith.addf %86, %85 : vector<2x32xf32>
    %88 = arith.divf %86, %87 : vector<2x32xf32>
    %89 = vector.extract_strided_slice %71 {offsets = [0, 64], sizes = [2, 32], strides = [1, 1]} : vector<2x96xf32> to vector<2x32xf32>
    %90 = vector.extract_strided_slice %72 {offsets = [0, 64], sizes = [2, 32], strides = [1, 1]} : vector<2x96xf32> to vector<2x32xf32>
    %91 = vector.broadcast %7 : vector<1x32xf32> to vector<2x32xf32>
    %92 = arith.addf %90, %91 : vector<2x32xf32>
    %93 = arith.mulf %80, %92 : vector<2x32xf32>
    %94 = arith.addf %89, %93 : vector<2x32xf32>
    %95 = math.tanh %94 : vector<2x32xf32>
    %cst_24 = arith.constant 1.000000e+00 : f32
    %96 = vector.broadcast %cst_24 : f32 to vector<2x32xf32>
    %97 = arith.subf %96, %88 : vector<2x32xf32>
    %98 = arith.mulf %97, %95 : vector<2x32xf32>
    %99 = arith.mulf %88, %69 : vector<2x32xf32>
    %100 = arith.addf %98, %99 : vector<2x32xf32>
    %c4 = arith.constant 4 : index
    %c0_25 = arith.constant 0 : index
    %101 = vector.load %arg20[%c4, %c0_25] : memref<16x32xf32, #tpu.memory_space<vmem>>, vector<2x32xf32>
    tpu.vector_store %arg20[%c4, %c0_25], %100 {strides = array<i32>} : memref<16x32xf32, #tpu.memory_space<vmem>>, vector<2x32xf32>,
    %102 = vector.extract_strided_slice %5 {offsets = [6, 0], sizes = [2, 96], strides = [1, 1]} : vector<16x96xf32> to vector<2x96xf32>
    %cst_26 = arith.constant dense<0.000000e+00> : vector<2x96xf32>
    %103 = tpu.matmul %100, %6, %cst_26 {dimension_numbers = #tpu.dot_dimension_numbers<[1], [0], [0], [1], [0, 0, 1, 1], [], []>} : vector<2x32xf32>, vector<32x96xf32>, vector<2x96xf32> -> vector<2x96xf32>
    %104 = vector.extract_strided_slice %102 {offsets = [0, 0], sizes = [2, 32], strides = [1, 1]} : vector<2x96xf32> to vector<2x32xf32>
    %105 = vector.extract_strided_slice %103 {offsets = [0, 0], sizes = [2, 32], strides = [1, 1]} : vector<2x96xf32> to vector<2x32xf32>
    %106 = arith.addf %104, %105 : vector<2x32xf32>
    %107 = arith.negf %106 : vector<2x32xf32>
    %108 = math.exp %107 : vector<2x32xf32>
    %cst_27 = arith.constant 1.000000e+00 : f32
    %109 = vector.broadcast %cst_27 : f32 to vector<2x32xf32>
    %110 = arith.addf %109, %108 : vector<2x32xf32>
    %111 = arith.divf %109, %110 : vector<2x32xf32>
    %112 = vector.extract_strided_slice %102 {offsets = [0, 32], sizes = [2, 32], strides = [1, 1]} : vector<2x96xf32> to vector<2x32xf32>
    %113 = vector.extract_strided_slice %103 {offsets = [0, 32], sizes = [2, 32], strides = [1, 1]} : vector<2x96xf32> to vector<2x32xf32>
    %114 = arith.addf %112, %113 : vector<2x32xf32>
    %115 = arith.negf %114 : vector<2x32xf32>
    %116 = math.exp %115 : vector<2x32xf32>
    %cst_28 = arith.constant 1.000000e+00 : f32
    %117 = vector.broadcast %cst_28 : f32 to vector<2x32xf32>
    %118 = arith.addf %117, %116 : vector<2x32xf32>
    %119 = arith.divf %117, %118 : vector<2x32xf32>
    %120 = vector.extract_strided_slice %102 {offsets = [0, 64], sizes = [2, 32], strides = [1, 1]} : vector<2x96xf32> to vector<2x32xf32>
    %121 = vector.extract_strided_slice %103 {offsets = [0, 64], sizes = [2, 32], strides = [1, 1]} : vector<2x96xf32> to vector<2x32xf32>
    %122 = vector.broadcast %7 : vector<1x32xf32> to vector<2x32xf32>
    %123 = arith.addf %121, %122 : vector<2x32xf32>
    %124 = arith.mulf %111, %123 : vector<2x32xf32>
    %125 = arith.addf %120, %124 : vector<2x32xf32>
    %126 = math.tanh %125 : vector<2x32xf32>
    %cst_29 = arith.constant 1.000000e+00 : f32
    %127 = vector.broadcast %cst_29 : f32 to vector<2x32xf32>
    %128 = arith.subf %127, %119 : vector<2x32xf32>
    %129 = arith.mulf %128, %126 : vector<2x32xf32>
    %130 = arith.mulf %119, %100 : vector<2x32xf32>
    %131 = arith.addf %129, %130 : vector<2x32xf32>
    %c6 = arith.constant 6 : index
    %c0_30 = arith.constant 0 : index
    %132 = vector.load %arg20[%c6, %c0_30] : memref<16x32xf32, #tpu.memory_space<vmem>>, vector<2x32xf32>
    tpu.vector_store %arg20[%c6, %c0_30], %131 {strides = array<i32>} : memref<16x32xf32, #tpu.memory_space<vmem>>, vector<2x32xf32>,
    %133 = vector.extract_strided_slice %5 {offsets = [8, 0], sizes = [2, 96], strides = [1, 1]} : vector<16x96xf32> to vector<2x96xf32>
    %cst_31 = arith.constant dense<0.000000e+00> : vector<2x96xf32>
    %134 = tpu.matmul %131, %6, %cst_31 {dimension_numbers = #tpu.dot_dimension_numbers<[1], [0], [0], [1], [0, 0, 1, 1], [], []>} : vector<2x32xf32>, vector<32x96xf32>, vector<2x96xf32> -> vector<2x96xf32>
    %135 = vector.extract_strided_slice %133 {offsets = [0, 0], sizes = [2, 32], strides = [1, 1]} : vector<2x96xf32> to vector<2x32xf32>
    %136 = vector.extract_strided_slice %134 {offsets = [0, 0], sizes = [2, 32], strides = [1, 1]} : vector<2x96xf32> to vector<2x32xf32>
    %137 = arith.addf %135, %136 : vector<2x32xf32>
    %138 = arith.negf %137 : vector<2x32xf32>
    %139 = math.exp %138 : vector<2x32xf32>
    %cst_32 = arith.constant 1.000000e+00 : f32
    %140 = vector.broadcast %cst_32 : f32 to vector<2x32xf32>
    %141 = arith.addf %140, %139 : vector<2x32xf32>
    %142 = arith.divf %140, %141 : vector<2x32xf32>
    %143 = vector.extract_strided_slice %133 {offsets = [0, 32], sizes = [2, 32], strides = [1, 1]} : vector<2x96xf32> to vector<2x32xf32>
    %144 = vector.extract_strided_slice %134 {offsets = [0, 32], sizes = [2, 32], strides = [1, 1]} : vector<2x96xf32> to vector<2x32xf32>
    %145 = arith.addf %143, %144 : vector<2x32xf32>
    %146 = arith.negf %145 : vector<2x32xf32>
    %147 = math.exp %146 : vector<2x32xf32>
    %cst_33 = arith.constant 1.000000e+00 : f32
    %148 = vector.broadcast %cst_33 : f32 to vector<2x32xf32>
    %149 = arith.addf %148, %147 : vector<2x32xf32>
    %150 = arith.divf %148, %149 : vector<2x32xf32>
    %151 = vector.extract_strided_slice %133 {offsets = [0, 64], sizes = [2, 32], strides = [1, 1]} : vector<2x96xf32> to vector<2x32xf32>
    %152 = vector.extract_strided_slice %134 {offsets = [0, 64], sizes = [2, 32], strides = [1, 1]} : vector<2x96xf32> to vector<2x32xf32>
    %153 = vector.broadcast %7 : vector<1x32xf32> to vector<2x32xf32>
    %154 = arith.addf %152, %153 : vector<2x32xf32>
    %155 = arith.mulf %142, %154 : vector<2x32xf32>
    %156 = arith.addf %151, %155 : vector<2x32xf32>
    %157 = math.tanh %156 : vector<2x32xf32>
    %cst_34 = arith.constant 1.000000e+00 : f32
    %158 = vector.broadcast %cst_34 : f32 to vector<2x32xf32>
    %159 = arith.subf %158, %150 : vector<2x32xf32>
    %160 = arith.mulf %159, %157 : vector<2x32xf32>
    %161 = arith.mulf %150, %131 : vector<2x32xf32>
    %162 = arith.addf %160, %161 : vector<2x32xf32>
    %c8 = arith.constant 8 : index
    %c0_35 = arith.constant 0 : index
    %163 = vector.load %arg20[%c8, %c0_35] : memref<16x32xf32, #tpu.memory_space<vmem>>, vector<2x32xf32>
    tpu.vector_store %arg20[%c8, %c0_35], %162 {strides = array<i32>} : memref<16x32xf32, #tpu.memory_space<vmem>>, vector<2x32xf32>,
    %164 = vector.extract_strided_slice %5 {offsets = [10, 0], sizes = [2, 96], strides = [1, 1]} : vector<16x96xf32> to vector<2x96xf32>
    %cst_36 = arith.constant dense<0.000000e+00> : vector<2x96xf32>
    %165 = tpu.matmul %162, %6, %cst_36 {dimension_numbers = #tpu.dot_dimension_numbers<[1], [0], [0], [1], [0, 0, 1, 1], [], []>} : vector<2x32xf32>, vector<32x96xf32>, vector<2x96xf32> -> vector<2x96xf32>
    %166 = vector.extract_strided_slice %164 {offsets = [0, 0], sizes = [2, 32], strides = [1, 1]} : vector<2x96xf32> to vector<2x32xf32>
    %167 = vector.extract_strided_slice %165 {offsets = [0, 0], sizes = [2, 32], strides = [1, 1]} : vector<2x96xf32> to vector<2x32xf32>
    %168 = arith.addf %166, %167 : vector<2x32xf32>
    %169 = arith.negf %168 : vector<2x32xf32>
    %170 = math.exp %169 : vector<2x32xf32>
    %cst_37 = arith.constant 1.000000e+00 : f32
    %171 = vector.broadcast %cst_37 : f32 to vector<2x32xf32>
    %172 = arith.addf %171, %170 : vector<2x32xf32>
    %173 = arith.divf %171, %172 : vector<2x32xf32>
    %174 = vector.extract_strided_slice %164 {offsets = [0, 32], sizes = [2, 32], strides = [1, 1]} : vector<2x96xf32> to vector<2x32xf32>
    %175 = vector.extract_strided_slice %165 {offsets = [0, 32], sizes = [2, 32], strides = [1, 1]} : vector<2x96xf32> to vector<2x32xf32>
    %176 = arith.addf %174, %175 : vector<2x32xf32>
    %177 = arith.negf %176 : vector<2x32xf32>
    %178 = math.exp %177 : vector<2x32xf32>
    %cst_38 = arith.constant 1.000000e+00 : f32
    %179 = vector.broadcast %cst_38 : f32 to vector<2x32xf32>
    %180 = arith.addf %179, %178 : vector<2x32xf32>
    %181 = arith.divf %179, %180 : vector<2x32xf32>
    %182 = vector.extract_strided_slice %164 {offsets = [0, 64], sizes = [2, 32], strides = [1, 1]} : vector<2x96xf32> to vector<2x32xf32>
    %183 = vector.extract_strided_slice %165 {offsets = [0, 64], sizes = [2, 32], strides = [1, 1]} : vector<2x96xf32> to vector<2x32xf32>
    %184 = vector.broadcast %7 : vector<1x32xf32> to vector<2x32xf32>
    %185 = arith.addf %183, %184 : vector<2x32xf32>
    %186 = arith.mulf %173, %185 : vector<2x32xf32>
    %187 = arith.addf %182, %186 : vector<2x32xf32>
    %188 = math.tanh %187 : vector<2x32xf32>
    %cst_39 = arith.constant 1.000000e+00 : f32
    %189 = vector.broadcast %cst_39 : f32 to vector<2x32xf32>
    %190 = arith.subf %189, %181 : vector<2x32xf32>
    %191 = arith.mulf %190, %188 : vector<2x32xf32>
    %192 = arith.mulf %181, %162 : vector<2x32xf32>
    %193 = arith.addf %191, %192 : vector<2x32xf32>
    %c10 = arith.constant 10 : index
    %c0_40 = arith.constant 0 : index
    %194 = vector.load %arg20[%c10, %c0_40] : memref<16x32xf32, #tpu.memory_space<vmem>>, vector<2x32xf32>
    tpu.vector_store %arg20[%c10, %c0_40], %193 {strides = array<i32>} : memref<16x32xf32, #tpu.memory_space<vmem>>, vector<2x32xf32>,
    %195 = vector.extract_strided_slice %5 {offsets = [12, 0], sizes = [2, 96], strides = [1, 1]} : vector<16x96xf32> to vector<2x96xf32>
    %cst_41 = arith.constant dense<0.000000e+00> : vector<2x96xf32>
    %196 = tpu.matmul %193, %6, %cst_41 {dimension_numbers = #tpu.dot_dimension_numbers<[1], [0], [0], [1], [0, 0, 1, 1], [], []>} : vector<2x32xf32>, vector<32x96xf32>, vector<2x96xf32> -> vector<2x96xf32>
    %197 = vector.extract_strided_slice %195 {offsets = [0, 0], sizes = [2, 32], strides = [1, 1]} : vector<2x96xf32> to vector<2x32xf32>
    %198 = vector.extract_strided_slice %196 {offsets = [0, 0], sizes = [2, 32], strides = [1, 1]} : vector<2x96xf32> to vector<2x32xf32>
    %199 = arith.addf %197, %198 : vector<2x32xf32>
    %200 = arith.negf %199 : vector<2x32xf32>
    %201 = math.exp %200 : vector<2x32xf32>
    %cst_42 = arith.constant 1.000000e+00 : f32
    %202 = vector.broadcast %cst_42 : f32 to vector<2x32xf32>
    %203 = arith.addf %202, %201 : vector<2x32xf32>
    %204 = arith.divf %202, %203 : vector<2x32xf32>
    %205 = vector.extract_strided_slice %195 {offsets = [0, 32], sizes = [2, 32], strides = [1, 1]} : vector<2x96xf32> to vector<2x32xf32>
    %206 = vector.extract_strided_slice %196 {offsets = [0, 32], sizes = [2, 32], strides = [1, 1]} : vector<2x96xf32> to vector<2x32xf32>
    %207 = arith.addf %205, %206 : vector<2x32xf32>
    %208 = arith.negf %207 : vector<2x32xf32>
    %209 = math.exp %208 : vector<2x32xf32>
    %cst_43 = arith.constant 1.000000e+00 : f32
    %210 = vector.broadcast %cst_43 : f32 to vector<2x32xf32>
    %211 = arith.addf %210, %209 : vector<2x32xf32>
    %212 = arith.divf %210, %211 : vector<2x32xf32>
    %213 = vector.extract_strided_slice %195 {offsets = [0, 64], sizes = [2, 32], strides = [1, 1]} : vector<2x96xf32> to vector<2x32xf32>
    %214 = vector.extract_strided_slice %196 {offsets = [0, 64], sizes = [2, 32], strides = [1, 1]} : vector<2x96xf32> to vector<2x32xf32>
    %215 = vector.broadcast %7 : vector<1x32xf32> to vector<2x32xf32>
    %216 = arith.addf %214, %215 : vector<2x32xf32>
    %217 = arith.mulf %204, %216 : vector<2x32xf32>
    %218 = arith.addf %213, %217 : vector<2x32xf32>
    %219 = math.tanh %218 : vector<2x32xf32>
    %cst_44 = arith.constant 1.000000e+00 : f32
    %220 = vector.broadcast %cst_44 : f32 to vector<2x32xf32>
    %221 = arith.subf %220, %212 : vector<2x32xf32>
    %222 = arith.mulf %221, %219 : vector<2x32xf32>
    %223 = arith.mulf %212, %193 : vector<2x32xf32>
    %224 = arith.addf %222, %223 : vector<2x32xf32>
    %c12 = arith.constant 12 : index
    %c0_45 = arith.constant 0 : index
    %225 = vector.load %arg20[%c12, %c0_45] : memref<16x32xf32, #tpu.memory_space<vmem>>, vector<2x32xf32>
    tpu.vector_store %arg20[%c12, %c0_45], %224 {strides = array<i32>} : memref<16x32xf32, #tpu.memory_space<vmem>>, vector<2x32xf32>,
    %226 = vector.extract_strided_slice %5 {offsets = [14, 0], sizes = [2, 96], strides = [1, 1]} : vector<16x96xf32> to vector<2x96xf32>
    %cst_46 = arith.constant dense<0.000000e+00> : vector<2x96xf32>
    %227 = tpu.matmul %224, %6, %cst_46 {dimension_numbers = #tpu.dot_dimension_numbers<[1], [0], [0], [1], [0, 0, 1, 1], [], []>} : vector<2x32xf32>, vector<32x96xf32>, vector<2x96xf32> -> vector<2x96xf32>
    %228 = vector.extract_strided_slice %226 {offsets = [0, 0], sizes = [2, 32], strides = [1, 1]} : vector<2x96xf32> to vector<2x32xf32>
    %229 = vector.extract_strided_slice %227 {offsets = [0, 0], sizes = [2, 32], strides = [1, 1]} : vector<2x96xf32> to vector<2x32xf32>
    %230 = arith.addf %228, %229 : vector<2x32xf32>
    %231 = arith.negf %230 : vector<2x32xf32>
    %232 = math.exp %231 : vector<2x32xf32>
    %cst_47 = arith.constant 1.000000e+00 : f32
    %233 = vector.broadcast %cst_47 : f32 to vector<2x32xf32>
    %234 = arith.addf %233, %232 : vector<2x32xf32>
    %235 = arith.divf %233, %234 : vector<2x32xf32>
    %236 = vector.extract_strided_slice %226 {offsets = [0, 32], sizes = [2, 32], strides = [1, 1]} : vector<2x96xf32> to vector<2x32xf32>
    %237 = vector.extract_strided_slice %227 {offsets = [0, 32], sizes = [2, 32], strides = [1, 1]} : vector<2x96xf32> to vector<2x32xf32>
    %238 = arith.addf %236, %237 : vector<2x32xf32>
    %239 = arith.negf %238 : vector<2x32xf32>
    %240 = math.exp %239 : vector<2x32xf32>
    %cst_48 = arith.constant 1.000000e+00 : f32
    %241 = vector.broadcast %cst_48 : f32 to vector<2x32xf32>
    %242 = arith.addf %241, %240 : vector<2x32xf32>
    %243 = arith.divf %241, %242 : vector<2x32xf32>
    %244 = vector.extract_strided_slice %226 {offsets = [0, 64], sizes = [2, 32], strides = [1, 1]} : vector<2x96xf32> to vector<2x32xf32>
    %245 = vector.extract_strided_slice %227 {offsets = [0, 64], sizes = [2, 32], strides = [1, 1]} : vector<2x96xf32> to vector<2x32xf32>
    %246 = vector.broadcast %7 : vector<1x32xf32> to vector<2x32xf32>
    %247 = arith.addf %245, %246 : vector<2x32xf32>
    %248 = arith.mulf %235, %247 : vector<2x32xf32>
    %249 = arith.addf %244, %248 : vector<2x32xf32>
    %250 = math.tanh %249 : vector<2x32xf32>
    %cst_49 = arith.constant 1.000000e+00 : f32
    %251 = vector.broadcast %cst_49 : f32 to vector<2x32xf32>
    %252 = arith.subf %251, %243 : vector<2x32xf32>
    %253 = arith.mulf %252, %250 : vector<2x32xf32>
    %254 = arith.mulf %243, %224 : vector<2x32xf32>
    %255 = arith.addf %253, %254 : vector<2x32xf32>
    %c14 = arith.constant 14 : index
    %c0_50 = arith.constant 0 : index
    %256 = vector.load %arg20[%c14, %c0_50] : memref<16x32xf32, #tpu.memory_space<vmem>>, vector<2x32xf32>
    tpu.vector_store %arg20[%c14, %c0_50], %255 {strides = array<i32>} : memref<16x32xf32, #tpu.memory_space<vmem>>, vector<2x32xf32>,
    %c0_51 = arith.constant 0 : index
    %c0_52 = arith.constant 0 : index
    %257 = vector.load %arg5[%c0_51, %c0_52] : memref<32x96xf32, #tpu.memory_space<vmem>>, vector<32x96xf32>
    %cst_53 = arith.constant dense<0.000000e+00> : vector<16x96xf32>
    %258 = tpu.matmul %0, %257, %cst_53 {dimension_numbers = #tpu.dot_dimension_numbers<[1], [0], [0], [1], [0, 0, 1, 1], [], []>} : vector<16x32xf32>, vector<32x96xf32>, vector<16x96xf32> -> vector<16x96xf32>
    %c0_54 = arith.constant 0 : index
    %c0_55 = arith.constant 0 : index
    %259 = vector.load %arg7[%c0_54, %c0_55] : memref<1x96xf32, #tpu.memory_space<vmem>>, vector<1x96xf32>
    %260 = vector.broadcast %259 : vector<1x96xf32> to vector<16x96xf32>
    %261 = arith.addf %258, %260 : vector<16x96xf32>
    %c0_56 = arith.constant 0 : index
    %c0_57 = arith.constant 0 : index
    %262 = vector.load %arg6[%c0_56, %c0_57] : memref<32x96xf32, #tpu.memory_space<vmem>>, vector<32x96xf32>
    %c0_58 = arith.constant 0 : index
    %c0_59 = arith.constant 0 : index
    %263 = vector.load %arg8[%c0_58, %c0_59] : memref<1x32xf32, #tpu.memory_space<vmem>>, vector<1x32xf32>
    %cst_60 = arith.constant 0.000000e+00 : f32
    %264 = vector.broadcast %cst_60 : f32 to vector<2x32xf32>
    %265 = vector.extract_strided_slice %261 {offsets = [14, 0], sizes = [2, 96], strides = [1, 1]} : vector<16x96xf32> to vector<2x96xf32>
    %cst_61 = arith.constant dense<0.000000e+00> : vector<2x96xf32>
    %266 = tpu.matmul %264, %262, %cst_61 {dimension_numbers = #tpu.dot_dimension_numbers<[1], [0], [0], [1], [0, 0, 1, 1], [], []>} : vector<2x32xf32>, vector<32x96xf32>, vector<2x96xf32> -> vector<2x96xf32>
    %267 = vector.extract_strided_slice %265 {offsets = [0, 0], sizes = [2, 32], strides = [1, 1]} : vector<2x96xf32> to vector<2x32xf32>
    %268 = vector.extract_strided_slice %266 {offsets = [0, 0], sizes = [2, 32], strides = [1, 1]} : vector<2x96xf32> to vector<2x32xf32>
    %269 = arith.addf %267, %268 : vector<2x32xf32>
    %270 = arith.negf %269 : vector<2x32xf32>
    %271 = math.exp %270 : vector<2x32xf32>
    %cst_62 = arith.constant 1.000000e+00 : f32
    %272 = vector.broadcast %cst_62 : f32 to vector<2x32xf32>
    %273 = arith.addf %272, %271 : vector<2x32xf32>
    %274 = arith.divf %272, %273 : vector<2x32xf32>
    %275 = vector.extract_strided_slice %265 {offsets = [0, 32], sizes = [2, 32], strides = [1, 1]} : vector<2x96xf32> to vector<2x32xf32>
    %276 = vector.extract_strided_slice %266 {offsets = [0, 32], sizes = [2, 32], strides = [1, 1]} : vector<2x96xf32> to vector<2x32xf32>
    %277 = arith.addf %275, %276 : vector<2x32xf32>
    %278 = arith.negf %277 : vector<2x32xf32>
    %279 = math.exp %278 : vector<2x32xf32>
    %cst_63 = arith.constant 1.000000e+00 : f32
    %280 = vector.broadcast %cst_63 : f32 to vector<2x32xf32>
    %281 = arith.addf %280, %279 : vector<2x32xf32>
    %282 = arith.divf %280, %281 : vector<2x32xf32>
    %283 = vector.extract_strided_slice %265 {offsets = [0, 64], sizes = [2, 32], strides = [1, 1]} : vector<2x96xf32> to vector<2x32xf32>
    %284 = vector.extract_strided_slice %266 {offsets = [0, 64], sizes = [2, 32], strides = [1, 1]} : vector<2x96xf32> to vector<2x32xf32>
    %285 = vector.broadcast %263 : vector<1x32xf32> to vector<2x32xf32>
    %286 = arith.addf %284, %285 : vector<2x32xf32>
    %287 = arith.mulf %274, %286 : vector<2x32xf32>
    %288 = arith.addf %283, %287 : vector<2x32xf32>
    %289 = math.tanh %288 : vector<2x32xf32>
    %cst_64 = arith.constant 1.000000e+00 : f32
    %290 = vector.broadcast %cst_64 : f32 to vector<2x32xf32>
    %291 = arith.subf %290, %282 : vector<2x32xf32>
    %292 = arith.mulf %291, %289 : vector<2x32xf32>
    %293 = arith.mulf %282, %264 : vector<2x32xf32>
    %294 = arith.addf %292, %293 : vector<2x32xf32>
    %c14_65 = arith.constant 14 : index
    %c0_66 = arith.constant 0 : index
    %295 = vector.load %arg21[%c14_65, %c0_66] : memref<16x32xf32, #tpu.memory_space<vmem>>, vector<2x32xf32>
    tpu.vector_store %arg21[%c14_65, %c0_66], %294 {strides = array<i32>} : memref<16x32xf32, #tpu.memory_space<vmem>>, vector<2x32xf32>,
    %296 = vector.extract_strided_slice %261 {offsets = [12, 0], sizes = [2, 96], strides = [1, 1]} : vector<16x96xf32> to vector<2x96xf32>
    %cst_67 = arith.constant dense<0.000000e+00> : vector<2x96xf32>
    %297 = tpu.matmul %294, %262, %cst_67 {dimension_numbers = #tpu.dot_dimension_numbers<[1], [0], [0], [1], [0, 0, 1, 1], [], []>} : vector<2x32xf32>, vector<32x96xf32>, vector<2x96xf32> -> vector<2x96xf32>
    %298 = vector.extract_strided_slice %296 {offsets = [0, 0], sizes = [2, 32], strides = [1, 1]} : vector<2x96xf32> to vector<2x32xf32>
    %299 = vector.extract_strided_slice %297 {offsets = [0, 0], sizes = [2, 32], strides = [1, 1]} : vector<2x96xf32> to vector<2x32xf32>
    %300 = arith.addf %298, %299 : vector<2x32xf32>
    %301 = arith.negf %300 : vector<2x32xf32>
    %302 = math.exp %301 : vector<2x32xf32>
    %cst_68 = arith.constant 1.000000e+00 : f32
    %303 = vector.broadcast %cst_68 : f32 to vector<2x32xf32>
    %304 = arith.addf %303, %302 : vector<2x32xf32>
    %305 = arith.divf %303, %304 : vector<2x32xf32>
    %306 = vector.extract_strided_slice %296 {offsets = [0, 32], sizes = [2, 32], strides = [1, 1]} : vector<2x96xf32> to vector<2x32xf32>
    %307 = vector.extract_strided_slice %297 {offsets = [0, 32], sizes = [2, 32], strides = [1, 1]} : vector<2x96xf32> to vector<2x32xf32>
    %308 = arith.addf %306, %307 : vector<2x32xf32>
    %309 = arith.negf %308 : vector<2x32xf32>
    %310 = math.exp %309 : vector<2x32xf32>
    %cst_69 = arith.constant 1.000000e+00 : f32
    %311 = vector.broadcast %cst_69 : f32 to vector<2x32xf32>
    %312 = arith.addf %311, %310 : vector<2x32xf32>
    %313 = arith.divf %311, %312 : vector<2x32xf32>
    %314 = vector.extract_strided_slice %296 {offsets = [0, 64], sizes = [2, 32], strides = [1, 1]} : vector<2x96xf32> to vector<2x32xf32>
    %315 = vector.extract_strided_slice %297 {offsets = [0, 64], sizes = [2, 32], strides = [1, 1]} : vector<2x96xf32> to vector<2x32xf32>
    %316 = vector.broadcast %263 : vector<1x32xf32> to vector<2x32xf32>
    %317 = arith.addf %315, %316 : vector<2x32xf32>
    %318 = arith.mulf %305, %317 : vector<2x32xf32>
    %319 = arith.addf %314, %318 : vector<2x32xf32>
    %320 = math.tanh %319 : vector<2x32xf32>
    %cst_70 = arith.constant 1.000000e+00 : f32
    %321 = vector.broadcast %cst_70 : f32 to vector<2x32xf32>
    %322 = arith.subf %321, %313 : vector<2x32xf32>
    %323 = arith.mulf %322, %320 : vector<2x32xf32>
    %324 = arith.mulf %313, %294 : vector<2x32xf32>
    %325 = arith.addf %323, %324 : vector<2x32xf32>
    %c12_71 = arith.constant 12 : index
    %c0_72 = arith.constant 0 : index
    %326 = vector.load %arg21[%c12_71, %c0_72] : memref<16x32xf32, #tpu.memory_space<vmem>>, vector<2x32xf32>
    tpu.vector_store %arg21[%c12_71, %c0_72], %325 {strides = array<i32>} : memref<16x32xf32, #tpu.memory_space<vmem>>, vector<2x32xf32>,
    %327 = vector.extract_strided_slice %261 {offsets = [10, 0], sizes = [2, 96], strides = [1, 1]} : vector<16x96xf32> to vector<2x96xf32>
    %cst_73 = arith.constant dense<0.000000e+00> : vector<2x96xf32>
    %328 = tpu.matmul %325, %262, %cst_73 {dimension_numbers = #tpu.dot_dimension_numbers<[1], [0], [0], [1], [0, 0, 1, 1], [], []>} : vector<2x32xf32>, vector<32x96xf32>, vector<2x96xf32> -> vector<2x96xf32>
    %329 = vector.extract_strided_slice %327 {offsets = [0, 0], sizes = [2, 32], strides = [1, 1]} : vector<2x96xf32> to vector<2x32xf32>
    %330 = vector.extract_strided_slice %328 {offsets = [0, 0], sizes = [2, 32], strides = [1, 1]} : vector<2x96xf32> to vector<2x32xf32>
    %331 = arith.addf %329, %330 : vector<2x32xf32>
    %332 = arith.negf %331 : vector<2x32xf32>
    %333 = math.exp %332 : vector<2x32xf32>
    %cst_74 = arith.constant 1.000000e+00 : f32
    %334 = vector.broadcast %cst_74 : f32 to vector<2x32xf32>
    %335 = arith.addf %334, %333 : vector<2x32xf32>
    %336 = arith.divf %334, %335 : vector<2x32xf32>
    %337 = vector.extract_strided_slice %327 {offsets = [0, 32], sizes = [2, 32], strides = [1, 1]} : vector<2x96xf32> to vector<2x32xf32>
    %338 = vector.extract_strided_slice %328 {offsets = [0, 32], sizes = [2, 32], strides = [1, 1]} : vector<2x96xf32> to vector<2x32xf32>
    %339 = arith.addf %337, %338 : vector<2x32xf32>
    %340 = arith.negf %339 : vector<2x32xf32>
    %341 = math.exp %340 : vector<2x32xf32>
    %cst_75 = arith.constant 1.000000e+00 : f32
    %342 = vector.broadcast %cst_75 : f32 to vector<2x32xf32>
    %343 = arith.addf %342, %341 : vector<2x32xf32>
    %344 = arith.divf %342, %343 : vector<2x32xf32>
    %345 = vector.extract_strided_slice %327 {offsets = [0, 64], sizes = [2, 32], strides = [1, 1]} : vector<2x96xf32> to vector<2x32xf32>
    %346 = vector.extract_strided_slice %328 {offsets = [0, 64], sizes = [2, 32], strides = [1, 1]} : vector<2x96xf32> to vector<2x32xf32>
    %347 = vector.broadcast %263 : vector<1x32xf32> to vector<2x32xf32>
    %348 = arith.addf %346, %347 : vector<2x32xf32>
    %349 = arith.mulf %336, %348 : vector<2x32xf32>
    %350 = arith.addf %345, %349 : vector<2x32xf32>
    %351 = math.tanh %350 : vector<2x32xf32>
    %cst_76 = arith.constant 1.000000e+00 : f32
    %352 = vector.broadcast %cst_76 : f32 to vector<2x32xf32>
    %353 = arith.subf %352, %344 : vector<2x32xf32>
    %354 = arith.mulf %353, %351 : vector<2x32xf32>
    %355 = arith.mulf %344, %325 : vector<2x32xf32>
    %356 = arith.addf %354, %355 : vector<2x32xf32>
    %c10_77 = arith.constant 10 : index
    %c0_78 = arith.constant 0 : index
    %357 = vector.load %arg21[%c10_77, %c0_78] : memref<16x32xf32, #tpu.memory_space<vmem>>, vector<2x32xf32>
    tpu.vector_store %arg21[%c10_77, %c0_78], %356 {strides = array<i32>} : memref<16x32xf32, #tpu.memory_space<vmem>>, vector<2x32xf32>,
    %358 = vector.extract_strided_slice %261 {offsets = [8, 0], sizes = [2, 96], strides = [1, 1]} : vector<16x96xf32> to vector<2x96xf32>
    %cst_79 = arith.constant dense<0.000000e+00> : vector<2x96xf32>
    %359 = tpu.matmul %356, %262, %cst_79 {dimension_numbers = #tpu.dot_dimension_numbers<[1], [0], [0], [1], [0, 0, 1, 1], [], []>} : vector<2x32xf32>, vector<32x96xf32>, vector<2x96xf32> -> vector<2x96xf32>
    %360 = vector.extract_strided_slice %358 {offsets = [0, 0], sizes = [2, 32], strides = [1, 1]} : vector<2x96xf32> to vector<2x32xf32>
    %361 = vector.extract_strided_slice %359 {offsets = [0, 0], sizes = [2, 32], strides = [1, 1]} : vector<2x96xf32> to vector<2x32xf32>
    %362 = arith.addf %360, %361 : vector<2x32xf32>
    %363 = arith.negf %362 : vector<2x32xf32>
    %364 = math.exp %363 : vector<2x32xf32>
    %cst_80 = arith.constant 1.000000e+00 : f32
    %365 = vector.broadcast %cst_80 : f32 to vector<2x32xf32>
    %366 = arith.addf %365, %364 : vector<2x32xf32>
    %367 = arith.divf %365, %366 : vector<2x32xf32>
    %368 = vector.extract_strided_slice %358 {offsets = [0, 32], sizes = [2, 32], strides = [1, 1]} : vector<2x96xf32> to vector<2x32xf32>
    %369 = vector.extract_strided_slice %359 {offsets = [0, 32], sizes = [2, 32], strides = [1, 1]} : vector<2x96xf32> to vector<2x32xf32>
    %370 = arith.addf %368, %369 : vector<2x32xf32>
    %371 = arith.negf %370 : vector<2x32xf32>
    %372 = math.exp %371 : vector<2x32xf32>
    %cst_81 = arith.constant 1.000000e+00 : f32
    %373 = vector.broadcast %cst_81 : f32 to vector<2x32xf32>
    %374 = arith.addf %373, %372 : vector<2x32xf32>
    %375 = arith.divf %373, %374 : vector<2x32xf32>
    %376 = vector.extract_strided_slice %358 {offsets = [0, 64], sizes = [2, 32], strides = [1, 1]} : vector<2x96xf32> to vector<2x32xf32>
    %377 = vector.extract_strided_slice %359 {offsets = [0, 64], sizes = [2, 32], strides = [1, 1]} : vector<2x96xf32> to vector<2x32xf32>
    %378 = vector.broadcast %263 : vector<1x32xf32> to vector<2x32xf32>
    %379 = arith.addf %377, %378 : vector<2x32xf32>
    %380 = arith.mulf %367, %379 : vector<2x32xf32>
    %381 = arith.addf %376, %380 : vector<2x32xf32>
    %382 = math.tanh %381 : vector<2x32xf32>
    %cst_82 = arith.constant 1.000000e+00 : f32
    %383 = vector.broadcast %cst_82 : f32 to vector<2x32xf32>
    %384 = arith.subf %383, %375 : vector<2x32xf32>
    %385 = arith.mulf %384, %382 : vector<2x32xf32>
    %386 = arith.mulf %375, %356 : vector<2x32xf32>
    %387 = arith.addf %385, %386 : vector<2x32xf32>
    %c8_83 = arith.constant 8 : index
    %c0_84 = arith.constant 0 : index
    %388 = vector.load %arg21[%c8_83, %c0_84] : memref<16x32xf32, #tpu.memory_space<vmem>>, vector<2x32xf32>
    tpu.vector_store %arg21[%c8_83, %c0_84], %387 {strides = array<i32>} : memref<16x32xf32, #tpu.memory_space<vmem>>, vector<2x32xf32>,
    %389 = vector.extract_strided_slice %261 {offsets = [6, 0], sizes = [2, 96], strides = [1, 1]} : vector<16x96xf32> to vector<2x96xf32>
    %cst_85 = arith.constant dense<0.000000e+00> : vector<2x96xf32>
    %390 = tpu.matmul %387, %262, %cst_85 {dimension_numbers = #tpu.dot_dimension_numbers<[1], [0], [0], [1], [0, 0, 1, 1], [], []>} : vector<2x32xf32>, vector<32x96xf32>, vector<2x96xf32> -> vector<2x96xf32>
    %391 = vector.extract_strided_slice %389 {offsets = [0, 0], sizes = [2, 32], strides = [1, 1]} : vector<2x96xf32> to vector<2x32xf32>
    %392 = vector.extract_strided_slice %390 {offsets = [0, 0], sizes = [2, 32], strides = [1, 1]} : vector<2x96xf32> to vector<2x32xf32>
    %393 = arith.addf %391, %392 : vector<2x32xf32>
    %394 = arith.negf %393 : vector<2x32xf32>
    %395 = math.exp %394 : vector<2x32xf32>
    %cst_86 = arith.constant 1.000000e+00 : f32
    %396 = vector.broadcast %cst_86 : f32 to vector<2x32xf32>
    %397 = arith.addf %396, %395 : vector<2x32xf32>
    %398 = arith.divf %396, %397 : vector<2x32xf32>
    %399 = vector.extract_strided_slice %389 {offsets = [0, 32], sizes = [2, 32], strides = [1, 1]} : vector<2x96xf32> to vector<2x32xf32>
    %400 = vector.extract_strided_slice %390 {offsets = [0, 32], sizes = [2, 32], strides = [1, 1]} : vector<2x96xf32> to vector<2x32xf32>
    %401 = arith.addf %399, %400 : vector<2x32xf32>
    %402 = arith.negf %401 : vector<2x32xf32>
    %403 = math.exp %402 : vector<2x32xf32>
    %cst_87 = arith.constant 1.000000e+00 : f32
    %404 = vector.broadcast %cst_87 : f32 to vector<2x32xf32>
    %405 = arith.addf %404, %403 : vector<2x32xf32>
    %406 = arith.divf %404, %405 : vector<2x32xf32>
    %407 = vector.extract_strided_slice %389 {offsets = [0, 64], sizes = [2, 32], strides = [1, 1]} : vector<2x96xf32> to vector<2x32xf32>
    %408 = vector.extract_strided_slice %390 {offsets = [0, 64], sizes = [2, 32], strides = [1, 1]} : vector<2x96xf32> to vector<2x32xf32>
    %409 = vector.broadcast %263 : vector<1x32xf32> to vector<2x32xf32>
    %410 = arith.addf %408, %409 : vector<2x32xf32>
    %411 = arith.mulf %398, %410 : vector<2x32xf32>
    %412 = arith.addf %407, %411 : vector<2x32xf32>
    %413 = math.tanh %412 : vector<2x32xf32>
    %cst_88 = arith.constant 1.000000e+00 : f32
    %414 = vector.broadcast %cst_88 : f32 to vector<2x32xf32>
    %415 = arith.subf %414, %406 : vector<2x32xf32>
    %416 = arith.mulf %415, %413 : vector<2x32xf32>
    %417 = arith.mulf %406, %387 : vector<2x32xf32>
    %418 = arith.addf %416, %417 : vector<2x32xf32>
    %c6_89 = arith.constant 6 : index
    %c0_90 = arith.constant 0 : index
    %419 = vector.load %arg21[%c6_89, %c0_90] : memref<16x32xf32, #tpu.memory_space<vmem>>, vector<2x32xf32>
    tpu.vector_store %arg21[%c6_89, %c0_90], %418 {strides = array<i32>} : memref<16x32xf32, #tpu.memory_space<vmem>>, vector<2x32xf32>,
    %420 = vector.extract_strided_slice %261 {offsets = [4, 0], sizes = [2, 96], strides = [1, 1]} : vector<16x96xf32> to vector<2x96xf32>
    %cst_91 = arith.constant dense<0.000000e+00> : vector<2x96xf32>
    %421 = tpu.matmul %418, %262, %cst_91 {dimension_numbers = #tpu.dot_dimension_numbers<[1], [0], [0], [1], [0, 0, 1, 1], [], []>} : vector<2x32xf32>, vector<32x96xf32>, vector<2x96xf32> -> vector<2x96xf32>
    %422 = vector.extract_strided_slice %420 {offsets = [0, 0], sizes = [2, 32], strides = [1, 1]} : vector<2x96xf32> to vector<2x32xf32>
    %423 = vector.extract_strided_slice %421 {offsets = [0, 0], sizes = [2, 32], strides = [1, 1]} : vector<2x96xf32> to vector<2x32xf32>
    %424 = arith.addf %422, %423 : vector<2x32xf32>
    %425 = arith.negf %424 : vector<2x32xf32>
    %426 = math.exp %425 : vector<2x32xf32>
    %cst_92 = arith.constant 1.000000e+00 : f32
    %427 = vector.broadcast %cst_92 : f32 to vector<2x32xf32>
    %428 = arith.addf %427, %426 : vector<2x32xf32>
    %429 = arith.divf %427, %428 : vector<2x32xf32>
    %430 = vector.extract_strided_slice %420 {offsets = [0, 32], sizes = [2, 32], strides = [1, 1]} : vector<2x96xf32> to vector<2x32xf32>
    %431 = vector.extract_strided_slice %421 {offsets = [0, 32], sizes = [2, 32], strides = [1, 1]} : vector<2x96xf32> to vector<2x32xf32>
    %432 = arith.addf %430, %431 : vector<2x32xf32>
    %433 = arith.negf %432 : vector<2x32xf32>
    %434 = math.exp %433 : vector<2x32xf32>
    %cst_93 = arith.constant 1.000000e+00 : f32
    %435 = vector.broadcast %cst_93 : f32 to vector<2x32xf32>
    %436 = arith.addf %435, %434 : vector<2x32xf32>
    %437 = arith.divf %435, %436 : vector<2x32xf32>
    %438 = vector.extract_strided_slice %420 {offsets = [0, 64], sizes = [2, 32], strides = [1, 1]} : vector<2x96xf32> to vector<2x32xf32>
    %439 = vector.extract_strided_slice %421 {offsets = [0, 64], sizes = [2, 32], strides = [1, 1]} : vector<2x96xf32> to vector<2x32xf32>
    %440 = vector.broadcast %263 : vector<1x32xf32> to vector<2x32xf32>
    %441 = arith.addf %439, %440 : vector<2x32xf32>
    %442 = arith.mulf %429, %441 : vector<2x32xf32>
    %443 = arith.addf %438, %442 : vector<2x32xf32>
    %444 = math.tanh %443 : vector<2x32xf32>
    %cst_94 = arith.constant 1.000000e+00 : f32
    %445 = vector.broadcast %cst_94 : f32 to vector<2x32xf32>
    %446 = arith.subf %445, %437 : vector<2x32xf32>
    %447 = arith.mulf %446, %444 : vector<2x32xf32>
    %448 = arith.mulf %437, %418 : vector<2x32xf32>
    %449 = arith.addf %447, %448 : vector<2x32xf32>
    %c4_95 = arith.constant 4 : index
    %c0_96 = arith.constant 0 : index
    %450 = vector.load %arg21[%c4_95, %c0_96] : memref<16x32xf32, #tpu.memory_space<vmem>>, vector<2x32xf32>
    tpu.vector_store %arg21[%c4_95, %c0_96], %449 {strides = array<i32>} : memref<16x32xf32, #tpu.memory_space<vmem>>, vector<2x32xf32>,
    %451 = vector.extract_strided_slice %261 {offsets = [2, 0], sizes = [2, 96], strides = [1, 1]} : vector<16x96xf32> to vector<2x96xf32>
    %cst_97 = arith.constant dense<0.000000e+00> : vector<2x96xf32>
    %452 = tpu.matmul %449, %262, %cst_97 {dimension_numbers = #tpu.dot_dimension_numbers<[1], [0], [0], [1], [0, 0, 1, 1], [], []>} : vector<2x32xf32>, vector<32x96xf32>, vector<2x96xf32> -> vector<2x96xf32>
    %453 = vector.extract_strided_slice %451 {offsets = [0, 0], sizes = [2, 32], strides = [1, 1]} : vector<2x96xf32> to vector<2x32xf32>
    %454 = vector.extract_strided_slice %452 {offsets = [0, 0], sizes = [2, 32], strides = [1, 1]} : vector<2x96xf32> to vector<2x32xf32>
    %455 = arith.addf %453, %454 : vector<2x32xf32>
    %456 = arith.negf %455 : vector<2x32xf32>
    %457 = math.exp %456 : vector<2x32xf32>
    %cst_98 = arith.constant 1.000000e+00 : f32
    %458 = vector.broadcast %cst_98 : f32 to vector<2x32xf32>
    %459 = arith.addf %458, %457 : vector<2x32xf32>
    %460 = arith.divf %458, %459 : vector<2x32xf32>
    %461 = vector.extract_strided_slice %451 {offsets = [0, 32], sizes = [2, 32], strides = [1, 1]} : vector<2x96xf32> to vector<2x32xf32>
    %462 = vector.extract_strided_slice %452 {offsets = [0, 32], sizes = [2, 32], strides = [1, 1]} : vector<2x96xf32> to vector<2x32xf32>
    %463 = arith.addf %461, %462 : vector<2x32xf32>
    %464 = arith.negf %463 : vector<2x32xf32>
    %465 = math.exp %464 : vector<2x32xf32>
    %cst_99 = arith.constant 1.000000e+00 : f32
    %466 = vector.broadcast %cst_99 : f32 to vector<2x32xf32>
    %467 = arith.addf %466, %465 : vector<2x32xf32>
    %468 = arith.divf %466, %467 : vector<2x32xf32>
    %469 = vector.extract_strided_slice %451 {offsets = [0, 64], sizes = [2, 32], strides = [1, 1]} : vector<2x96xf32> to vector<2x32xf32>
    %470 = vector.extract_strided_slice %452 {offsets = [0, 64], sizes = [2, 32], strides = [1, 1]} : vector<2x96xf32> to vector<2x32xf32>
    %471 = vector.broadcast %263 : vector<1x32xf32> to vector<2x32xf32>
    %472 = arith.addf %470, %471 : vector<2x32xf32>
    %473 = arith.mulf %460, %472 : vector<2x32xf32>
    %474 = arith.addf %469, %473 : vector<2x32xf32>
    %475 = math.tanh %474 : vector<2x32xf32>
    %cst_100 = arith.constant 1.000000e+00 : f32
    %476 = vector.broadcast %cst_100 : f32 to vector<2x32xf32>
    %477 = arith.subf %476, %468 : vector<2x32xf32>
    %478 = arith.mulf %477, %475 : vector<2x32xf32>
    %479 = arith.mulf %468, %449 : vector<2x32xf32>
    %480 = arith.addf %478, %479 : vector<2x32xf32>
    %c2_101 = arith.constant 2 : index
    %c0_102 = arith.constant 0 : index
    %481 = vector.load %arg21[%c2_101, %c0_102] : memref<16x32xf32, #tpu.memory_space<vmem>>, vector<2x32xf32>
    tpu.vector_store %arg21[%c2_101, %c0_102], %480 {strides = array<i32>} : memref<16x32xf32, #tpu.memory_space<vmem>>, vector<2x32xf32>,
    %482 = vector.extract_strided_slice %261 {offsets = [0, 0], sizes = [2, 96], strides = [1, 1]} : vector<16x96xf32> to vector<2x96xf32>
    %cst_103 = arith.constant dense<0.000000e+00> : vector<2x96xf32>
    %483 = tpu.matmul %480, %262, %cst_103 {dimension_numbers = #tpu.dot_dimension_numbers<[1], [0], [0], [1], [0, 0, 1, 1], [], []>} : vector<2x32xf32>, vector<32x96xf32>, vector<2x96xf32> -> vector<2x96xf32>
    %484 = vector.extract_strided_slice %482 {offsets = [0, 0], sizes = [2, 32], strides = [1, 1]} : vector<2x96xf32> to vector<2x32xf32>
    %485 = vector.extract_strided_slice %483 {offsets = [0, 0], sizes = [2, 32], strides = [1, 1]} : vector<2x96xf32> to vector<2x32xf32>
    %486 = arith.addf %484, %485 : vector<2x32xf32>
    %487 = arith.negf %486 : vector<2x32xf32>
    %488 = math.exp %487 : vector<2x32xf32>
    %cst_104 = arith.constant 1.000000e+00 : f32
    %489 = vector.broadcast %cst_104 : f32 to vector<2x32xf32>
    %490 = arith.addf %489, %488 : vector<2x32xf32>
    %491 = arith.divf %489, %490 : vector<2x32xf32>
    %492 = vector.extract_strided_slice %482 {offsets = [0, 32], sizes = [2, 32], strides = [1, 1]} : vector<2x96xf32> to vector<2x32xf32>
    %493 = vector.extract_strided_slice %483 {offsets = [0, 32], sizes = [2, 32], strides = [1, 1]} : vector<2x96xf32> to vector<2x32xf32>
    %494 = arith.addf %492, %493 : vector<2x32xf32>
    %495 = arith.negf %494 : vector<2x32xf32>
    %496 = math.exp %495 : vector<2x32xf32>
    %cst_105 = arith.constant 1.000000e+00 : f32
    %497 = vector.broadcast %cst_105 : f32 to vector<2x32xf32>
    %498 = arith.addf %497, %496 : vector<2x32xf32>
    %499 = arith.divf %497, %498 : vector<2x32xf32>
    %500 = vector.extract_strided_slice %482 {offsets = [0, 64], sizes = [2, 32], strides = [1, 1]} : vector<2x96xf32> to vector<2x32xf32>
    %501 = vector.extract_strided_slice %483 {offsets = [0, 64], sizes = [2, 32], strides = [1, 1]} : vector<2x96xf32> to vector<2x32xf32>
    %502 = vector.broadcast %263 : vector<1x32xf32> to vector<2x32xf32>
    %503 = arith.addf %501, %502 : vector<2x32xf32>
    %504 = arith.mulf %491, %503 : vector<2x32xf32>
    %505 = arith.addf %500, %504 : vector<2x32xf32>
    %506 = math.tanh %505 : vector<2x32xf32>
    %cst_106 = arith.constant 1.000000e+00 : f32
    %507 = vector.broadcast %cst_106 : f32 to vector<2x32xf32>
    %508 = arith.subf %507, %499 : vector<2x32xf32>
    %509 = arith.mulf %508, %506 : vector<2x32xf32>
    %510 = arith.mulf %499, %480 : vector<2x32xf32>
    %511 = arith.addf %509, %510 : vector<2x32xf32>
    %c0_107 = arith.constant 0 : index
    %c0_108 = arith.constant 0 : index
    %512 = vector.load %arg21[%c0_107, %c0_108] : memref<16x32xf32, #tpu.memory_space<vmem>>, vector<2x32xf32>
    tpu.vector_store %arg21[%c0_107, %c0_108], %511 {strides = array<i32>} : memref<16x32xf32, #tpu.memory_space<vmem>>, vector<2x32xf32>,
    %c0_109 = arith.constant 0 : index
    %c0_110 = arith.constant 0 : index
    %513 = vector.load %arg20[%c0_109, %c0_110] : memref<16x32xf32, #tpu.memory_space<vmem>>, vector<16x32xf32>
    %c0_111 = arith.constant 0 : index
    %c0_112 = arith.constant 0 : index
    %514 = vector.load %arg21[%c0_111, %c0_112] : memref<16x32xf32, #tpu.memory_space<vmem>>, vector<16x32xf32>
    %c0_113 = arith.constant 0 : index
    %c0_114 = arith.constant 0 : index
    %515 = vector.load %arg9[%c0_113, %c0_114] : memref<64x96xf32, #tpu.memory_space<vmem>>, vector<64x96xf32>
    %516 = vector.extract_strided_slice %515 {offsets = [0, 0], sizes = [32, 96], strides = [1, 1]} : vector<64x96xf32> to vector<32x96xf32>
    %cst_115 = arith.constant dense<0.000000e+00> : vector<16x96xf32>
    %517 = tpu.matmul %513, %516, %cst_115 {dimension_numbers = #tpu.dot_dimension_numbers<[1], [0], [0], [1], [0, 0, 1, 1], [], []>} : vector<16x32xf32>, vector<32x96xf32>, vector<16x96xf32> -> vector<16x96xf32>
    %518 = vector.extract_strided_slice %515 {offsets = [32, 0], sizes = [32, 96], strides = [1, 1]} : vector<64x96xf32> to vector<32x96xf32>
    %cst_116 = arith.constant dense<0.000000e+00> : vector<16x96xf32>
    %519 = tpu.matmul %514, %518, %cst_116 {dimension_numbers = #tpu.dot_dimension_numbers<[1], [0], [0], [1], [0, 0, 1, 1], [], []>} : vector<16x32xf32>, vector<32x96xf32>, vector<16x96xf32> -> vector<16x96xf32>
    %520 = arith.addf %517, %519 : vector<16x96xf32>
    %c0_117 = arith.constant 0 : index
    %c0_118 = arith.constant 0 : index
    %521 = vector.load %arg11[%c0_117, %c0_118] : memref<1x96xf32, #tpu.memory_space<vmem>>, vector<1x96xf32>
    %522 = vector.broadcast %521 : vector<1x96xf32> to vector<16x96xf32>
    %523 = arith.addf %520, %522 : vector<16x96xf32>
    %c0_119 = arith.constant 0 : index
    %c0_120 = arith.constant 0 : index
    %524 = vector.load %arg10[%c0_119, %c0_120] : memref<32x96xf32, #tpu.memory_space<vmem>>, vector<32x96xf32>
    %c0_121 = arith.constant 0 : index
    %c0_122 = arith.constant 0 : index
    %525 = vector.load %arg12[%c0_121, %c0_122] : memref<1x32xf32, #tpu.memory_space<vmem>>, vector<1x32xf32>
    %cst_123 = arith.constant 0.000000e+00 : f32
    %526 = vector.broadcast %cst_123 : f32 to vector<2x32xf32>
    %527 = vector.extract_strided_slice %523 {offsets = [0, 0], sizes = [2, 96], strides = [1, 1]} : vector<16x96xf32> to vector<2x96xf32>
    %cst_124 = arith.constant dense<0.000000e+00> : vector<2x96xf32>
    %528 = tpu.matmul %526, %524, %cst_124 {dimension_numbers = #tpu.dot_dimension_numbers<[1], [0], [0], [1], [0, 0, 1, 1], [], []>} : vector<2x32xf32>, vector<32x96xf32>, vector<2x96xf32> -> vector<2x96xf32>
    %529 = vector.extract_strided_slice %527 {offsets = [0, 0], sizes = [2, 32], strides = [1, 1]} : vector<2x96xf32> to vector<2x32xf32>
    %530 = vector.extract_strided_slice %528 {offsets = [0, 0], sizes = [2, 32], strides = [1, 1]} : vector<2x96xf32> to vector<2x32xf32>
    %531 = arith.addf %529, %530 : vector<2x32xf32>
    %532 = arith.negf %531 : vector<2x32xf32>
    %533 = math.exp %532 : vector<2x32xf32>
    %cst_125 = arith.constant 1.000000e+00 : f32
    %534 = vector.broadcast %cst_125 : f32 to vector<2x32xf32>
    %535 = arith.addf %534, %533 : vector<2x32xf32>
    %536 = arith.divf %534, %535 : vector<2x32xf32>
    %537 = vector.extract_strided_slice %527 {offsets = [0, 32], sizes = [2, 32], strides = [1, 1]} : vector<2x96xf32> to vector<2x32xf32>
    %538 = vector.extract_strided_slice %528 {offsets = [0, 32], sizes = [2, 32], strides = [1, 1]} : vector<2x96xf32> to vector<2x32xf32>
    %539 = arith.addf %537, %538 : vector<2x32xf32>
    %540 = arith.negf %539 : vector<2x32xf32>
    %541 = math.exp %540 : vector<2x32xf32>
    %cst_126 = arith.constant 1.000000e+00 : f32
    %542 = vector.broadcast %cst_126 : f32 to vector<2x32xf32>
    %543 = arith.addf %542, %541 : vector<2x32xf32>
    %544 = arith.divf %542, %543 : vector<2x32xf32>
    %545 = vector.extract_strided_slice %527 {offsets = [0, 64], sizes = [2, 32], strides = [1, 1]} : vector<2x96xf32> to vector<2x32xf32>
    %546 = vector.extract_strided_slice %528 {offsets = [0, 64], sizes = [2, 32], strides = [1, 1]} : vector<2x96xf32> to vector<2x32xf32>
    %547 = vector.broadcast %525 : vector<1x32xf32> to vector<2x32xf32>
    %548 = arith.addf %546, %547 : vector<2x32xf32>
    %549 = arith.mulf %536, %548 : vector<2x32xf32>
    %550 = arith.addf %545, %549 : vector<2x32xf32>
    %551 = math.tanh %550 : vector<2x32xf32>
    %cst_127 = arith.constant 1.000000e+00 : f32
    %552 = vector.broadcast %cst_127 : f32 to vector<2x32xf32>
    %553 = arith.subf %552, %544 : vector<2x32xf32>
    %554 = arith.mulf %553, %551 : vector<2x32xf32>
    %555 = arith.mulf %544, %526 : vector<2x32xf32>
    %556 = arith.addf %554, %555 : vector<2x32xf32>
    %557 = vector.extract_strided_slice %523 {offsets = [2, 0], sizes = [2, 96], strides = [1, 1]} : vector<16x96xf32> to vector<2x96xf32>
    %cst_128 = arith.constant dense<0.000000e+00> : vector<2x96xf32>
    %558 = tpu.matmul %556, %524, %cst_128 {dimension_numbers = #tpu.dot_dimension_numbers<[1], [0], [0], [1], [0, 0, 1, 1], [], []>} : vector<2x32xf32>, vector<32x96xf32>, vector<2x96xf32> -> vector<2x96xf32>
    %559 = vector.extract_strided_slice %557 {offsets = [0, 0], sizes = [2, 32], strides = [1, 1]} : vector<2x96xf32> to vector<2x32xf32>
    %560 = vector.extract_strided_slice %558 {offsets = [0, 0], sizes = [2, 32], strides = [1, 1]} : vector<2x96xf32> to vector<2x32xf32>
    %561 = arith.addf %559, %560 : vector<2x32xf32>
    %562 = arith.negf %561 : vector<2x32xf32>
    %563 = math.exp %562 : vector<2x32xf32>
    %cst_129 = arith.constant 1.000000e+00 : f32
    %564 = vector.broadcast %cst_129 : f32 to vector<2x32xf32>
    %565 = arith.addf %564, %563 : vector<2x32xf32>
    %566 = arith.divf %564, %565 : vector<2x32xf32>
    %567 = vector.extract_strided_slice %557 {offsets = [0, 32], sizes = [2, 32], strides = [1, 1]} : vector<2x96xf32> to vector<2x32xf32>
    %568 = vector.extract_strided_slice %558 {offsets = [0, 32], sizes = [2, 32], strides = [1, 1]} : vector<2x96xf32> to vector<2x32xf32>
    %569 = arith.addf %567, %568 : vector<2x32xf32>
    %570 = arith.negf %569 : vector<2x32xf32>
    %571 = math.exp %570 : vector<2x32xf32>
    %cst_130 = arith.constant 1.000000e+00 : f32
    %572 = vector.broadcast %cst_130 : f32 to vector<2x32xf32>
    %573 = arith.addf %572, %571 : vector<2x32xf32>
    %574 = arith.divf %572, %573 : vector<2x32xf32>
    %575 = vector.extract_strided_slice %557 {offsets = [0, 64], sizes = [2, 32], strides = [1, 1]} : vector<2x96xf32> to vector<2x32xf32>
    %576 = vector.extract_strided_slice %558 {offsets = [0, 64], sizes = [2, 32], strides = [1, 1]} : vector<2x96xf32> to vector<2x32xf32>
    %577 = vector.broadcast %525 : vector<1x32xf32> to vector<2x32xf32>
    %578 = arith.addf %576, %577 : vector<2x32xf32>
    %579 = arith.mulf %566, %578 : vector<2x32xf32>
    %580 = arith.addf %575, %579 : vector<2x32xf32>
    %581 = math.tanh %580 : vector<2x32xf32>
    %cst_131 = arith.constant 1.000000e+00 : f32
    %582 = vector.broadcast %cst_131 : f32 to vector<2x32xf32>
    %583 = arith.subf %582, %574 : vector<2x32xf32>
    %584 = arith.mulf %583, %581 : vector<2x32xf32>
    %585 = arith.mulf %574, %556 : vector<2x32xf32>
    %586 = arith.addf %584, %585 : vector<2x32xf32>
    %587 = vector.extract_strided_slice %523 {offsets = [4, 0], sizes = [2, 96], strides = [1, 1]} : vector<16x96xf32> to vector<2x96xf32>
    %cst_132 = arith.constant dense<0.000000e+00> : vector<2x96xf32>
    %588 = tpu.matmul %586, %524, %cst_132 {dimension_numbers = #tpu.dot_dimension_numbers<[1], [0], [0], [1], [0, 0, 1, 1], [], []>} : vector<2x32xf32>, vector<32x96xf32>, vector<2x96xf32> -> vector<2x96xf32>
    %589 = vector.extract_strided_slice %587 {offsets = [0, 0], sizes = [2, 32], strides = [1, 1]} : vector<2x96xf32> to vector<2x32xf32>
    %590 = vector.extract_strided_slice %588 {offsets = [0, 0], sizes = [2, 32], strides = [1, 1]} : vector<2x96xf32> to vector<2x32xf32>
    %591 = arith.addf %589, %590 : vector<2x32xf32>
    %592 = arith.negf %591 : vector<2x32xf32>
    %593 = math.exp %592 : vector<2x32xf32>
    %cst_133 = arith.constant 1.000000e+00 : f32
    %594 = vector.broadcast %cst_133 : f32 to vector<2x32xf32>
    %595 = arith.addf %594, %593 : vector<2x32xf32>
    %596 = arith.divf %594, %595 : vector<2x32xf32>
    %597 = vector.extract_strided_slice %587 {offsets = [0, 32], sizes = [2, 32], strides = [1, 1]} : vector<2x96xf32> to vector<2x32xf32>
    %598 = vector.extract_strided_slice %588 {offsets = [0, 32], sizes = [2, 32], strides = [1, 1]} : vector<2x96xf32> to vector<2x32xf32>
    %599 = arith.addf %597, %598 : vector<2x32xf32>
    %600 = arith.negf %599 : vector<2x32xf32>
    %601 = math.exp %600 : vector<2x32xf32>
    %cst_134 = arith.constant 1.000000e+00 : f32
    %602 = vector.broadcast %cst_134 : f32 to vector<2x32xf32>
    %603 = arith.addf %602, %601 : vector<2x32xf32>
    %604 = arith.divf %602, %603 : vector<2x32xf32>
    %605 = vector.extract_strided_slice %587 {offsets = [0, 64], sizes = [2, 32], strides = [1, 1]} : vector<2x96xf32> to vector<2x32xf32>
    %606 = vector.extract_strided_slice %588 {offsets = [0, 64], sizes = [2, 32], strides = [1, 1]} : vector<2x96xf32> to vector<2x32xf32>
    %607 = vector.broadcast %525 : vector<1x32xf32> to vector<2x32xf32>
    %608 = arith.addf %606, %607 : vector<2x32xf32>
    %609 = arith.mulf %596, %608 : vector<2x32xf32>
    %610 = arith.addf %605, %609 : vector<2x32xf32>
    %611 = math.tanh %610 : vector<2x32xf32>
    %cst_135 = arith.constant 1.000000e+00 : f32
    %612 = vector.broadcast %cst_135 : f32 to vector<2x32xf32>
    %613 = arith.subf %612, %604 : vector<2x32xf32>
    %614 = arith.mulf %613, %611 : vector<2x32xf32>
    %615 = arith.mulf %604, %586 : vector<2x32xf32>
    %616 = arith.addf %614, %615 : vector<2x32xf32>
    %617 = vector.extract_strided_slice %523 {offsets = [6, 0], sizes = [2, 96], strides = [1, 1]} : vector<16x96xf32> to vector<2x96xf32>
    %cst_136 = arith.constant dense<0.000000e+00> : vector<2x96xf32>
    %618 = tpu.matmul %616, %524, %cst_136 {dimension_numbers = #tpu.dot_dimension_numbers<[1], [0], [0], [1], [0, 0, 1, 1], [], []>} : vector<2x32xf32>, vector<32x96xf32>, vector<2x96xf32> -> vector<2x96xf32>
    %619 = vector.extract_strided_slice %617 {offsets = [0, 0], sizes = [2, 32], strides = [1, 1]} : vector<2x96xf32> to vector<2x32xf32>
    %620 = vector.extract_strided_slice %618 {offsets = [0, 0], sizes = [2, 32], strides = [1, 1]} : vector<2x96xf32> to vector<2x32xf32>
    %621 = arith.addf %619, %620 : vector<2x32xf32>
    %622 = arith.negf %621 : vector<2x32xf32>
    %623 = math.exp %622 : vector<2x32xf32>
    %cst_137 = arith.constant 1.000000e+00 : f32
    %624 = vector.broadcast %cst_137 : f32 to vector<2x32xf32>
    %625 = arith.addf %624, %623 : vector<2x32xf32>
    %626 = arith.divf %624, %625 : vector<2x32xf32>
    %627 = vector.extract_strided_slice %617 {offsets = [0, 32], sizes = [2, 32], strides = [1, 1]} : vector<2x96xf32> to vector<2x32xf32>
    %628 = vector.extract_strided_slice %618 {offsets = [0, 32], sizes = [2, 32], strides = [1, 1]} : vector<2x96xf32> to vector<2x32xf32>
    %629 = arith.addf %627, %628 : vector<2x32xf32>
    %630 = arith.negf %629 : vector<2x32xf32>
    %631 = math.exp %630 : vector<2x32xf32>
    %cst_138 = arith.constant 1.000000e+00 : f32
    %632 = vector.broadcast %cst_138 : f32 to vector<2x32xf32>
    %633 = arith.addf %632, %631 : vector<2x32xf32>
    %634 = arith.divf %632, %633 : vector<2x32xf32>
    %635 = vector.extract_strided_slice %617 {offsets = [0, 64], sizes = [2, 32], strides = [1, 1]} : vector<2x96xf32> to vector<2x32xf32>
    %636 = vector.extract_strided_slice %618 {offsets = [0, 64], sizes = [2, 32], strides = [1, 1]} : vector<2x96xf32> to vector<2x32xf32>
    %637 = vector.broadcast %525 : vector<1x32xf32> to vector<2x32xf32>
    %638 = arith.addf %636, %637 : vector<2x32xf32>
    %639 = arith.mulf %626, %638 : vector<2x32xf32>
    %640 = arith.addf %635, %639 : vector<2x32xf32>
    %641 = math.tanh %640 : vector<2x32xf32>
    %cst_139 = arith.constant 1.000000e+00 : f32
    %642 = vector.broadcast %cst_139 : f32 to vector<2x32xf32>
    %643 = arith.subf %642, %634 : vector<2x32xf32>
    %644 = arith.mulf %643, %641 : vector<2x32xf32>
    %645 = arith.mulf %634, %616 : vector<2x32xf32>
    %646 = arith.addf %644, %645 : vector<2x32xf32>
    %647 = vector.extract_strided_slice %523 {offsets = [8, 0], sizes = [2, 96], strides = [1, 1]} : vector<16x96xf32> to vector<2x96xf32>
    %cst_140 = arith.constant dense<0.000000e+00> : vector<2x96xf32>
    %648 = tpu.matmul %646, %524, %cst_140 {dimension_numbers = #tpu.dot_dimension_numbers<[1], [0], [0], [1], [0, 0, 1, 1], [], []>} : vector<2x32xf32>, vector<32x96xf32>, vector<2x96xf32> -> vector<2x96xf32>
    %649 = vector.extract_strided_slice %647 {offsets = [0, 0], sizes = [2, 32], strides = [1, 1]} : vector<2x96xf32> to vector<2x32xf32>
    %650 = vector.extract_strided_slice %648 {offsets = [0, 0], sizes = [2, 32], strides = [1, 1]} : vector<2x96xf32> to vector<2x32xf32>
    %651 = arith.addf %649, %650 : vector<2x32xf32>
    %652 = arith.negf %651 : vector<2x32xf32>
    %653 = math.exp %652 : vector<2x32xf32>
    %cst_141 = arith.constant 1.000000e+00 : f32
    %654 = vector.broadcast %cst_141 : f32 to vector<2x32xf32>
    %655 = arith.addf %654, %653 : vector<2x32xf32>
    %656 = arith.divf %654, %655 : vector<2x32xf32>
    %657 = vector.extract_strided_slice %647 {offsets = [0, 32], sizes = [2, 32], strides = [1, 1]} : vector<2x96xf32> to vector<2x32xf32>
    %658 = vector.extract_strided_slice %648 {offsets = [0, 32], sizes = [2, 32], strides = [1, 1]} : vector<2x96xf32> to vector<2x32xf32>
    %659 = arith.addf %657, %658 : vector<2x32xf32>
    %660 = arith.negf %659 : vector<2x32xf32>
    %661 = math.exp %660 : vector<2x32xf32>
    %cst_142 = arith.constant 1.000000e+00 : f32
    %662 = vector.broadcast %cst_142 : f32 to vector<2x32xf32>
    %663 = arith.addf %662, %661 : vector<2x32xf32>
    %664 = arith.divf %662, %663 : vector<2x32xf32>
    %665 = vector.extract_strided_slice %647 {offsets = [0, 64], sizes = [2, 32], strides = [1, 1]} : vector<2x96xf32> to vector<2x32xf32>
    %666 = vector.extract_strided_slice %648 {offsets = [0, 64], sizes = [2, 32], strides = [1, 1]} : vector<2x96xf32> to vector<2x32xf32>
    %667 = vector.broadcast %525 : vector<1x32xf32> to vector<2x32xf32>
    %668 = arith.addf %666, %667 : vector<2x32xf32>
    %669 = arith.mulf %656, %668 : vector<2x32xf32>
    %670 = arith.addf %665, %669 : vector<2x32xf32>
    %671 = math.tanh %670 : vector<2x32xf32>
    %cst_143 = arith.constant 1.000000e+00 : f32
    %672 = vector.broadcast %cst_143 : f32 to vector<2x32xf32>
    %673 = arith.subf %672, %664 : vector<2x32xf32>
    %674 = arith.mulf %673, %671 : vector<2x32xf32>
    %675 = arith.mulf %664, %646 : vector<2x32xf32>
    %676 = arith.addf %674, %675 : vector<2x32xf32>
    %677 = vector.extract_strided_slice %523 {offsets = [10, 0], sizes = [2, 96], strides = [1, 1]} : vector<16x96xf32> to vector<2x96xf32>
    %cst_144 = arith.constant dense<0.000000e+00> : vector<2x96xf32>
    %678 = tpu.matmul %676, %524, %cst_144 {dimension_numbers = #tpu.dot_dimension_numbers<[1], [0], [0], [1], [0, 0, 1, 1], [], []>} : vector<2x32xf32>, vector<32x96xf32>, vector<2x96xf32> -> vector<2x96xf32>
    %679 = vector.extract_strided_slice %677 {offsets = [0, 0], sizes = [2, 32], strides = [1, 1]} : vector<2x96xf32> to vector<2x32xf32>
    %680 = vector.extract_strided_slice %678 {offsets = [0, 0], sizes = [2, 32], strides = [1, 1]} : vector<2x96xf32> to vector<2x32xf32>
    %681 = arith.addf %679, %680 : vector<2x32xf32>
    %682 = arith.negf %681 : vector<2x32xf32>
    %683 = math.exp %682 : vector<2x32xf32>
    %cst_145 = arith.constant 1.000000e+00 : f32
    %684 = vector.broadcast %cst_145 : f32 to vector<2x32xf32>
    %685 = arith.addf %684, %683 : vector<2x32xf32>
    %686 = arith.divf %684, %685 : vector<2x32xf32>
    %687 = vector.extract_strided_slice %677 {offsets = [0, 32], sizes = [2, 32], strides = [1, 1]} : vector<2x96xf32> to vector<2x32xf32>
    %688 = vector.extract_strided_slice %678 {offsets = [0, 32], sizes = [2, 32], strides = [1, 1]} : vector<2x96xf32> to vector<2x32xf32>
    %689 = arith.addf %687, %688 : vector<2x32xf32>
    %690 = arith.negf %689 : vector<2x32xf32>
    %691 = math.exp %690 : vector<2x32xf32>
    %cst_146 = arith.constant 1.000000e+00 : f32
    %692 = vector.broadcast %cst_146 : f32 to vector<2x32xf32>
    %693 = arith.addf %692, %691 : vector<2x32xf32>
    %694 = arith.divf %692, %693 : vector<2x32xf32>
    %695 = vector.extract_strided_slice %677 {offsets = [0, 64], sizes = [2, 32], strides = [1, 1]} : vector<2x96xf32> to vector<2x32xf32>
    %696 = vector.extract_strided_slice %678 {offsets = [0, 64], sizes = [2, 32], strides = [1, 1]} : vector<2x96xf32> to vector<2x32xf32>
    %697 = vector.broadcast %525 : vector<1x32xf32> to vector<2x32xf32>
    %698 = arith.addf %696, %697 : vector<2x32xf32>
    %699 = arith.mulf %686, %698 : vector<2x32xf32>
    %700 = arith.addf %695, %699 : vector<2x32xf32>
    %701 = math.tanh %700 : vector<2x32xf32>
    %cst_147 = arith.constant 1.000000e+00 : f32
    %702 = vector.broadcast %cst_147 : f32 to vector<2x32xf32>
    %703 = arith.subf %702, %694 : vector<2x32xf32>
    %704 = arith.mulf %703, %701 : vector<2x32xf32>
    %705 = arith.mulf %694, %676 : vector<2x32xf32>
    %706 = arith.addf %704, %705 : vector<2x32xf32>
    %707 = vector.extract_strided_slice %523 {offsets = [12, 0], sizes = [2, 96], strides = [1, 1]} : vector<16x96xf32> to vector<2x96xf32>
    %cst_148 = arith.constant dense<0.000000e+00> : vector<2x96xf32>
    %708 = tpu.matmul %706, %524, %cst_148 {dimension_numbers = #tpu.dot_dimension_numbers<[1], [0], [0], [1], [0, 0, 1, 1], [], []>} : vector<2x32xf32>, vector<32x96xf32>, vector<2x96xf32> -> vector<2x96xf32>
    %709 = vector.extract_strided_slice %707 {offsets = [0, 0], sizes = [2, 32], strides = [1, 1]} : vector<2x96xf32> to vector<2x32xf32>
    %710 = vector.extract_strided_slice %708 {offsets = [0, 0], sizes = [2, 32], strides = [1, 1]} : vector<2x96xf32> to vector<2x32xf32>
    %711 = arith.addf %709, %710 : vector<2x32xf32>
    %712 = arith.negf %711 : vector<2x32xf32>
    %713 = math.exp %712 : vector<2x32xf32>
    %cst_149 = arith.constant 1.000000e+00 : f32
    %714 = vector.broadcast %cst_149 : f32 to vector<2x32xf32>
    %715 = arith.addf %714, %713 : vector<2x32xf32>
    %716 = arith.divf %714, %715 : vector<2x32xf32>
    %717 = vector.extract_strided_slice %707 {offsets = [0, 32], sizes = [2, 32], strides = [1, 1]} : vector<2x96xf32> to vector<2x32xf32>
    %718 = vector.extract_strided_slice %708 {offsets = [0, 32], sizes = [2, 32], strides = [1, 1]} : vector<2x96xf32> to vector<2x32xf32>
    %719 = arith.addf %717, %718 : vector<2x32xf32>
    %720 = arith.negf %719 : vector<2x32xf32>
    %721 = math.exp %720 : vector<2x32xf32>
    %cst_150 = arith.constant 1.000000e+00 : f32
    %722 = vector.broadcast %cst_150 : f32 to vector<2x32xf32>
    %723 = arith.addf %722, %721 : vector<2x32xf32>
    %724 = arith.divf %722, %723 : vector<2x32xf32>
    %725 = vector.extract_strided_slice %707 {offsets = [0, 64], sizes = [2, 32], strides = [1, 1]} : vector<2x96xf32> to vector<2x32xf32>
    %726 = vector.extract_strided_slice %708 {offsets = [0, 64], sizes = [2, 32], strides = [1, 1]} : vector<2x96xf32> to vector<2x32xf32>
    %727 = vector.broadcast %525 : vector<1x32xf32> to vector<2x32xf32>
    %728 = arith.addf %726, %727 : vector<2x32xf32>
    %729 = arith.mulf %716, %728 : vector<2x32xf32>
    %730 = arith.addf %725, %729 : vector<2x32xf32>
    %731 = math.tanh %730 : vector<2x32xf32>
    %cst_151 = arith.constant 1.000000e+00 : f32
    %732 = vector.broadcast %cst_151 : f32 to vector<2x32xf32>
    %733 = arith.subf %732, %724 : vector<2x32xf32>
    %734 = arith.mulf %733, %731 : vector<2x32xf32>
    %735 = arith.mulf %724, %706 : vector<2x32xf32>
    %736 = arith.addf %734, %735 : vector<2x32xf32>
    %737 = vector.extract_strided_slice %523 {offsets = [14, 0], sizes = [2, 96], strides = [1, 1]} : vector<16x96xf32> to vector<2x96xf32>
    %cst_152 = arith.constant dense<0.000000e+00> : vector<2x96xf32>
    %738 = tpu.matmul %736, %524, %cst_152 {dimension_numbers = #tpu.dot_dimension_numbers<[1], [0], [0], [1], [0, 0, 1, 1], [], []>} : vector<2x32xf32>, vector<32x96xf32>, vector<2x96xf32> -> vector<2x96xf32>
    %739 = vector.extract_strided_slice %737 {offsets = [0, 0], sizes = [2, 32], strides = [1, 1]} : vector<2x96xf32> to vector<2x32xf32>
    %740 = vector.extract_strided_slice %738 {offsets = [0, 0], sizes = [2, 32], strides = [1, 1]} : vector<2x96xf32> to vector<2x32xf32>
    %741 = arith.addf %739, %740 : vector<2x32xf32>
    %742 = arith.negf %741 : vector<2x32xf32>
    %743 = math.exp %742 : vector<2x32xf32>
    %cst_153 = arith.constant 1.000000e+00 : f32
    %744 = vector.broadcast %cst_153 : f32 to vector<2x32xf32>
    %745 = arith.addf %744, %743 : vector<2x32xf32>
    %746 = arith.divf %744, %745 : vector<2x32xf32>
    %747 = vector.extract_strided_slice %737 {offsets = [0, 32], sizes = [2, 32], strides = [1, 1]} : vector<2x96xf32> to vector<2x32xf32>
    %748 = vector.extract_strided_slice %738 {offsets = [0, 32], sizes = [2, 32], strides = [1, 1]} : vector<2x96xf32> to vector<2x32xf32>
    %749 = arith.addf %747, %748 : vector<2x32xf32>
    %750 = arith.negf %749 : vector<2x32xf32>
    %751 = math.exp %750 : vector<2x32xf32>
    %cst_154 = arith.constant 1.000000e+00 : f32
    %752 = vector.broadcast %cst_154 : f32 to vector<2x32xf32>
    %753 = arith.addf %752, %751 : vector<2x32xf32>
    %754 = arith.divf %752, %753 : vector<2x32xf32>
    %755 = vector.extract_strided_slice %737 {offsets = [0, 64], sizes = [2, 32], strides = [1, 1]} : vector<2x96xf32> to vector<2x32xf32>
    %756 = vector.extract_strided_slice %738 {offsets = [0, 64], sizes = [2, 32], strides = [1, 1]} : vector<2x96xf32> to vector<2x32xf32>
    %757 = vector.broadcast %525 : vector<1x32xf32> to vector<2x32xf32>
    %758 = arith.addf %756, %757 : vector<2x32xf32>
    %759 = arith.mulf %746, %758 : vector<2x32xf32>
    %760 = arith.addf %755, %759 : vector<2x32xf32>
    %761 = math.tanh %760 : vector<2x32xf32>
    %cst_155 = arith.constant 1.000000e+00 : f32
    %762 = vector.broadcast %cst_155 : f32 to vector<2x32xf32>
    %763 = arith.subf %762, %754 : vector<2x32xf32>
    %764 = arith.mulf %763, %761 : vector<2x32xf32>
    %765 = arith.mulf %754, %736 : vector<2x32xf32>
    %766 = arith.addf %764, %765 : vector<2x32xf32>
    %c0_156 = arith.constant 0 : index
    %c0_157 = arith.constant 0 : index
    %767 = vector.load %arg13[%c0_156, %c0_157] : memref<64x96xf32, #tpu.memory_space<vmem>>, vector<64x96xf32>
    %768 = vector.extract_strided_slice %767 {offsets = [0, 0], sizes = [32, 96], strides = [1, 1]} : vector<64x96xf32> to vector<32x96xf32>
    %cst_158 = arith.constant dense<0.000000e+00> : vector<16x96xf32>
    %769 = tpu.matmul %513, %768, %cst_158 {dimension_numbers = #tpu.dot_dimension_numbers<[1], [0], [0], [1], [0, 0, 1, 1], [], []>} : vector<16x32xf32>, vector<32x96xf32>, vector<16x96xf32> -> vector<16x96xf32>
    %770 = vector.extract_strided_slice %767 {offsets = [32, 0], sizes = [32, 96], strides = [1, 1]} : vector<64x96xf32> to vector<32x96xf32>
    %cst_159 = arith.constant dense<0.000000e+00> : vector<16x96xf32>
    %771 = tpu.matmul %514, %770, %cst_159 {dimension_numbers = #tpu.dot_dimension_numbers<[1], [0], [0], [1], [0, 0, 1, 1], [], []>} : vector<16x32xf32>, vector<32x96xf32>, vector<16x96xf32> -> vector<16x96xf32>
    %772 = arith.addf %769, %771 : vector<16x96xf32>
    %c0_160 = arith.constant 0 : index
    %c0_161 = arith.constant 0 : index
    %773 = vector.load %arg15[%c0_160, %c0_161] : memref<1x96xf32, #tpu.memory_space<vmem>>, vector<1x96xf32>
    %774 = vector.broadcast %773 : vector<1x96xf32> to vector<16x96xf32>
    %775 = arith.addf %772, %774 : vector<16x96xf32>
    %c0_162 = arith.constant 0 : index
    %c0_163 = arith.constant 0 : index
    %776 = vector.load %arg14[%c0_162, %c0_163] : memref<32x96xf32, #tpu.memory_space<vmem>>, vector<32x96xf32>
    %c0_164 = arith.constant 0 : index
    %c0_165 = arith.constant 0 : index
    %777 = vector.load %arg16[%c0_164, %c0_165] : memref<1x32xf32, #tpu.memory_space<vmem>>, vector<1x32xf32>
    %cst_166 = arith.constant 0.000000e+00 : f32
    %778 = vector.broadcast %cst_166 : f32 to vector<2x32xf32>
    %779 = vector.extract_strided_slice %775 {offsets = [14, 0], sizes = [2, 96], strides = [1, 1]} : vector<16x96xf32> to vector<2x96xf32>
    %cst_167 = arith.constant dense<0.000000e+00> : vector<2x96xf32>
    %780 = tpu.matmul %778, %776, %cst_167 {dimension_numbers = #tpu.dot_dimension_numbers<[1], [0], [0], [1], [0, 0, 1, 1], [], []>} : vector<2x32xf32>, vector<32x96xf32>, vector<2x96xf32> -> vector<2x96xf32>
    %781 = vector.extract_strided_slice %779 {offsets = [0, 0], sizes = [2, 32], strides = [1, 1]} : vector<2x96xf32> to vector<2x32xf32>
    %782 = vector.extract_strided_slice %780 {offsets = [0, 0], sizes = [2, 32], strides = [1, 1]} : vector<2x96xf32> to vector<2x32xf32>
    %783 = arith.addf %781, %782 : vector<2x32xf32>
    %784 = arith.negf %783 : vector<2x32xf32>
    %785 = math.exp %784 : vector<2x32xf32>
    %cst_168 = arith.constant 1.000000e+00 : f32
    %786 = vector.broadcast %cst_168 : f32 to vector<2x32xf32>
    %787 = arith.addf %786, %785 : vector<2x32xf32>
    %788 = arith.divf %786, %787 : vector<2x32xf32>
    %789 = vector.extract_strided_slice %779 {offsets = [0, 32], sizes = [2, 32], strides = [1, 1]} : vector<2x96xf32> to vector<2x32xf32>
    %790 = vector.extract_strided_slice %780 {offsets = [0, 32], sizes = [2, 32], strides = [1, 1]} : vector<2x96xf32> to vector<2x32xf32>
    %791 = arith.addf %789, %790 : vector<2x32xf32>
    %792 = arith.negf %791 : vector<2x32xf32>
    %793 = math.exp %792 : vector<2x32xf32>
    %cst_169 = arith.constant 1.000000e+00 : f32
    %794 = vector.broadcast %cst_169 : f32 to vector<2x32xf32>
    %795 = arith.addf %794, %793 : vector<2x32xf32>
    %796 = arith.divf %794, %795 : vector<2x32xf32>
    %797 = vector.extract_strided_slice %779 {offsets = [0, 64], sizes = [2, 32], strides = [1, 1]} : vector<2x96xf32> to vector<2x32xf32>
    %798 = vector.extract_strided_slice %780 {offsets = [0, 64], sizes = [2, 32], strides = [1, 1]} : vector<2x96xf32> to vector<2x32xf32>
    %799 = vector.broadcast %777 : vector<1x32xf32> to vector<2x32xf32>
    %800 = arith.addf %798, %799 : vector<2x32xf32>
    %801 = arith.mulf %788, %800 : vector<2x32xf32>
    %802 = arith.addf %797, %801 : vector<2x32xf32>
    %803 = math.tanh %802 : vector<2x32xf32>
    %cst_170 = arith.constant 1.000000e+00 : f32
    %804 = vector.broadcast %cst_170 : f32 to vector<2x32xf32>
    %805 = arith.subf %804, %796 : vector<2x32xf32>
    %806 = arith.mulf %805, %803 : vector<2x32xf32>
    %807 = arith.mulf %796, %778 : vector<2x32xf32>
    %808 = arith.addf %806, %807 : vector<2x32xf32>
    %809 = vector.extract_strided_slice %775 {offsets = [12, 0], sizes = [2, 96], strides = [1, 1]} : vector<16x96xf32> to vector<2x96xf32>
    %cst_171 = arith.constant dense<0.000000e+00> : vector<2x96xf32>
    %810 = tpu.matmul %808, %776, %cst_171 {dimension_numbers = #tpu.dot_dimension_numbers<[1], [0], [0], [1], [0, 0, 1, 1], [], []>} : vector<2x32xf32>, vector<32x96xf32>, vector<2x96xf32> -> vector<2x96xf32>
    %811 = vector.extract_strided_slice %809 {offsets = [0, 0], sizes = [2, 32], strides = [1, 1]} : vector<2x96xf32> to vector<2x32xf32>
    %812 = vector.extract_strided_slice %810 {offsets = [0, 0], sizes = [2, 32], strides = [1, 1]} : vector<2x96xf32> to vector<2x32xf32>
    %813 = arith.addf %811, %812 : vector<2x32xf32>
    %814 = arith.negf %813 : vector<2x32xf32>
    %815 = math.exp %814 : vector<2x32xf32>
    %cst_172 = arith.constant 1.000000e+00 : f32
    %816 = vector.broadcast %cst_172 : f32 to vector<2x32xf32>
    %817 = arith.addf %816, %815 : vector<2x32xf32>
    %818 = arith.divf %816, %817 : vector<2x32xf32>
    %819 = vector.extract_strided_slice %809 {offsets = [0, 32], sizes = [2, 32], strides = [1, 1]} : vector<2x96xf32> to vector<2x32xf32>
    %820 = vector.extract_strided_slice %810 {offsets = [0, 32], sizes = [2, 32], strides = [1, 1]} : vector<2x96xf32> to vector<2x32xf32>
    %821 = arith.addf %819, %820 : vector<2x32xf32>
    %822 = arith.negf %821 : vector<2x32xf32>
    %823 = math.exp %822 : vector<2x32xf32>
    %cst_173 = arith.constant 1.000000e+00 : f32
    %824 = vector.broadcast %cst_173 : f32 to vector<2x32xf32>
    %825 = arith.addf %824, %823 : vector<2x32xf32>
    %826 = arith.divf %824, %825 : vector<2x32xf32>
    %827 = vector.extract_strided_slice %809 {offsets = [0, 64], sizes = [2, 32], strides = [1, 1]} : vector<2x96xf32> to vector<2x32xf32>
    %828 = vector.extract_strided_slice %810 {offsets = [0, 64], sizes = [2, 32], strides = [1, 1]} : vector<2x96xf32> to vector<2x32xf32>
    %829 = vector.broadcast %777 : vector<1x32xf32> to vector<2x32xf32>
    %830 = arith.addf %828, %829 : vector<2x32xf32>
    %831 = arith.mulf %818, %830 : vector<2x32xf32>
    %832 = arith.addf %827, %831 : vector<2x32xf32>
    %833 = math.tanh %832 : vector<2x32xf32>
    %cst_174 = arith.constant 1.000000e+00 : f32
    %834 = vector.broadcast %cst_174 : f32 to vector<2x32xf32>
    %835 = arith.subf %834, %826 : vector<2x32xf32>
    %836 = arith.mulf %835, %833 : vector<2x32xf32>
    %837 = arith.mulf %826, %808 : vector<2x32xf32>
    %838 = arith.addf %836, %837 : vector<2x32xf32>
    %839 = vector.extract_strided_slice %775 {offsets = [10, 0], sizes = [2, 96], strides = [1, 1]} : vector<16x96xf32> to vector<2x96xf32>
    %cst_175 = arith.constant dense<0.000000e+00> : vector<2x96xf32>
    %840 = tpu.matmul %838, %776, %cst_175 {dimension_numbers = #tpu.dot_dimension_numbers<[1], [0], [0], [1], [0, 0, 1, 1], [], []>} : vector<2x32xf32>, vector<32x96xf32>, vector<2x96xf32> -> vector<2x96xf32>
    %841 = vector.extract_strided_slice %839 {offsets = [0, 0], sizes = [2, 32], strides = [1, 1]} : vector<2x96xf32> to vector<2x32xf32>
    %842 = vector.extract_strided_slice %840 {offsets = [0, 0], sizes = [2, 32], strides = [1, 1]} : vector<2x96xf32> to vector<2x32xf32>
    %843 = arith.addf %841, %842 : vector<2x32xf32>
    %844 = arith.negf %843 : vector<2x32xf32>
    %845 = math.exp %844 : vector<2x32xf32>
    %cst_176 = arith.constant 1.000000e+00 : f32
    %846 = vector.broadcast %cst_176 : f32 to vector<2x32xf32>
    %847 = arith.addf %846, %845 : vector<2x32xf32>
    %848 = arith.divf %846, %847 : vector<2x32xf32>
    %849 = vector.extract_strided_slice %839 {offsets = [0, 32], sizes = [2, 32], strides = [1, 1]} : vector<2x96xf32> to vector<2x32xf32>
    %850 = vector.extract_strided_slice %840 {offsets = [0, 32], sizes = [2, 32], strides = [1, 1]} : vector<2x96xf32> to vector<2x32xf32>
    %851 = arith.addf %849, %850 : vector<2x32xf32>
    %852 = arith.negf %851 : vector<2x32xf32>
    %853 = math.exp %852 : vector<2x32xf32>
    %cst_177 = arith.constant 1.000000e+00 : f32
    %854 = vector.broadcast %cst_177 : f32 to vector<2x32xf32>
    %855 = arith.addf %854, %853 : vector<2x32xf32>
    %856 = arith.divf %854, %855 : vector<2x32xf32>
    %857 = vector.extract_strided_slice %839 {offsets = [0, 64], sizes = [2, 32], strides = [1, 1]} : vector<2x96xf32> to vector<2x32xf32>
    %858 = vector.extract_strided_slice %840 {offsets = [0, 64], sizes = [2, 32], strides = [1, 1]} : vector<2x96xf32> to vector<2x32xf32>
    %859 = vector.broadcast %777 : vector<1x32xf32> to vector<2x32xf32>
    %860 = arith.addf %858, %859 : vector<2x32xf32>
    %861 = arith.mulf %848, %860 : vector<2x32xf32>
    %862 = arith.addf %857, %861 : vector<2x32xf32>
    %863 = math.tanh %862 : vector<2x32xf32>
    %cst_178 = arith.constant 1.000000e+00 : f32
    %864 = vector.broadcast %cst_178 : f32 to vector<2x32xf32>
    %865 = arith.subf %864, %856 : vector<2x32xf32>
    %866 = arith.mulf %865, %863 : vector<2x32xf32>
    %867 = arith.mulf %856, %838 : vector<2x32xf32>
    %868 = arith.addf %866, %867 : vector<2x32xf32>
    %869 = vector.extract_strided_slice %775 {offsets = [8, 0], sizes = [2, 96], strides = [1, 1]} : vector<16x96xf32> to vector<2x96xf32>
    %cst_179 = arith.constant dense<0.000000e+00> : vector<2x96xf32>
    %870 = tpu.matmul %868, %776, %cst_179 {dimension_numbers = #tpu.dot_dimension_numbers<[1], [0], [0], [1], [0, 0, 1, 1], [], []>} : vector<2x32xf32>, vector<32x96xf32>, vector<2x96xf32> -> vector<2x96xf32>
    %871 = vector.extract_strided_slice %869 {offsets = [0, 0], sizes = [2, 32], strides = [1, 1]} : vector<2x96xf32> to vector<2x32xf32>
    %872 = vector.extract_strided_slice %870 {offsets = [0, 0], sizes = [2, 32], strides = [1, 1]} : vector<2x96xf32> to vector<2x32xf32>
    %873 = arith.addf %871, %872 : vector<2x32xf32>
    %874 = arith.negf %873 : vector<2x32xf32>
    %875 = math.exp %874 : vector<2x32xf32>
    %cst_180 = arith.constant 1.000000e+00 : f32
    %876 = vector.broadcast %cst_180 : f32 to vector<2x32xf32>
    %877 = arith.addf %876, %875 : vector<2x32xf32>
    %878 = arith.divf %876, %877 : vector<2x32xf32>
    %879 = vector.extract_strided_slice %869 {offsets = [0, 32], sizes = [2, 32], strides = [1, 1]} : vector<2x96xf32> to vector<2x32xf32>
    %880 = vector.extract_strided_slice %870 {offsets = [0, 32], sizes = [2, 32], strides = [1, 1]} : vector<2x96xf32> to vector<2x32xf32>
    %881 = arith.addf %879, %880 : vector<2x32xf32>
    %882 = arith.negf %881 : vector<2x32xf32>
    %883 = math.exp %882 : vector<2x32xf32>
    %cst_181 = arith.constant 1.000000e+00 : f32
    %884 = vector.broadcast %cst_181 : f32 to vector<2x32xf32>
    %885 = arith.addf %884, %883 : vector<2x32xf32>
    %886 = arith.divf %884, %885 : vector<2x32xf32>
    %887 = vector.extract_strided_slice %869 {offsets = [0, 64], sizes = [2, 32], strides = [1, 1]} : vector<2x96xf32> to vector<2x32xf32>
    %888 = vector.extract_strided_slice %870 {offsets = [0, 64], sizes = [2, 32], strides = [1, 1]} : vector<2x96xf32> to vector<2x32xf32>
    %889 = vector.broadcast %777 : vector<1x32xf32> to vector<2x32xf32>
    %890 = arith.addf %888, %889 : vector<2x32xf32>
    %891 = arith.mulf %878, %890 : vector<2x32xf32>
    %892 = arith.addf %887, %891 : vector<2x32xf32>
    %893 = math.tanh %892 : vector<2x32xf32>
    %cst_182 = arith.constant 1.000000e+00 : f32
    %894 = vector.broadcast %cst_182 : f32 to vector<2x32xf32>
    %895 = arith.subf %894, %886 : vector<2x32xf32>
    %896 = arith.mulf %895, %893 : vector<2x32xf32>
    %897 = arith.mulf %886, %868 : vector<2x32xf32>
    %898 = arith.addf %896, %897 : vector<2x32xf32>
    %899 = vector.extract_strided_slice %775 {offsets = [6, 0], sizes = [2, 96], strides = [1, 1]} : vector<16x96xf32> to vector<2x96xf32>
    %cst_183 = arith.constant dense<0.000000e+00> : vector<2x96xf32>
    %900 = tpu.matmul %898, %776, %cst_183 {dimension_numbers = #tpu.dot_dimension_numbers<[1], [0], [0], [1], [0, 0, 1, 1], [], []>} : vector<2x32xf32>, vector<32x96xf32>, vector<2x96xf32> -> vector<2x96xf32>
    %901 = vector.extract_strided_slice %899 {offsets = [0, 0], sizes = [2, 32], strides = [1, 1]} : vector<2x96xf32> to vector<2x32xf32>
    %902 = vector.extract_strided_slice %900 {offsets = [0, 0], sizes = [2, 32], strides = [1, 1]} : vector<2x96xf32> to vector<2x32xf32>
    %903 = arith.addf %901, %902 : vector<2x32xf32>
    %904 = arith.negf %903 : vector<2x32xf32>
    %905 = math.exp %904 : vector<2x32xf32>
    %cst_184 = arith.constant 1.000000e+00 : f32
    %906 = vector.broadcast %cst_184 : f32 to vector<2x32xf32>
    %907 = arith.addf %906, %905 : vector<2x32xf32>
    %908 = arith.divf %906, %907 : vector<2x32xf32>
    %909 = vector.extract_strided_slice %899 {offsets = [0, 32], sizes = [2, 32], strides = [1, 1]} : vector<2x96xf32> to vector<2x32xf32>
    %910 = vector.extract_strided_slice %900 {offsets = [0, 32], sizes = [2, 32], strides = [1, 1]} : vector<2x96xf32> to vector<2x32xf32>
    %911 = arith.addf %909, %910 : vector<2x32xf32>
    %912 = arith.negf %911 : vector<2x32xf32>
    %913 = math.exp %912 : vector<2x32xf32>
    %cst_185 = arith.constant 1.000000e+00 : f32
    %914 = vector.broadcast %cst_185 : f32 to vector<2x32xf32>
    %915 = arith.addf %914, %913 : vector<2x32xf32>
    %916 = arith.divf %914, %915 : vector<2x32xf32>
    %917 = vector.extract_strided_slice %899 {offsets = [0, 64], sizes = [2, 32], strides = [1, 1]} : vector<2x96xf32> to vector<2x32xf32>
    %918 = vector.extract_strided_slice %900 {offsets = [0, 64], sizes = [2, 32], strides = [1, 1]} : vector<2x96xf32> to vector<2x32xf32>
    %919 = vector.broadcast %777 : vector<1x32xf32> to vector<2x32xf32>
    %920 = arith.addf %918, %919 : vector<2x32xf32>
    %921 = arith.mulf %908, %920 : vector<2x32xf32>
    %922 = arith.addf %917, %921 : vector<2x32xf32>
    %923 = math.tanh %922 : vector<2x32xf32>
    %cst_186 = arith.constant 1.000000e+00 : f32
    %924 = vector.broadcast %cst_186 : f32 to vector<2x32xf32>
    %925 = arith.subf %924, %916 : vector<2x32xf32>
    %926 = arith.mulf %925, %923 : vector<2x32xf32>
    %927 = arith.mulf %916, %898 : vector<2x32xf32>
    %928 = arith.addf %926, %927 : vector<2x32xf32>
    %929 = vector.extract_strided_slice %775 {offsets = [4, 0], sizes = [2, 96], strides = [1, 1]} : vector<16x96xf32> to vector<2x96xf32>
    %cst_187 = arith.constant dense<0.000000e+00> : vector<2x96xf32>
    %930 = tpu.matmul %928, %776, %cst_187 {dimension_numbers = #tpu.dot_dimension_numbers<[1], [0], [0], [1], [0, 0, 1, 1], [], []>} : vector<2x32xf32>, vector<32x96xf32>, vector<2x96xf32> -> vector<2x96xf32>
    %931 = vector.extract_strided_slice %929 {offsets = [0, 0], sizes = [2, 32], strides = [1, 1]} : vector<2x96xf32> to vector<2x32xf32>
    %932 = vector.extract_strided_slice %930 {offsets = [0, 0], sizes = [2, 32], strides = [1, 1]} : vector<2x96xf32> to vector<2x32xf32>
    %933 = arith.addf %931, %932 : vector<2x32xf32>
    %934 = arith.negf %933 : vector<2x32xf32>
    %935 = math.exp %934 : vector<2x32xf32>
    %cst_188 = arith.constant 1.000000e+00 : f32
    %936 = vector.broadcast %cst_188 : f32 to vector<2x32xf32>
    %937 = arith.addf %936, %935 : vector<2x32xf32>
    %938 = arith.divf %936, %937 : vector<2x32xf32>
    %939 = vector.extract_strided_slice %929 {offsets = [0, 32], sizes = [2, 32], strides = [1, 1]} : vector<2x96xf32> to vector<2x32xf32>
    %940 = vector.extract_strided_slice %930 {offsets = [0, 32], sizes = [2, 32], strides = [1, 1]} : vector<2x96xf32> to vector<2x32xf32>
    %941 = arith.addf %939, %940 : vector<2x32xf32>
    %942 = arith.negf %941 : vector<2x32xf32>
    %943 = math.exp %942 : vector<2x32xf32>
    %cst_189 = arith.constant 1.000000e+00 : f32
    %944 = vector.broadcast %cst_189 : f32 to vector<2x32xf32>
    %945 = arith.addf %944, %943 : vector<2x32xf32>
    %946 = arith.divf %944, %945 : vector<2x32xf32>
    %947 = vector.extract_strided_slice %929 {offsets = [0, 64], sizes = [2, 32], strides = [1, 1]} : vector<2x96xf32> to vector<2x32xf32>
    %948 = vector.extract_strided_slice %930 {offsets = [0, 64], sizes = [2, 32], strides = [1, 1]} : vector<2x96xf32> to vector<2x32xf32>
    %949 = vector.broadcast %777 : vector<1x32xf32> to vector<2x32xf32>
    %950 = arith.addf %948, %949 : vector<2x32xf32>
    %951 = arith.mulf %938, %950 : vector<2x32xf32>
    %952 = arith.addf %947, %951 : vector<2x32xf32>
    %953 = math.tanh %952 : vector<2x32xf32>
    %cst_190 = arith.constant 1.000000e+00 : f32
    %954 = vector.broadcast %cst_190 : f32 to vector<2x32xf32>
    %955 = arith.subf %954, %946 : vector<2x32xf32>
    %956 = arith.mulf %955, %953 : vector<2x32xf32>
    %957 = arith.mulf %946, %928 : vector<2x32xf32>
    %958 = arith.addf %956, %957 : vector<2x32xf32>
    %959 = vector.extract_strided_slice %775 {offsets = [2, 0], sizes = [2, 96], strides = [1, 1]} : vector<16x96xf32> to vector<2x96xf32>
    %cst_191 = arith.constant dense<0.000000e+00> : vector<2x96xf32>
    %960 = tpu.matmul %958, %776, %cst_191 {dimension_numbers = #tpu.dot_dimension_numbers<[1], [0], [0], [1], [0, 0, 1, 1], [], []>} : vector<2x32xf32>, vector<32x96xf32>, vector<2x96xf32> -> vector<2x96xf32>
    %961 = vector.extract_strided_slice %959 {offsets = [0, 0], sizes = [2, 32], strides = [1, 1]} : vector<2x96xf32> to vector<2x32xf32>
    %962 = vector.extract_strided_slice %960 {offsets = [0, 0], sizes = [2, 32], strides = [1, 1]} : vector<2x96xf32> to vector<2x32xf32>
    %963 = arith.addf %961, %962 : vector<2x32xf32>
    %964 = arith.negf %963 : vector<2x32xf32>
    %965 = math.exp %964 : vector<2x32xf32>
    %cst_192 = arith.constant 1.000000e+00 : f32
    %966 = vector.broadcast %cst_192 : f32 to vector<2x32xf32>
    %967 = arith.addf %966, %965 : vector<2x32xf32>
    %968 = arith.divf %966, %967 : vector<2x32xf32>
    %969 = vector.extract_strided_slice %959 {offsets = [0, 32], sizes = [2, 32], strides = [1, 1]} : vector<2x96xf32> to vector<2x32xf32>
    %970 = vector.extract_strided_slice %960 {offsets = [0, 32], sizes = [2, 32], strides = [1, 1]} : vector<2x96xf32> to vector<2x32xf32>
    %971 = arith.addf %969, %970 : vector<2x32xf32>
    %972 = arith.negf %971 : vector<2x32xf32>
    %973 = math.exp %972 : vector<2x32xf32>
    %cst_193 = arith.constant 1.000000e+00 : f32
    %974 = vector.broadcast %cst_193 : f32 to vector<2x32xf32>
    %975 = arith.addf %974, %973 : vector<2x32xf32>
    %976 = arith.divf %974, %975 : vector<2x32xf32>
    %977 = vector.extract_strided_slice %959 {offsets = [0, 64], sizes = [2, 32], strides = [1, 1]} : vector<2x96xf32> to vector<2x32xf32>
    %978 = vector.extract_strided_slice %960 {offsets = [0, 64], sizes = [2, 32], strides = [1, 1]} : vector<2x96xf32> to vector<2x32xf32>
    %979 = vector.broadcast %777 : vector<1x32xf32> to vector<2x32xf32>
    %980 = arith.addf %978, %979 : vector<2x32xf32>
    %981 = arith.mulf %968, %980 : vector<2x32xf32>
    %982 = arith.addf %977, %981 : vector<2x32xf32>
    %983 = math.tanh %982 : vector<2x32xf32>
    %cst_194 = arith.constant 1.000000e+00 : f32
    %984 = vector.broadcast %cst_194 : f32 to vector<2x32xf32>
    %985 = arith.subf %984, %976 : vector<2x32xf32>
    %986 = arith.mulf %985, %983 : vector<2x32xf32>
    %987 = arith.mulf %976, %958 : vector<2x32xf32>
    %988 = arith.addf %986, %987 : vector<2x32xf32>
    %989 = vector.extract_strided_slice %775 {offsets = [0, 0], sizes = [2, 96], strides = [1, 1]} : vector<16x96xf32> to vector<2x96xf32>
    %cst_195 = arith.constant dense<0.000000e+00> : vector<2x96xf32>
    %990 = tpu.matmul %988, %776, %cst_195 {dimension_numbers = #tpu.dot_dimension_numbers<[1], [0], [0], [1], [0, 0, 1, 1], [], []>} : vector<2x32xf32>, vector<32x96xf32>, vector<2x96xf32> -> vector<2x96xf32>
    %991 = vector.extract_strided_slice %989 {offsets = [0, 0], sizes = [2, 32], strides = [1, 1]} : vector<2x96xf32> to vector<2x32xf32>
    %992 = vector.extract_strided_slice %990 {offsets = [0, 0], sizes = [2, 32], strides = [1, 1]} : vector<2x96xf32> to vector<2x32xf32>
    %993 = arith.addf %991, %992 : vector<2x32xf32>
    %994 = arith.negf %993 : vector<2x32xf32>
    %995 = math.exp %994 : vector<2x32xf32>
    %cst_196 = arith.constant 1.000000e+00 : f32
    %996 = vector.broadcast %cst_196 : f32 to vector<2x32xf32>
    %997 = arith.addf %996, %995 : vector<2x32xf32>
    %998 = arith.divf %996, %997 : vector<2x32xf32>
    %999 = vector.extract_strided_slice %989 {offsets = [0, 32], sizes = [2, 32], strides = [1, 1]} : vector<2x96xf32> to vector<2x32xf32>
    %1000 = vector.extract_strided_slice %990 {offsets = [0, 32], sizes = [2, 32], strides = [1, 1]} : vector<2x96xf32> to vector<2x32xf32>
    %1001 = arith.addf %999, %1000 : vector<2x32xf32>
    %1002 = arith.negf %1001 : vector<2x32xf32>
    %1003 = math.exp %1002 : vector<2x32xf32>
    %cst_197 = arith.constant 1.000000e+00 : f32
    %1004 = vector.broadcast %cst_197 : f32 to vector<2x32xf32>
    %1005 = arith.addf %1004, %1003 : vector<2x32xf32>
    %1006 = arith.divf %1004, %1005 : vector<2x32xf32>
    %1007 = vector.extract_strided_slice %989 {offsets = [0, 64], sizes = [2, 32], strides = [1, 1]} : vector<2x96xf32> to vector<2x32xf32>
    %1008 = vector.extract_strided_slice %990 {offsets = [0, 64], sizes = [2, 32], strides = [1, 1]} : vector<2x96xf32> to vector<2x32xf32>
    %1009 = vector.broadcast %777 : vector<1x32xf32> to vector<2x32xf32>
    %1010 = arith.addf %1008, %1009 : vector<2x32xf32>
    %1011 = arith.mulf %998, %1010 : vector<2x32xf32>
    %1012 = arith.addf %1007, %1011 : vector<2x32xf32>
    %1013 = math.tanh %1012 : vector<2x32xf32>
    %cst_198 = arith.constant 1.000000e+00 : f32
    %1014 = vector.broadcast %cst_198 : f32 to vector<2x32xf32>
    %1015 = arith.subf %1014, %1006 : vector<2x32xf32>
    %1016 = arith.mulf %1015, %1013 : vector<2x32xf32>
    %1017 = arith.mulf %1006, %988 : vector<2x32xf32>
    %1018 = arith.addf %1016, %1017 : vector<2x32xf32>
    %1019 = tpu.concatenate %255, %511, %766, %1018 in 1 : vector<2x32xf32>, vector<2x32xf32>, vector<2x32xf32>, vector<2x32xf32> -> vector<2x128xf32>
    %c0_199 = arith.constant 0 : index
    %c0_200 = arith.constant 0 : index
    %1020 = vector.load %arg17[%c0_199, %c0_200] : memref<128x5xf32, #tpu.memory_space<vmem>>, vector<128x5xf32>
    %cst_201 = arith.constant dense<0.000000e+00> : vector<2x5xf32>
    %1021 = tpu.matmul %1019, %1020, %cst_201 {dimension_numbers = #tpu.dot_dimension_numbers<[1], [0], [0], [1], [0, 0, 1, 1], [], []>} : vector<2x128xf32>, vector<128x5xf32>, vector<2x5xf32> -> vector<2x5xf32>
    %c0_202 = arith.constant 0 : index
    %c0_203 = arith.constant 0 : index
    %1022 = vector.load %arg18[%c0_202, %c0_203] : memref<1x5xf32, #tpu.memory_space<vmem>>, vector<1x5xf32>
    %1023 = vector.broadcast %1022 : vector<1x5xf32> to vector<2x5xf32>
    %1024 = arith.addf %1021, %1023 : vector<2x5xf32>
    %c0_204 = arith.constant 0 : index
    %c0_205 = arith.constant 0 : index
    %1025 = vector.load %arg19[%c0_204, %c0_205] : memref<2x5xf32, #tpu.memory_space<vmem>>, vector<2x5xf32>
    tpu.vector_store %arg19[%c0_204, %c0_205], %1024 {strides = array<i32>} : memref<2x5xf32, #tpu.memory_space<vmem>>, vector<2x5xf32>,
    return
  }
}

</mosaic_0001>

<bundles_post_ra>
// kernel: rnn_forward.1
= control target key start
LH: loop header
LB: loop body
LE: loop exit
PB: predicated region body
PF: predicated region fallthrough
CT: control target
= control target key end

     0   :  { %s6351_s0 = inlined_call_operand.vmem [shape: f32[16,32], index: 0, kind: input, shape index: {}]   ;;  %s6352_s1 = inlined_call_operand.vmem [shape: f32[32,96], index: 1, kind: input, shape index: {}]   ;;  %s6353_s2 = inlined_call_operand.vmem [shape: f32[32,96], index: 2, kind: input, shape index: {}]   ;;  %s6354_s3 = inlined_call_operand.vmem [shape: f32[1,96], index: 3, kind: input, shape index: {}]   ;;  %s6355_s4 = inlined_call_operand.vmem [shape: f32[1,32], index: 4, kind: input, shape index: {}]   ;;  %s6356_s5 = inlined_call_operand.vmem [shape: f32[32,96], index: 5, kind: input, shape index: {}]   ;;  %s6357_s6 = inlined_call_operand.vmem [shape: f32[32,96], index: 6, kind: input, shape index: {}]   ;;  %s6358_s7 = inlined_call_operand.vmem [shape: f32[1,96], index: 7, kind: input, shape index: {}]   ;;  %s6359_s8 = inlined_call_operand.vmem [shape: f32[1,32], index: 8, kind: input, shape index: {}]   ;;  %s6360_s9 = inlined_call_operand.vmem [shape: f32[64,96], index: 9, kind: input, shape index: {}]   ;;  %s6361_s10 = inlined_call_operand.vmem [shape: f32[32,96], index: 10, kind: input, shape index: {}]   ;;  %s6362_s11 = inlined_call_operand.vmem [shape: f32[1,96], index: 11, kind: input, shape index: {}]   ;;  %s6363_s12 = inlined_call_operand.vmem [shape: f32[1,32], index: 12, kind: input, shape index: {}]   ;;  %s6364_s13 = inlined_call_operand.vmem [shape: f32[64,96], index: 13, kind: input, shape index: {}]   ;;  %s6365_s14 = inlined_call_operand.vmem [shape: f32[32,96], index: 14, kind: input, shape index: {}]   ;;  %s6366_s15 = inlined_call_operand.vmem [shape: f32[1,96], index: 15, kind: input, shape index: {}]   ;;  %s6367_s16 = inlined_call_operand.vmem [shape: f32[1,32], index: 16, kind: input, shape index: {}]   ;;  %s6368_s17 = inlined_call_operand.vmem [shape: f32[128,5], index: 17, kind: input, shape index: {}]   ;;  %s6369_s18 = inlined_call_operand.vmem [shape: f32[1,5], index: 18, kind: input, shape index: {}]   ;;  %s6370_s19 = inlined_call_operand.hbm [shape: f32[2,5], index: 19, kind: output, shape index: {}]  }
   0x1   :  { %6374 = sst [smem:[#allocation7_spill]] %s6351_s0 }
   0x2   :  { %6375 = sst [smem:[#allocation8_spill]] %s6352_s1 }
   0x3   :  { %6376 = sst [smem:[#allocation9_spill]] %s6353_s2 }
   0x4   :  { %6377 = sst [smem:[#allocation10_spill]] %s6354_s3 }
   0x5   :  { %s6378_s20 = sld [smem:[#allocation8_spill]]  ;;  %vm76_vm0 = vcmask 261120   ;;  %v5220_v3 = vmov 0.0   ;;  %v4257_v6 = vld [vmem:[%s6355_s4] ss:$0 sm:$0xff] }
   0x6   :  { %s6379_s23 = sld [smem:[#allocation7_spill]]  ;;  %4591 = vmatprep.subr.mxu0 %v5220_v3 }
   0x7   :  { %s6380_s27 = sld [smem:[#allocation9_spill]] }
   0xb   :  { %v68_v0 = vld [vmem:[%s6378_s20 + $0x18] sm:$0xff]  ;;  %v67_v1 = vld [vmem:[%s6378_s20 + $0x10] sm:$0xff]  ;;  %v66_v4 = vld [vmem:[%s6378_s20 + $0x8] sm:$0xff] }
   0xc   :  { %4547 = vmatprep.subr.mxu1 %v68_v0  ;;  %v5335_v2 = vld [vmem:[%s6379_s23] sm:$0xff] }
   0xd   :  { %4548 = vmatpush3.msra.mxu1 %v68_v0  ;;  %4555 = vmatprep.mubr.msk.f32.mxu1 %vm76_vm0, %v5335_v2  ;;  %v5346_v5 = vld [vmem:[%s6380_s27 + $0x18] sm:$0xff] }
   0xe   :  { %4549 = vmatprep.subr.mxu1 %v67_v1  ;;  %4592 = vmatpush3.msra.mxu0 %v5346_v5 }
   0xf   :  { %24 = vsyncpa [#allocation5], 0  ;;  %4550 = vmatpush3.msra.mxu1 %v67_v1  ;;  %v65_v7 = vld [vmem:[%s6378_s20] sm:$0xff]  ;;  %s5221_s21 = smov 64   ;;  %v5359_v8 = vld [vmem:[%s6380_s27 + $0x10] sm:$0xff]  ;;  %4593 = vmatprep.subr.mxu0 %v5220_v3  ;;  %vm5222_vm1 = vmmov 0  }
  0x10   :  { %248 = vrot.lane.b32.xlu0 %v4257_v6, %s5221_s21  ;;  %4551 = vmatprep.subr.mxu1 %v66_v4  ;;  %v5365_v9 = vld [vmem:[%s6379_s23 + $0x8] sm:$0xff]  ;;  %v5385_v11 = vld [vmem:[%s6380_s27] sm:$0xff]  ;;  %s5223_s28 = smov 96   ;;  %vm275_vm2 = vcmask 254976   ;;  %vm500_vm3 = vcmask 259076   ;;  %vm614_vm4 = vcmask 261126  }
  0x11   :  { %4552 = vmatpush3.msra.mxu1 %v66_v4  ;;  %4594 = vmatpush3.msra.mxu0 %v5359_v8  ;;  %v5371_v10 = vld [vmem:[%s6380_s27 + $0x8] sm:$0xff]  ;;  %s6381_s27 = sld [smem:[#allocation10_spill]]  ;;  %vm386_vm5 = vcmask 257026   ;;  %s5224_s22 = smov 32   ;;  %vm4137_vm6 = vcmask 523264   ;;  %vm4139_vm7 = vcmask 785408  }
  0x12   :  { %4553 = vmatprep.subr.mxu1 %v65_v7  ;;  %4595 = vmatprep.subr.mxu0 %v5220_v3  ;;  %s5225_s0 = smov [#allocation4]   ;;  %vm4237_vm8 = vcmask 33792  }
  0x13   :  { %4554 = vmatpush3.msra.mxu1 %v65_v7  ;;  %4596 = vmatpush3.msra.mxu0 %v5371_v10 }
  0x14   :  { %4556 = vmatmul.mubr.msk.f32.vlgmr.msra.gmra.mxu1 %vm76_vm0, %v5365_v9  ;;  %4558 = vmatprep.subr.mxu1 %v5220_v3 }
  0x15   :  { %4559 = vmatpush3.msra.mxu1 %v5346_v5  ;;  %4566 = vmatprep.mubr.msk.f32.mxu1 %vm5222_vm1, %v5220_v3 }
  0x16   :  { %4560 = vmatprep.subr.mxu1 %v5220_v3  ;;  %4597 = vmatprep.subr.mxu0 %v5220_v3 }
  0x17   :  { %4561 = vmatpush3.msra.mxu1 %v5359_v8  ;;  %4598 = vmatpush3.msra.mxu0 %v5385_v11  ;;  %v4253_v12 = vld [vmem:[%s6381_s27] ss:$0 sm:$0xff] }
  0x18   :  { %4562 = vmatprep.subr.mxu1 %v5220_v3  ;;  %4599 = vmatprep.mubr.msk.f32.mxu0 %vm5222_vm1, %v5220_v3 }
  0x19   :  { %4563 = vmatpush3.msra.mxu1 %v5371_v10  ;;  %4613 = vmatprep.subr.mxu0 %v5220_v3 }
  0x1a   :  { %4564 = vmatprep.subr.mxu1 %v5220_v3 }
  0x1b   :  { %4565 = vmatpush3.msra.mxu1 %v5385_v11 }
  0x1c   :  { %4567 = vmatmul.mubr.f32.vlgmr.msra.gmra.mxu1 %v5220_v3  ;;  %4569 = vmatprep.subr.mxu1 %v5220_v3 }
  0x1d   :  { %4570 = vmatpush3.msra.mxu1 %v5346_v5  ;;  %4577 = vmatprep.mubr.msk.f32.mxu1 %vm5222_vm1, %v5220_v3 }
  0x1e   :  { %4571 = vmatprep.subr.mxu1 %v5220_v3 }
  0x1f   :  { %4572 = vmatpush3.msra.mxu1 %v5359_v8 }
  0x20   :  { %4573 = vmatprep.subr.mxu1 %v5220_v3 }
  0x21   :  { %4574 = vmatpush3.msra.mxu1 %v5371_v10 }
  0x22   :  { %4575 = vmatprep.subr.mxu1 %v5220_v3 }
  0x23   :  { %4576 = vmatpush3.msra.mxu1 %v5385_v11 }
  0x24   :  { %4580 = vmatprep.subr.mxu1 %v5220_v3 }
  0x82   :  { %v5414_v16 = vpop.permute.xlu0 %248 }
  0xd4   :  { %v4557_v13 = vpop.f32.mrf.mxu1 }
  0xd5   :  { %v5412_v14 = vadd.f32 %v4557_v13, %v4253_v12 }
  0xd6   :  { %v149_v15 = vpop.f32.mrf.mxu1 }
  0xd7   :  { %v5418_v20 = vadd.f32 %v4253_v12, %v149_v15 }
  0xdc   :  { %v232_v17 = vpop.f32.mrf.mxu1 }
  0xdd   :  { %v251_v18 = vadd.f32 %v5414_v16, %v232_v17  ;;  %v236_v21 = vadd.f32 %v232_v17, %v5418_v20 }
  0xde   :  { %v4568_v19 = vpop.f32.mrf.mxu1 }
  0xdf   :  { %253 = vrot.lane.b32.xlu0 %v251_v18, %s5221_s21  ;;  %v4256_v22 = vmul.f32 -1.442695, %v236_v21 }
  0xe1   :  { %5006 = vpow2.f32 %v4256_v22 }
  0xee   :  { %v5007_v23 = vpop.eup %5006 }
  0xef   :  { %v240_v24 = vadd.f32 1.0, %v5007_v23 }
  0xf1   :  { %5008 = vrcp.f32 %v240_v24 }
  0xfe   :  { %v5009_v25 = vpop.eup %5008 }
  0xff   :  { %v263_v31 = vsub.f32 1.0, %v5009_v25  ;;  %v269_v33 = vmul.f32 0.0, %v5009_v25 }
 0x151   :  { %v254_v26 = vpop.permute.xlu0 %253 }
 0x152   :  { %v256_v27 = vmul.f32 %v5009_v25, %v254_v26 }
 0x154   :  { %258 = vrot.lane.b32.xlu1 %v256_v27, %s5221_s21 }
 0x1c6   :  { %v259_v28 = vpop.permute.xlu1 %258 }
 0x1c7   :  { %v261_v29 = vadd.f32 %v259_v28, %v5418_v20 }
 0x1c9   :  { %5010 = vtanh.f32 %v261_v29 }
 0x1d6   :  { %v5011_v30 = vpop.eup %5010 }
 0x1d7   :  { %265 = vrot.lane.b32.xlu1 %v5011_v30, %s5223_s28 }
 0x249   :  { %v266_v32 = vpop.permute.xlu1 %265 }
 0x24a   :  { %v268_v34 = vmul.f32 %v266_v32, %v263_v31 }
 0x24c   :  { %v270_v35 = vadd.f32 %v269_v33, %v268_v34 }
 0x24e   :  { %272 = vrot.lane.b32.xlu0 %v270_v35, %s5223_s28  ;;  %v378_v52 = vrot.slane %v270_v35, 6 }
 0x2c0   :  { %v273_v36 = vpop.permute.xlu0 %272 }
 0x2c1   :  { %276 = vst.msk [vmem:[#allocation2] sm:$0x3] %vm275_vm2, %v273_v36  ;;  %4578 = vmatmul.mubr.msk.f32.vlgmr.msra.gmra.mxu1 %vm76_vm0, %v273_v36 }
 0x2c2   :  { %4581 = vmatpush3.msra.mxu1 %v5346_v5  ;;  %4588 = vmatprep.mubr.msk.f32.mxu1 %vm5222_vm1, %v5220_v3 }
 0x2c3   :  { %4582 = vmatprep.subr.mxu1 %v5220_v3 }
 0x2c4   :  { %4583 = vmatpush3.msra.mxu1 %v5359_v8 }
 0x2c5   :  { %4584 = vmatprep.subr.mxu1 %v5220_v3 }
 0x2c6   :  { %4585 = vmatpush3.msra.mxu1 %v5371_v10 }
 0x2c7   :  { %4586 = vmatprep.subr.mxu1 %v5220_v3 }
 0x2c8   :  { %4587 = vmatpush3.msra.mxu1 %v5385_v11 }
 0x2c9   :  { %4602 = vmatprep.subr.mxu1 %v5220_v3 }
 0x381   :  { %v345_v37 = vpop.f32.mrf.mxu1 }
 0x382   :  { %v359_v38 = vadd.f32 %v345_v37, %v5414_v16  ;;  %v350_v41 = vrot.slane %v345_v37, 6 }
 0x383   :  { %v4579_v39 = vpop.f32.mrf.mxu1 }
 0x384   :  { %v361_v40 = vrot.slane %v359_v38, 6  ;;  %v352_v42 = vadd.f32 %v350_v41, %v5418_v20 }
 0x386   :  { %362 = vrot.lane.b32.xlu1 %v361_v40, %s5221_s21  ;;  %v4259_v43 = vmul.f32 -1.442695, %v352_v42 }
 0x388   :  { %5012 = vpow2.f32 %v4259_v43 }
 0x395   :  { %v5013_v44 = vpop.eup %5012 }
 0x396   :  { %v356_v45 = vadd.f32 1.0, %v5013_v44 }
 0x398   :  { %5014 = vrcp.f32 %v356_v45 }
 0x3a5   :  { %v5015_v46 = vpop.eup %5014 }
 0x3a6   :  { %v372_v53 = vsub.f32 1.0, %v5015_v46  ;;  %v380_v56 = vmul.f32 %v5015_v46, %v378_v52 }
 0x3f8   :  { %v363_v47 = vpop.permute.xlu1 %362 }
 0x3f9   :  { %v365_v48 = vmul.f32 %v5015_v46, %v363_v47 }
 0x3fb   :  { %367 = vrot.lane.b32.xlu0 %v365_v48, %s5221_s21 }
 0x46d   :  { %v368_v49 = vpop.permute.xlu0 %367 }
 0x46e   :  { %v370_v50 = vadd.f32 %v368_v49, %v5418_v20 }
 0x470   :  { %5016 = vtanh.f32 %v370_v50 }
 0x47d   :  { %v5017_v51 = vpop.eup %5016 }
 0x47e   :  { %374 = vrot.lane.b32.xlu1 %v5017_v51, %s5223_s28 }
 0x4f0   :  { %v375_v54 = vpop.permute.xlu1 %374 }
 0x4f1   :  { %v377_v55 = vmul.f32 %v375_v54, %v372_v53 }
 0x4f3   :  { %v5443_v57 = vadd.f32 %v380_v56, %v377_v55 }
 0x4f5   :  { %v388_v58 = vrot.slane %v5443_v57, 2  ;;  %v492_v22 = vrot.slane %v5443_v57, 6 }
 0x4f7   :  { %389 = vrot.lane.b32.xlu0 %v388_v58, %s5223_s28 }
 0x569   :  { %v390_v59 = vpop.permute.xlu0 %389 }
 0x56a   :  { %4589 = vmatmul.mubr.msk.f32.vlgmr.msra.gmra.mxu1 %vm76_vm0, %v390_v59 }
 0x56b   :  { %4603 = vmatpush3.msra.mxu1 %v5346_v5  ;;  %4610 = vmatprep.mubr.msk.f32.mxu1 %vm5222_vm1, %v5220_v3 }
 0x56c   :  { %4604 = vmatprep.subr.mxu1 %v5220_v3 }
 0x56d   :  { %4605 = vmatpush3.msra.mxu1 %v5359_v8 }
 0x56e   :  { %4606 = vmatprep.subr.mxu1 %v5220_v3 }
 0x56f   :  { %4607 = vmatpush3.msra.mxu1 %v5371_v10 }
 0x570   :  { %4608 = vmatprep.subr.mxu1 %v5220_v3 }
 0x571   :  { %4609 = vmatpush3.msra.mxu1 %v5385_v11 }
 0x572   :  { %4624 = vmatprep.subr.mxu1 %v5220_v3 }
 0x62a   :  { %v459_v60 = vpop.f32.mrf.mxu1 }
 0x62b   :  { %v473_v61 = vadd.f32 %v459_v60, %v5414_v16  ;;  %v464_v0 = vrot.slane %v459_v60, 4 }
 0x62c   :  { %v4590_v62 = vpop.f32.mrf.mxu1 }
 0x62d   :  { %v475_v63 = vrot.slane %v473_v61, 4  ;;  %v466_v1 = vadd.f32 %v464_v0, %v5418_v20 }
 0x62f   :  { %476 = vrot.lane.b32.xlu1 %v475_v63, %s5221_s21  ;;  %v4261_v4 = vmul.f32 -1.442695, %v466_v1 }
 0x631   :  { %5018 = vpow2.f32 %v4261_v4 }
 0x63e   :  { %v5019_v6 = vpop.eup %5018 }
 0x63f   :  { %v470_v7 = vadd.f32 1.0, %v5019_v6 }
 0x641   :  { %5020 = vrcp.f32 %v470_v7 }
 0x64e   :  { %v5021_v12 = vpop.eup %5020 }
 0x64f   :  { %v486_v21 = vsub.f32 1.0, %v5021_v12  ;;  %v494_v24 = vmul.f32 %v5021_v12, %v492_v22 }
 0x6a1   :  { %v477_v13 = vpop.permute.xlu1 %476 }
 0x6a2   :  { %v479_v15 = vmul.f32 %v5021_v12, %v477_v13 }
 0x6a4   :  { %481 = vrot.lane.b32.xlu0 %v479_v15, %s5221_s21 }
 0x716   :  { %v482_v17 = vpop.permute.xlu0 %481 }
 0x717   :  { %v484_v18 = vadd.f32 %v482_v17, %v5418_v20 }
 0x719   :  { %5022 = vtanh.f32 %v484_v18 }
 0x726   :  { %v5023_v19 = vpop.eup %5022 }
 0x727   :  { %488 = vrot.lane.b32.xlu1 %v5023_v19, %s5223_s28 }
 0x799   :  { %v489_v23 = vpop.permute.xlu1 %488 }
 0x79a   :  { %v491_v25 = vmul.f32 %v489_v23, %v486_v21 }
 0x79c   :  { %v5465_v26 = vadd.f32 %v494_v24, %v491_v25 }
 0x79e   :  { %v502_v27 = vrot.slane %v5465_v26, 4  ;;  %v606_v45 = vrot.slane %v5465_v26, 6 }
 0x7a0   :  { %503 = vrot.lane.b32.xlu0 %v502_v27, %s5223_s28 }
 0x812   :  { %v504_v28 = vpop.permute.xlu0 %503 }
 0x813   :  { %4600 = vmatmul.mubr.msk.f32.vlgmr.msra.gmra.mxu0 %vm76_vm0, %v504_v28 }
 0x814   :  { %4614 = vmatpush3.msra.mxu0 %v5346_v5  ;;  %4621 = vmatprep.mubr.msk.f32.mxu0 %vm5222_vm1, %v5220_v3 }
 0x815   :  { %4615 = vmatprep.subr.mxu0 %v5220_v3 }
 0x816   :  { %4616 = vmatpush3.msra.mxu0 %v5359_v8 }
 0x817   :  { %4617 = vmatprep.subr.mxu0 %v5220_v3 }
 0x818   :  { %4618 = vmatpush3.msra.mxu0 %v5371_v10 }
 0x819   :  { %4619 = vmatprep.subr.mxu0 %v5220_v3 }
 0x81a   :  { %4620 = vmatpush3.msra.mxu0 %v5385_v11 }
 0x81b   :  { %4635 = vmatprep.subr.mxu0 %v5220_v3 }
 0x8d3   :  { %v573_v29 = vpop.f32.mrf.mxu0 }
 0x8d4   :  { %v587_v30 = vadd.f32 %v573_v29, %v5414_v16  ;;  %v578_v33 = vrot.slane %v573_v29, 2 }
 0x8d5   :  { %v4601_v31 = vpop.f32.mrf.mxu0 }
 0x8d6   :  { %v589_v32 = vrot.slane %v587_v30, 2  ;;  %v580_v34 = vadd.f32 %v578_v33, %v5418_v20 }
 0x8d8   :  { %590 = vrot.lane.b32.xlu1 %v589_v32, %s5221_s21  ;;  %v4263_v35 = vmul.f32 -1.442695, %v580_v34 }
 0x8da   :  { %5024 = vpow2.f32 %v4263_v35 }
 0x8e7   :  { %v5025_v36 = vpop.eup %5024 }
 0x8e8   :  { %v584_v37 = vadd.f32 1.0, %v5025_v36 }
 0x8ea   :  { %5026 = vrcp.f32 %v584_v37 }
 0x8f7   :  { %v5027_v38 = vpop.eup %5026 }
 0x8f8   :  { %v600_v44 = vsub.f32 1.0, %v5027_v38  ;;  %v608_v47 = vmul.f32 %v5027_v38, %v606_v45 }
 0x94a   :  { %v591_v39 = vpop.permute.xlu1 %590 }
 0x94b   :  { %v593_v40 = vmul.f32 %v5027_v38, %v591_v39 }
 0x94d   :  { %595 = vrot.lane.b32.xlu0 %v593_v40, %s5221_s21 }
 0x9bf   :  { %v596_v41 = vpop.permute.xlu0 %595 }
 0x9c0   :  { %v598_v42 = vadd.f32 %v596_v41, %v5418_v20 }
 0x9c2   :  { %5028 = vtanh.f32 %v598_v42 }
 0x9cf   :  { %v5029_v43 = vpop.eup %5028 }
 0x9d0   :  { %602 = vrot.lane.b32.xlu1 %v5029_v43, %s5223_s28 }
 0xa42   :  { %v603_v46 = vpop.permute.xlu1 %602 }
 0xa43   :  { %v605_v48 = vmul.f32 %v603_v46, %v600_v44 }
 0xa45   :  { %v5487_v49 = vadd.f32 %v608_v47, %v605_v48 }
 0xa47   :  { %v616_v50 = vrot.slane %v5487_v49, 6 }
 0xa49   :  { %617 = vrot.lane.b32.xlu0 %v616_v50, %s5223_s28 }
 0xabb   :  { %v618_v51 = vpop.permute.xlu0 %617 }
 0xabc   :  { %4611 = vmatmul.mubr.msk.f32.vlgmr.msra.gmra.mxu1 %vm76_vm0, %v618_v51  ;;  %v1063_v51 = vld [vmem:[%s6356_s5 + $0x18] sm:$0xff] }
 0xabd   :  { %4625 = vmatpush3.msra.mxu1 %v5346_v5  ;;  %4632 = vmatprep.mubr.msk.f32.mxu1 %vm5222_vm1, %v5220_v3 }
 0xabe   :  { %4626 = vmatprep.subr.mxu1 %v5220_v3 }
 0xabf   :  { %4627 = vmatpush3.msra.mxu1 %v5359_v8 }
 0xac0   :  { %4628 = vmatprep.subr.mxu1 %v5220_v3 }
 0xac1   :  { %4629 = vmatpush3.msra.mxu1 %v5371_v10 }
 0xac2   :  { %4630 = vmatprep.subr.mxu1 %v5220_v3 }
 0xac3   :  { %4631 = vmatpush3.msra.mxu1 %v5385_v11 }
 0xac4   :  { %4646 = vmatprep.subr.mxu1 %v1063_v51 }
 0xb7c   :  { %v687_v20 = vpop.f32.mrf.mxu1 }
 0xb7d   :  { %v698_v52 = vadd.f32 %v687_v20, %v5414_v16  ;;  %v691_v54 = vadd.f32 %v687_v20, %v5412_v14 }
 0xb7e   :  { %v4612_v53 = vpop.f32.mrf.mxu1 }
 0xb7f   :  { %700 = vrot.lane.b32.xlu1 %v698_v52, %s5221_s21  ;;  %v4265_v55 = vmul.f32 -1.442695, %v691_v54  ;;  %v1062_v52 = vld [vmem:[%s6356_s5 + $0x10] sm:$0xff]  ;;  %v1061_v53 = vld [vmem:[%s6356_s5 + $0x8] sm:$0xff] }
 0xb81   :  { %5030 = vpow2.f32 %v4265_v55 }
 0xb8e   :  { %v5031_v56 = vpop.eup %5030 }
 0xb8f   :  { %v695_v58 = vadd.f32 1.0, %v5031_v56  ;;  %v1060_v56 = vld [vmem:[%s6356_s5] sm:$0xff] }
 0xb91   :  { %5032 = vrcp.f32 %v695_v58 }
 0xb9e   :  { %v5033_v59 = vpop.eup %5032 }
 0xb9f   :  { %v710_v1 = vsub.f32 1.0, %v5033_v59  ;;  %v717_v6 = vmul.f32 %v5033_v59, %v616_v50 }
 0xbf1   :  { %v701_v60 = vpop.permute.xlu1 %700 }
 0xbf2   :  { %v703_v61 = vmul.f32 %v5033_v59, %v701_v60 }
 0xbf4   :  { %705 = vrot.lane.b32.xlu0 %v703_v61, %s5221_s21  ;;  %v5555_v61 = vld [vmem:[%s6357_s6 + $0x18] sm:$0xff] }
 0xc66   :  { %v706_v62 = vpop.permute.xlu0 %705 }
 0xc67   :  { %v708_v63 = vadd.f32 %v706_v62, %v5412_v14  ;;  %v4276_v62 = vld [vmem:[%s6359_s8] ss:$0 sm:$0xff] }
 0xc69   :  { %5034 = vtanh.f32 %v708_v63 }
 0xc76   :  { %v5035_v0 = vpop.eup %5034 }
 0xc77   :  { %712 = vrot.lane.b32.xlu1 %v5035_v0, %s5223_s28  ;;  %v5570_v0 = vld [vmem:[%s6357_s6 + $0x10] sm:$0xff] }
 0xce9   :  { %v713_v4 = vpop.permute.xlu1 %712 }
 0xcea   :  { %v715_v7 = vmul.f32 %v713_v4, %v710_v1  ;;  %v5580_v1 = vld [vmem:[%s6357_s6 + $0x8] sm:$0xff]  ;;  %v5588_v4 = vld [vmem:[%s6357_s6] sm:$0xff] }
 0xcec   :  { %v718_v12 = vadd.f32 %v717_v6, %v715_v7 }
 0xcee   :  { %720 = vrot.lane.b32.xlu0 %v718_v12, %s5223_s28  ;;  %v825_v29 = vrot.slane %v718_v12, 6 }
 0xd60   :  { %v721_v13 = vpop.permute.xlu0 %720 }
 0xd61   :  { %723 = vst.msk [vmem:[#allocation2 + $0x8] sm:$0x3] %vm275_vm2, %v721_v13  ;;  %4622 = vmatmul.mubr.msk.f32.vlgmr.msra.gmra.mxu0 %vm76_vm0, %v721_v13 }
 0xd62   :  { %4636 = vmatpush3.msra.mxu0 %v5346_v5  ;;  %4643 = vmatprep.mubr.msk.f32.mxu0 %vm5222_vm1, %v5220_v3 }
 0xd63   :  { %4637 = vmatprep.subr.mxu0 %v5220_v3 }
 0xd64   :  { %4638 = vmatpush3.msra.mxu0 %v5359_v8 }
 0xd65   :  { %4639 = vmatprep.subr.mxu0 %v5220_v3 }
 0xd66   :  { %4640 = vmatpush3.msra.mxu0 %v5371_v10 }
 0xd67   :  { %4641 = vmatprep.subr.mxu0 %v5220_v3 }
 0xd68   :  { %4642 = vmatpush3.msra.mxu0 %v5385_v11 }
 0xd69   :  { %4657 = vmatprep.subr.mxu0 %v5220_v3 }
 0xe21   :  { %v792_v15 = vpop.f32.mrf.mxu0 }
 0xe22   :  { %v806_v5 = vadd.f32 %v792_v15, %v5414_v16  ;;  %v797_v19 = vrot.slane %v792_v15, 6 }
 0xe23   :  { %v4623_v17 = vpop.f32.mrf.mxu0 }
 0xe24   :  { %v808_v18 = vrot.slane %v806_v5, 6  ;;  %v799_v8 = vadd.f32 %v797_v19, %v5412_v14 }
 0xe26   :  { %809 = vrot.lane.b32.xlu1 %v808_v18, %s5221_s21  ;;  %v4267_v21 = vmul.f32 -1.442695, %v799_v8  ;;  %v5624_v8 = vld [vmem:[%s6358_s7] ss:$0 sm:$0xff] }
 0xe28   :  { %5036 = vpow2.f32 %v4267_v21 }
 0xe35   :  { %v5037_v22 = vpop.eup %5036 }
 0xe36   :  { %v803_v10 = vadd.f32 1.0, %v5037_v22 }
 0xe38   :  { %5038 = vrcp.f32 %v803_v10 }
 0xe45   :  { %v5039_v23 = vpop.eup %5038 }
 0xe46   :  { %v819_v30 = vsub.f32 1.0, %v5039_v23  ;;  %v827_v33 = vmul.f32 %v5039_v23, %v825_v29 }
 0xe98   :  { %v810_v24 = vpop.permute.xlu1 %809 }
 0xe99   :  { %v812_v11 = vmul.f32 %v5039_v23, %v810_v24 }
 0xe9b   :  { %814 = vrot.lane.b32.xlu0 %v812_v11, %s5221_s21 }
 0xf0d   :  { %v815_v25 = vpop.permute.xlu0 %814 }
 0xf0e   :  { %v817_v27 = vadd.f32 %v815_v25, %v5412_v14 }
 0xf10   :  { %5040 = vtanh.f32 %v817_v27 }
 0xf1d   :  { %v5041_v28 = vpop.eup %5040 }
 0xf1e   :  { %821 = vrot.lane.b32.xlu1 %v5041_v28, %s5223_s28 }
 0xf90   :  { %v822_v31 = vpop.permute.xlu1 %821 }
 0xf91   :  { %v824_v32 = vmul.f32 %v822_v31, %v819_v30 }
 0xf93   :  { %v5526_v34 = vadd.f32 %v827_v33, %v824_v32 }
 0xf95   :  { %v834_v35 = vrot.slane %v5526_v34, 2  ;;  %v938_v55 = vrot.slane %v5526_v34, 6 }
 0xf97   :  { %835 = vrot.lane.b32.xlu0 %v834_v35, %s5223_s28 }
0x1009   :  { %v836_v36 = vpop.permute.xlu0 %835 }
0x100a   :  { %4633 = vmatmul.mubr.msk.f32.vlgmr.msra.gmra.mxu1 %vm76_vm0, %v836_v36 }
0x100b   :  { %4654 = vmatprep.mubr.msk.f32.mxu1 %vm76_vm0, %v5335_v2  ;;  %4647 = vmatpush3.msra.mxu1 %v1063_v51 }
0x100c   :  { %4648 = vmatprep.subr.mxu1 %v1062_v52 }
0x100d   :  { %4649 = vmatpush3.msra.mxu1 %v1062_v52 }
0x100e   :  { %4650 = vmatprep.subr.mxu1 %v1061_v53 }
0x100f   :  { %4651 = vmatpush3.msra.mxu1 %v1061_v53 }
0x1010   :  { %4652 = vmatprep.subr.mxu1 %v1060_v56 }
0x1011   :  { %4653 = vmatpush3.msra.mxu1 %v1060_v56 }
0x1012   :  { %4655 = vmatmul.mubr.msk.f32.vlgmr.msra.gmra.mxu1 %vm76_vm0, %v5365_v9  ;;  %4668 = vmatprep.subr.mxu1 %v5220_v3 }
0x1013   :  { %4669 = vmatpush3.msra.mxu1 %v5555_v61  ;;  %4676 = vmatprep.mubr.msk.f32.mxu1 %vm5222_vm1, %v5220_v3 }
0x1014   :  { %4670 = vmatprep.subr.mxu1 %v5220_v3 }
0x1015   :  { %4671 = vmatpush3.msra.mxu1 %v5570_v0 }
0x1016   :  { %4672 = vmatprep.subr.mxu1 %v5220_v3 }
0x1017   :  { %4673 = vmatpush3.msra.mxu1 %v5580_v1 }
0x1018   :  { %4674 = vmatprep.subr.mxu1 %v5220_v3 }
0x1019   :  { %4675 = vmatpush3.msra.mxu1 %v5588_v4 }
0x101a   :  { %4690 = vmatprep.subr.mxu1 %v5220_v3 }
0x10ca   :  { %v905_v37 = vpop.f32.mrf.mxu1 }
0x10cb   :  { %v919_v38 = vadd.f32 %v905_v37, %v5414_v16  ;;  %v910_v41 = vrot.slane %v905_v37, 4 }
0x10cc   :  { %v4634_v39 = vpop.f32.mrf.mxu1 }
0x10cd   :  { %v921_v40 = vrot.slane %v919_v38, 4  ;;  %v912_v42 = vadd.f32 %v910_v41, %v5412_v14 }
0x10cf   :  { %922 = vrot.lane.b32.xlu1 %v921_v40, %s5221_s21  ;;  %v4269_v43 = vmul.f32 -1.442695, %v912_v42 }
0x10d1   :  { %5042 = vpow2.f32 %v4269_v43 }
0x10d2   :  { %v4656_v19 = vpop.f32.mrf.mxu1 }
0x10d3   :  { %v5627_v22 = vadd.f32 %v4656_v19, %v5624_v8 }
0x10d4   :  { %v5648_v40 = vpop.f32.mrf.mxu1 }
0x10de   :  { %v5043_v44 = vpop.eup %5042 }
0x10df   :  { %v916_v45 = vadd.f32 1.0, %v5043_v44 }
0x10e1   :  { %5044 = vrcp.f32 %v916_v45 }
0x10ee   :  { %v5045_v46 = vpop.eup %5044 }
0x10ef   :  { %v932_v54 = vsub.f32 1.0, %v5045_v46  ;;  %v940_v59 = vmul.f32 %v5045_v46, %v938_v55 }
0x1141   :  { %v923_v47 = vpop.permute.xlu1 %922 }
0x1142   :  { %v925_v48 = vmul.f32 %v5045_v46, %v923_v47 }
0x1144   :  { %927 = vrot.lane.b32.xlu0 %v925_v48, %s5221_s21 }
0x11b6   :  { %v928_v2 = vpop.permute.xlu0 %927 }
0x11b7   :  { %v930_v50 = vadd.f32 %v928_v2, %v5412_v14 }
0x11b9   :  { %5046 = vtanh.f32 %v930_v50 }
0x11c6   :  { %v5047_v20 = vpop.eup %5046 }
0x11c7   :  { %934 = vrot.lane.b32.xlu1 %v5047_v20, %s5223_s28 }
0x11cb   :  { %1236 = vrot.lane.b32.xlu1 %v4276_v62, %s5221_s21 }
0x1239   :  { %v935_v58 = vpop.permute.xlu1 %934 }
0x123a   :  { %v937_v60 = vmul.f32 %v935_v58, %v932_v54 }
0x123c   :  { %v5563_v63 = vadd.f32 %v940_v59, %v937_v60 }
0x123d   :  { %v5617_v13 = vpop.permute.xlu1 %1236 }
0x123e   :  { %v947_v9 = vrot.slane %v5563_v63, 4 }
0x1240   :  { %948 = vrot.lane.b32.xlu0 %v947_v9, %s5223_s28 }
0x12b2   :  { %v949_v6 = vpop.permute.xlu0 %948 }
0x12b3   :  { %4644 = vmatmul.mubr.msk.f32.vlgmr.msra.gmra.mxu0 %vm76_vm0, %v949_v6 }
0x12b4   :  { %4658 = vmatpush3.msra.mxu0 %v5555_v61  ;;  %4665 = vmatprep.mubr.msk.f32.mxu0 %vm5222_vm1, %v5220_v3 }
0x12b5   :  { %4659 = vmatprep.subr.mxu0 %v5220_v3 }
0x12b6   :  { %4660 = vmatpush3.msra.mxu0 %v5570_v0 }
0x12b7   :  { %4661 = vmatprep.subr.mxu0 %v5220_v3 }
0x12b8   :  { %4662 = vmatpush3.msra.mxu0 %v5580_v1 }
0x12b9   :  { %4663 = vmatprep.subr.mxu0 %v5220_v3 }
0x12ba   :  { %4664 = vmatpush3.msra.mxu0 %v5588_v4 }
0x12bb   :  { %4666 = vmatmul.mubr.f32.vlgmr.msra.gmra.mxu0 %v5220_v3  ;;  %4679 = vmatprep.subr.mxu0 %v5220_v3 }
0x12bc   :  { %4680 = vmatpush3.msra.mxu0 %v5555_v61  ;;  %4687 = vmatprep.mubr.msk.f32.mxu0 %vm5222_vm1, %v5220_v3 }
0x12bd   :  { %4681 = vmatprep.subr.mxu0 %v5220_v3 }
0x12be   :  { %4682 = vmatpush3.msra.mxu0 %v5570_v0 }
0x12bf   :  { %4683 = vmatprep.subr.mxu0 %v5220_v3 }
0x12c0   :  { %4684 = vmatpush3.msra.mxu0 %v5580_v1 }
0x12c1   :  { %4685 = vmatprep.subr.mxu0 %v5220_v3 }
0x12c2   :  { %4686 = vmatpush3.msra.mxu0 %v5588_v4 }
0x12c3   :  { %4701 = vmatprep.subr.mxu0 %v5220_v3 }
0x1373   :  { %v5615_v7 = vpop.f32.mrf.mxu0 }
0x1375   :  { %v4645_v12 = vpop.f32.mrf.mxu0 }
0x137b   :  { %v1217_v15 = vpop.f32.mrf.mxu0 }
0x137c   :  { %v1239_v5 = vadd.f32 %v5617_v13, %v1217_v15  ;;  %v1222_v21 = vrot.slane %v1217_v15, 2 }
0x137d   :  { %v4667_v17 = vpop.f32.mrf.mxu0 }
0x137e   :  { %v1241_v18 = vrot.slane %v1239_v5, 2  ;;  %v1224_v10 = vadd.f32 %v1222_v21, %v5627_v22 }
0x1380   :  { %1242 = vrot.lane.b32.xlu0 %v1241_v18, %s5221_s21  ;;  %v4275_v23 = vmul.f32 -1.442695, %v1224_v10 }
0x1382   :  { %5048 = vpow2.f32 %v4275_v23 }
0x138f   :  { %v5049_v24 = vpop.eup %5048 }
0x1390   :  { %v1228_v11 = vadd.f32 1.0, %v5049_v24 }
0x1392   :  { %5050 = vrcp.f32 %v1228_v11 }
0x139f   :  { %v5051_v25 = vpop.eup %5050 }
0x13a0   :  { %v1252_v32 = vsub.f32 1.0, %v5051_v25  ;;  %v1258_v35 = vmul.f32 0.0, %v5051_v25 }
0x13f2   :  { %v1243_v27 = vpop.permute.xlu0 %1242 }
0x13f3   :  { %v1245_v28 = vmul.f32 %v5051_v25, %v1243_v27 }
0x13f5   :  { %1247 = vrot.lane.b32.xlu1 %v1245_v28, %s5221_s21 }
0x1467   :  { %v1248_v29 = vpop.permute.xlu1 %1247 }
0x1468   :  { %v1250_v30 = vadd.f32 %v1248_v29, %v5627_v22 }
0x146a   :  { %5052 = vtanh.f32 %v1250_v30 }
0x1477   :  { %v5053_v31 = vpop.eup %5052 }
0x1478   :  { %1254 = vrot.lane.b32.xlu0 %v5053_v31, %s5223_s28 }
0x14ea   :  { %v1255_v33 = vpop.permute.xlu0 %1254 }
0x14eb   :  { %v1257_v36 = vmul.f32 %v1255_v33, %v1252_v32 }
0x14ed   :  { %v5633_v37 = vadd.f32 %v1258_v35, %v1257_v36 }
0x14ef   :  { %v1265_v38 = vrot.slane %v5633_v37, 6  ;;  %v1369_v56 = vrot.slane %v5633_v37, 2 }
0x14f1   :  { %1266 = vrot.lane.b32.xlu1 %v1265_v38, %s5223_s28 }
0x1563   :  { %v1267_v39 = vpop.permute.xlu1 %1266 }
0x1564   :  { %4677 = vmatmul.mubr.msk.f32.vlgmr.msra.gmra.mxu1 %vm76_vm0, %v1267_v39 }
0x1565   :  { %4691 = vmatpush3.msra.mxu1 %v5555_v61  ;;  %4698 = vmatprep.mubr.msk.f32.mxu1 %vm5222_vm1, %v5220_v3 }
0x1566   :  { %4692 = vmatprep.subr.mxu1 %v5220_v3 }
0x1567   :  { %4693 = vmatpush3.msra.mxu1 %v5570_v0 }
0x1568   :  { %4694 = vmatprep.subr.mxu1 %v5220_v3 }
0x1569   :  { %4695 = vmatpush3.msra.mxu1 %v5580_v1 }
0x156a   :  { %4696 = vmatprep.subr.mxu1 %v5220_v3 }
0x156b   :  { %4697 = vmatpush3.msra.mxu1 %v5588_v4 }
0x156c   :  { %4712 = vmatprep.subr.mxu1 %v5220_v3 }
0x1624   :  { %v1336_v41 = vpop.f32.mrf.mxu1 }
0x1625   :  { %v1350_v42 = vadd.f32 %v1336_v41, %v5617_v13  ;;  %v1341_v45 = vrot.slane %v1336_v41, 4 }
0x1626   :  { %v4678_v43 = vpop.f32.mrf.mxu1 }
0x1627   :  { %v1352_v44 = vrot.slane %v1350_v42, 4  ;;  %v1343_v46 = vadd.f32 %v1341_v45, %v5627_v22 }
0x1629   :  { %1353 = vrot.lane.b32.xlu0 %v1352_v44, %s5221_s21  ;;  %v4278_v47 = vmul.f32 -1.442695, %v1343_v46 }
0x162b   :  { %5054 = vpow2.f32 %v4278_v47 }
0x1638   :  { %v5055_v48 = vpop.eup %5054 }
0x1639   :  { %v1347_v2 = vadd.f32 1.0, %v5055_v48 }
0x163b   :  { %5056 = vrcp.f32 %v1347_v2 }
0x1648   :  { %v5057_v50 = vpop.eup %5056 }
0x1649   :  { %v1363_v55 = vsub.f32 1.0, %v5057_v50  ;;  %v1371_v59 = vmul.f32 %v5057_v50, %v1369_v56 }
0x169b   :  { %v1354_v51 = vpop.permute.xlu0 %1353 }
0x169c   :  { %v1356_v20 = vmul.f32 %v5057_v50, %v1354_v51 }
0x169e   :  { %1358 = vrot.lane.b32.xlu1 %v1356_v20, %s5221_s21 }
0x1710   :  { %v1359_v52 = vpop.permute.xlu1 %1358 }
0x1711   :  { %v1361_v53 = vadd.f32 %v1359_v52, %v5627_v22 }
0x1713   :  { %5058 = vtanh.f32 %v1361_v53 }
0x1720   :  { %v5059_v54 = vpop.eup %5058 }
0x1721   :  { %1365 = vrot.lane.b32.xlu0 %v5059_v54, %s5223_s28 }
0x1793   :  { %v1366_v58 = vpop.permute.xlu0 %1365 }
0x1794   :  { %v1368_v60 = vmul.f32 %v1366_v58, %v1363_v55 }
0x1796   :  { %v5657_v62 = vadd.f32 %v1371_v59, %v1368_v60 }
0x1798   :  { %v1378_v9 = vrot.slane %v5657_v62, 4  ;;  %v1482_v31 = vrot.slane %v5657_v62, 2 }
0x179a   :  { %1379 = vrot.lane.b32.xlu1 %v1378_v9, %s5223_s28 }
0x180c   :  { %v1380_v6 = vpop.permute.xlu1 %1379 }
0x180d   :  { %4688 = vmatmul.mubr.msk.f32.vlgmr.msra.gmra.mxu0 %vm76_vm0, %v1380_v6 }
0x180e   :  { %4702 = vmatpush3.msra.mxu0 %v5555_v61  ;;  %4709 = vmatprep.mubr.msk.f32.mxu0 %vm5222_vm1, %v5220_v3 }
0x180f   :  { %4703 = vmatprep.subr.mxu0 %v5220_v3 }
0x1810   :  { %4704 = vmatpush3.msra.mxu0 %v5570_v0 }
0x1811   :  { %4705 = vmatprep.subr.mxu0 %v5220_v3 }
0x1812   :  { %4706 = vmatpush3.msra.mxu0 %v5580_v1 }
0x1813   :  { %4707 = vmatprep.subr.mxu0 %v5220_v3 }
0x1814   :  { %4708 = vmatpush3.msra.mxu0 %v5588_v4 }
0x1815   :  { %4723 = vmatprep.subr.mxu0 %v5220_v3 }
0x18cd   :  { %v1449_v12 = vpop.f32.mrf.mxu0 }
0x18ce   :  { %v1463_v15 = vadd.f32 %v1449_v12, %v5617_v13  ;;  %v1454_v18 = vrot.slane %v1449_v12, 6 }
0x18cf   :  { %v4689_v5 = vpop.f32.mrf.mxu0 }
0x18d0   :  { %v1465_v17 = vrot.slane %v1463_v15, 6  ;;  %v1456_v19 = vadd.f32 %v1454_v18, %v5627_v22  ;;  %v5716_v15 = vadd.f32 %v5624_v8, %v5648_v40 }
0x18d2   :  { %1466 = vrot.lane.b32.xlu0 %v1465_v17, %s5221_s21  ;;  %v4280_v21 = vmul.f32 -1.442695, %v1456_v19 }
0x18d4   :  { %5060 = vpow2.f32 %v4280_v21 }
0x18e1   :  { %v5061_v10 = vpop.eup %5060 }
0x18e2   :  { %v1460_v23 = vadd.f32 1.0, %v5061_v10 }
0x18e4   :  { %5062 = vrcp.f32 %v1460_v23 }
0x18f1   :  { %v5063_v24 = vpop.eup %5062 }
0x18f2   :  { %v1476_v30 = vsub.f32 1.0, %v5063_v24  ;;  %v1484_v33 = vmul.f32 %v5063_v24, %v1482_v31 }
0x1944   :  { %v1467_v11 = vpop.permute.xlu0 %1466 }
0x1945   :  { %v1469_v25 = vmul.f32 %v5063_v24, %v1467_v11 }
0x1947   :  { %1471 = vrot.lane.b32.xlu1 %v1469_v25, %s5221_s21 }
0x19b9   :  { %v1472_v27 = vpop.permute.xlu1 %1471 }
0x19ba   :  { %v1474_v28 = vadd.f32 %v1472_v27, %v5627_v22 }
0x19bc   :  { %5064 = vtanh.f32 %v1474_v28 }
0x19c9   :  { %v5065_v29 = vpop.eup %5064 }
0x19ca   :  { %1478 = vrot.lane.b32.xlu0 %v5065_v29, %s5223_s28 }
0x1a3c   :  { %v1479_v32 = vpop.permute.xlu0 %1478 }
0x1a3d   :  { %v1481_v35 = vmul.f32 %v1479_v32, %v1476_v30 }
0x1a3f   :  { %v5679_v36 = vadd.f32 %v1484_v33, %v1481_v35 }
0x1a41   :  { %v1491_v38 = vrot.slane %v5679_v36, 2 }
0x1a43   :  { %1492 = vrot.lane.b32.xlu1 %v1491_v38, %s5223_s28 }
0x1ab5   :  { %v1493_v39 = vpop.permute.xlu1 %1492 }
0x1ab6   :  { %4699 = vmatmul.mubr.msk.f32.vlgmr.msra.gmra.mxu1 %vm76_vm0, %v1493_v39 }
0x1ab7   :  { %4713 = vmatpush3.msra.mxu1 %v5555_v61  ;;  %4720 = vmatprep.mubr.msk.f32.mxu1 %vm5222_vm1, %v5220_v3 }
0x1ab8   :  { %4714 = vmatprep.subr.mxu1 %v5220_v3 }
0x1ab9   :  { %4715 = vmatpush3.msra.mxu1 %v5570_v0 }
0x1aba   :  { %4716 = vmatprep.subr.mxu1 %v5220_v3 }
0x1abb   :  { %4717 = vmatpush3.msra.mxu1 %v5580_v1 }
0x1abc   :  { %4718 = vmatprep.subr.mxu1 %v5220_v3 }
0x1abd   :  { %4719 = vmatpush3.msra.mxu1 %v5588_v4 }
0x1abe   :  { %4734 = vmatprep.subr.mxu1 %v5220_v3 }
0x1b76   :  { %v1562_v41 = vpop.f32.mrf.mxu1 }
0x1b77   :  { %v1573_v42 = vadd.f32 %v1562_v41, %v5617_v13  ;;  %v1566_v44 = vadd.f32 %v1562_v41, %v5627_v22 }
0x1b78   :  { %v4700_v43 = vpop.f32.mrf.mxu1 }
0x1b79   :  { %1575 = vrot.lane.b32.xlu0 %v1573_v42, %s5221_s21  ;;  %v4282_v45 = vmul.f32 -1.442695, %v1566_v44 }
0x1b7b   :  { %5066 = vpow2.f32 %v4282_v45 }
0x1b88   :  { %v5067_v46 = vpop.eup %5066 }
0x1b89   :  { %v1570_v47 = vadd.f32 1.0, %v5067_v46 }
0x1b8b   :  { %5068 = vrcp.f32 %v1570_v47 }
0x1b98   :  { %v5069_v48 = vpop.eup %5068 }
0x1b99   :  { %v1585_v53 = vsub.f32 1.0, %v5069_v48  ;;  %v1592_v55 = vmul.f32 %v5069_v48, %v1491_v38 }
0x1beb   :  { %v1576_v2 = vpop.permute.xlu0 %1575 }
0x1bec   :  { %v1578_v50 = vmul.f32 %v5069_v48, %v1576_v2 }
0x1bee   :  { %1580 = vrot.lane.b32.xlu1 %v1578_v50, %s5221_s21 }
0x1c60   :  { %v1581_v51 = vpop.permute.xlu1 %1580 }
0x1c61   :  { %v1583_v20 = vadd.f32 %v1581_v51, %v5627_v22 }
0x1c63   :  { %5070 = vtanh.f32 %v1583_v20 }
0x1c70   :  { %v5071_v52 = vpop.eup %5070 }
0x1c71   :  { %1587 = vrot.lane.b32.xlu0 %v5071_v52, %s5223_s28 }
0x1ce3   :  { %v1588_v54 = vpop.permute.xlu0 %1587 }
0x1ce4   :  { %v1590_v56 = vmul.f32 %v1588_v54, %v1585_v53 }
0x1ce6   :  { %v1593_v58 = vadd.f32 %v1592_v55, %v1590_v56 }
0x1ce8   :  { %1595 = vrot.lane.b32.xlu1 %v1593_v58, %s5223_s28  ;;  %v1700_v8 = vrot.slane %v1593_v58, 2 }
0x1d5a   :  { %v1596_v59 = vpop.permute.xlu1 %1595 }
0x1d5b   :  { %1598 = vst.msk [vmem:[#allocation3 + $0x8] sm:$0x3] %vm275_vm2, %v1596_v59  ;;  %4710 = vmatmul.mubr.msk.f32.vlgmr.msra.gmra.mxu0 %vm76_vm0, %v1596_v59 }
0x1d5c   :  { %4724 = vmatpush3.msra.mxu0 %v5555_v61  ;;  %4731 = vmatprep.mubr.msk.f32.mxu0 %vm5222_vm1, %v5220_v3 }
0x1d5d   :  { %4725 = vmatprep.subr.mxu0 %v5220_v3 }
0x1d5e   :  { %4726 = vmatpush3.msra.mxu0 %v5570_v0 }
0x1d5f   :  { %4727 = vmatprep.subr.mxu0 %v5220_v3 }
0x1d60   :  { %4728 = vmatpush3.msra.mxu0 %v5580_v1 }
0x1d61   :  { %4729 = vmatprep.subr.mxu0 %v5220_v3 }
0x1d62   :  { %4730 = vmatpush3.msra.mxu0 %v5588_v4 }
0x1e1b   :  { %v1667_v22 = vpop.f32.mrf.mxu0 }
0x1e1c   :  { %v1681_v60 = vadd.f32 %v1667_v22, %v5617_v13  ;;  %v1672_v12 = vrot.slane %v1667_v22, 2 }
0x1e1d   :  { %v4711_v9 = vpop.f32.mrf.mxu0 }
0x1e1e   :  { %v1683_v6 = vrot.slane %v1681_v60, 2  ;;  %v1674_v5 = vadd.f32 %v1672_v12, %v5716_v15 }
0x1e20   :  { %1684 = vrot.lane.b32.xlu0 %v1683_v6, %s5221_s21  ;;  %v4284_v17 = vmul.f32 -1.442695, %v1674_v5 }
0x1e22   :  { %5072 = vpow2.f32 %v4284_v17 }
0x1e2f   :  { %v5073_v18 = vpop.eup %5072 }
0x1e30   :  { %v1678_v19 = vadd.f32 1.0, %v5073_v18 }
0x1e32   :  { %5074 = vrcp.f32 %v1678_v19 }
0x1e3f   :  { %v5075_v21 = vpop.eup %5074 }
0x1e40   :  { %v1694_v40 = vsub.f32 1.0, %v5075_v21  ;;  %v1702_v28 = vmul.f32 %v5075_v21, %v1700_v8 }
0x1e92   :  { %v1685_v10 = vpop.permute.xlu0 %1684 }
0x1e93   :  { %v1687_v23 = vmul.f32 %v5075_v21, %v1685_v10 }
0x1e95   :  { %1689 = vrot.lane.b32.xlu1 %v1687_v23, %s5221_s21 }
0x1f07   :  { %v1690_v24 = vpop.permute.xlu1 %1689 }
0x1f08   :  { %v1692_v11 = vadd.f32 %v1690_v24, %v5716_v15 }
0x1f0a   :  { %5076 = vtanh.f32 %v1692_v11 }
0x1f17   :  { %v5077_v25 = vpop.eup %5076 }
0x1f18   :  { %1696 = vrot.lane.b32.xlu0 %v5077_v25, %s5223_s28 }
0x1f8a   :  { %v1697_v27 = vpop.permute.xlu0 %1696 }
0x1f8b   :  { %v1699_v29 = vmul.f32 %v1697_v27, %v1694_v40  ;;  %v1032_v27 = vadd.f32 %v5615_v7, %v5414_v16 }
0x1f8d   :  { %v5722_v30 = vadd.f32 %v1702_v28, %v1699_v29  ;;  %v1034_v29 = vrot.slane %v1032_v27, 2  ;;  %v5862_v27 = vld [vmem:[%s6361_s10 + $0x10] sm:$0xff] }
0x1f8f   :  { %v1709_v31 = vrot.slane %v5722_v30, 6  ;;  %v1813_v2 = vrot.slane %v5722_v30, 2 }
0x1f91   :  { %1710 = vrot.lane.b32.xlu1 %v1709_v31, %s5223_s28  ;;  %v1023_v31 = vrot.slane %v5615_v7, 2 }
0x2003   :  { %v1711_v32 = vpop.permute.xlu1 %1710 }
0x2004   :  { %4721 = vmatmul.mubr.msk.f32.vlgmr.msra.gmra.mxu1 %vm76_vm0, %v1711_v32  ;;  %v1025_v32 = vadd.f32 %v1023_v31, %v5412_v14  ;;  %v5879_v31 = vld [vmem:[%s6361_s10] sm:$0xff] }
0x2005   :  { %4735 = vmatpush3.msra.mxu1 %v5555_v61  ;;  %4742 = vmatprep.mubr.msk.f32.mxu1 %vm5222_vm1, %v5220_v3 }
0x2006   :  { %4736 = vmatprep.subr.mxu1 %v5220_v3 }
0x2007   :  { %4737 = vmatpush3.msra.mxu1 %v5570_v0 }
0x2008   :  { %4738 = vmatprep.subr.mxu1 %v5220_v3 }
0x2009   :  { %4739 = vmatpush3.msra.mxu1 %v5580_v1 }
0x200a   :  { %4740 = vmatprep.subr.mxu1 %v5220_v3 }
0x200b   :  { %4741 = vmatpush3.msra.mxu1 %v5588_v4 }
0x20c4   :  { %v1780_v33 = vpop.f32.mrf.mxu1 }
0x20c5   :  { %v1794_v35 = vadd.f32 %v1780_v33, %v5617_v13  ;;  %v1785_v39 = vrot.slane %v1780_v33, 4  ;;  %v4271_v33 = vmul.f32 -1.442695, %v1025_v32 }
0x20c6   :  { %v4722_v38 = vpop.f32.mrf.mxu1 }
0x20c7   :  { %v1796_v61 = vrot.slane %v1794_v35, 4  ;;  %v1787_v41 = vadd.f32 %v1785_v39, %v5716_v15 }
0x20c9   :  { %1797 = vrot.lane.b32.xlu0 %v1796_v61, %s5221_s21  ;;  %v4286_v42 = vmul.f32 -1.442695, %v1787_v41 }
0x20cb   :  { %5078 = vpow2.f32 %v4286_v42 }
0x20d8   :  { %v5079_v0 = vpop.eup %5078 }
0x20d9   :  { %v1791_v43 = vadd.f32 1.0, %v5079_v0 }
0x20db   :  { %5080 = vrcp.f32 %v1791_v43 }
0x20e8   :  { %v5081_v1 = vpop.eup %5080 }
0x20e9   :  { %v1807_v48 = vsub.f32 1.0, %v5081_v1  ;;  %v1815_v51 = vmul.f32 %v5081_v1, %v1813_v2 }
0x213b   :  { %v1798_v44 = vpop.permute.xlu0 %1797 }
0x213c   :  { %v1800_v45 = vmul.f32 %v5081_v1, %v1798_v44 }
0x213e   :  { %1802 = vrot.lane.b32.xlu1 %v1800_v45, %s5221_s21 }
0x21b0   :  { %v1803_v4 = vpop.permute.xlu1 %1802 }
0x21b1   :  { %v1805_v46 = vadd.f32 %v1803_v4, %v5716_v15 }
0x21b3   :  { %5082 = vtanh.f32 %v1805_v46 }
0x21c0   :  { %v5083_v47 = vpop.eup %5082 }
0x21c1   :  { %1809 = vrot.lane.b32.xlu0 %v5083_v47, %s5223_s28 }
0x2233   :  { %v1810_v50 = vpop.permute.xlu0 %1809 }
0x2234   :  { %v1812_v20 = vmul.f32 %v1810_v50, %v1807_v48 }
0x2236   :  { %v1816_v52 = vadd.f32 %v1815_v51, %v1812_v20 }
0x2238   :  { %v1822_v53 = vrot.slane %v1816_v52, 4  ;;  %v1926_v24 = vrot.slane %v1816_v52, 2 }
0x223a   :  { %1823 = vrot.lane.b32.xlu1 %v1822_v53, %s5223_s28 }
0x22ac   :  { %v1824_v54 = vpop.permute.xlu1 %1823 }
0x22ad   :  { %4732 = vmatmul.mubr.msk.f32.vlgmr.msra.gmra.mxu0 %vm76_vm0, %v1824_v54 }
0x236d   :  { %v1893_v55 = vpop.f32.mrf.mxu0 }
0x236e   :  { %v1907_v56 = vadd.f32 %v1893_v55, %v5617_v13  ;;  %v1898_v22 = vrot.slane %v1893_v55, 6 }
0x236f   :  { %v4733_v58 = vpop.f32.mrf.mxu0 }
0x2370   :  { %v1909_v59 = vrot.slane %v1907_v56, 6  ;;  %v1900_v60 = vadd.f32 %v1898_v22, %v5716_v15  ;;  %v2051_v58 = vld [vmem:[%s6360_s9 + $0x20] sm:$0xff] }
0x2372   :  { %1910 = vrot.lane.b32.xlu0 %v1909_v59, %s5221_s21  ;;  %v4288_v9 = vmul.f32 -1.442695, %v1900_v60 }
0x2374   :  { %5084 = vpow2.f32 %v4288_v9 }
0x2381   :  { %v5085_v6 = vpop.eup %5084 }
0x2382   :  { %v1904_v12 = vadd.f32 1.0, %v5085_v6 }
0x2384   :  { %5086 = vrcp.f32 %v1904_v12  ;;  %v2050_v12 = vld [vmem:[%s6360_s9 + $0x18] sm:$0xff] }
0x2385   :  { %4756 = vmatprep.subr.mxu1 %v2050_v12 }
0x2391   :  { %v5087_v5 = vpop.eup %5086 }
0x2392   :  { %v1920_v23 = vsub.f32 1.0, %v5087_v5  ;;  %v1928_v25 = vmul.f32 %v5087_v5, %v1926_v24 }
0x23e4   :  { %v1911_v17 = vpop.permute.xlu0 %1910 }
0x23e5   :  { %v1913_v18 = vmul.f32 %v5087_v5, %v1911_v17  ;;  %v2049_v5 = vld [vmem:[%s6360_s9 + $0x10] sm:$0xff] }
0x23e7   :  { %1915 = vrot.lane.b32.xlu1 %v1913_v18, %s5221_s21  ;;  %v2048_v18 = vld [vmem:[%s6360_s9 + $0x8] sm:$0xff] }
0x2459   :  { %v1916_v19 = vpop.permute.xlu1 %1915 }
0x245a   :  { %v1918_v21 = vadd.f32 %v1916_v19, %v5716_v15  ;;  %v2047_v19 = vld [vmem:[%s6360_s9] sm:$0xff] }
0x245c   :  { %5088 = vtanh.f32 %v1918_v21 }
0x245d   :  { %5090 = vpow2.f32 %v4271_v33 }
0x2469   :  { %v5089_v10 = vpop.eup %5088 }
0x246a   :  { %1922 = vrot.lane.b32.xlu0 %v5089_v10, %s5223_s28  ;;  %v5091_v35 = vpop.eup %5090 }
0x246b   :  { %v1029_v38 = vadd.f32 1.0, %v5091_v35 }
0x246d   :  { %5092 = vrcp.f32 %v1029_v38 }
0x247a   :  { %v5093_v16 = vpop.eup %5092 }
0x247b   :  { %v1045_v53 = vsub.f32 1.0, %v5093_v16 }
0x24dc   :  { %v1923_v11 = vpop.permute.xlu0 %1922 }
0x24dd   :  { %v1925_v8 = vmul.f32 %v1923_v11, %v1920_v23 }
0x24df   :  { %v5751_v40 = vadd.f32 %v1928_v25, %v1925_v8  ;;  %v5852_v25 = vld [vmem:[%s6361_s10 + $0x18] sm:$0xff] }
0x24e1   :  { %v1935_v28 = vrot.slane %v5751_v40, 2 }
0x24e3   :  { %1936 = vrot.lane.b32.xlu1 %v1935_v28, %s5223_s28 }
0x24e7   :  { %1035 = vrot.lane.b32.xlu1 %v1034_v29, %s5221_s21 }
0x2555   :  { %v1937_v61 = vpop.permute.xlu1 %1936 }
0x2556   :  { %4743 = vmatmul.mubr.msk.f32.vlgmr.msra.gmra.mxu1 %vm76_vm0, %v1937_v61 }
0x2557   :  { %4757 = vmatpush3.msra.mxu1 %v2050_v12 }
0x2558   :  { %4758 = vmatprep.subr.mxu1 %v2049_v5 }
0x2559   :  { %v1036_v39 = vpop.permute.xlu1 %1035  ;;  %4759 = vmatpush3.msra.mxu1 %v2049_v5 }
0x255a   :  { %v1038_v41 = vmul.f32 %v5093_v16, %v1036_v39  ;;  %4760 = vmatprep.subr.mxu1 %v2048_v18 }
0x255b   :  { %4761 = vmatpush3.msra.mxu1 %v2048_v18 }
0x255c   :  { %1040 = vrot.lane.b32.xlu1 %v1038_v41, %s5221_s21  ;;  %4762 = vmatprep.subr.mxu1 %v2047_v19 }
0x255d   :  { %4763 = vmatpush3.msra.mxu1 %v2047_v19 }
0x255e   :  { %4778 = vmatprep.subr.mxu1 %v5220_v3 }
0x25ce   :  { %v1041_v42 = vpop.permute.xlu1 %1040 }
0x25cf   :  { %v1043_v0 = vadd.f32 %v1041_v42, %v5412_v14 }
0x25d1   :  { %5094 = vtanh.f32 %v1043_v0  ;;  %v4295_v0 = vld [vmem:[%s6362_s11] ss:$0 sm:$0xff] }
0x25de   :  { %v5095_v7 = vpop.eup %5094 }
0x25df   :  { %1047 = vrot.lane.b32.xlu1 %v5095_v7, %s5223_s28 }
0x25e3   :  { %1818 = vrot.lane.b32.xlu1 %v1816_v52, %s5223_s28 }
0x2616   :  { %v2006_v43 = vpop.f32.mrf.mxu1 }
0x2617   :  { %v2017_v1 = vadd.f32 %v2006_v43, %v5617_v13  ;;  %v2010_v46 = vadd.f32 %v2006_v43, %v5716_v15 }
0x2618   :  { %v4744_v44 = vpop.f32.mrf.mxu1 }
0x2619   :  { %2019 = vrot.lane.b32.xlu0 %v2017_v1, %s5221_s21  ;;  %v4290_v14 = vmul.f32 -1.442695, %v2010_v46 }
0x261b   :  { %5096 = vpow2.f32 %v4290_v14 }
0x2628   :  { %v5097_v47 = vpop.eup %5096 }
0x2629   :  { %v2014_v48 = vadd.f32 1.0, %v5097_v47 }
0x262b   :  { %5098 = vrcp.f32 %v2014_v48 }
0x2638   :  { %v5099_v2 = vpop.eup %5098 }
0x2639   :  { %v2036_v59 = vmul.f32 %v5099_v2, %v1935_v28  ;;  %v5871_v28 = vld [vmem:[%s6361_s10 + $0x8] sm:$0xff] }
0x2651   :  { %v1048_v45 = vpop.permute.xlu1 %1047 }
0x2652   :  { %v1050_v54 = vmul.f32 %v1048_v45, %v1045_v53 }
0x2655   :  { %v1819_v4 = vpop.permute.xlu1 %1818 }
0x2656   :  { %1821 = vst.msk [vmem:[#allocation3] sm:$0x30] %vm500_vm3, %v1819_v4 }
0x268b   :  { %v2020_v50 = vpop.permute.xlu0 %2019 }
0x268c   :  { %v2022_v51 = vmul.f32 %v5099_v2, %v2020_v50 }
0x268e   :  { %2024 = vrot.lane.b32.xlu0 %v2022_v51, %s5221_s21 }
0x2700   :  { %v2025_v13 = vpop.permute.xlu0 %2024 }
0x2701   :  { %v2027_v20 = vadd.f32 %v2025_v13, %v5716_v15  ;;  %v1051_v15 = vrot.slane %v5563_v63, 6 }
0x2703   :  { %5100 = vtanh.f32 %v2027_v20  ;;  %v1053_v55 = vmul.f32 %v5093_v16, %v1051_v15 }
0x2710   :  { %v5101_v52 = vpop.eup %5100 }
0x2711   :  { %2031 = vrot.lane.b32.xlu0 %v5101_v52, %s5223_s28 }
0x2715   :  { %1705 = vrot.lane.b32.xlu0 %v5722_v30, %s5223_s28  ;;  %v1054_v30 = vadd.f32 %v1053_v55, %v1050_v54 }
0x2719   :  { %1931 = vrot.lane.b32.xlu0 %v5751_v40, %s5223_s28 }
0x271d   :  { %1261 = vrot.lane.b32.xlu0 %v5633_v37, %s5223_s28  ;;  %v2054_v37 = vld [vmem:[%s6360_s9 + $0x38] sm:$0xff] }
0x271e   :  { %4745 = vmatprep.subr.mxu0 %v2054_v37 }
0x271f   :  { %4746 = vmatpush3.msra.mxu0 %v2054_v37 }
0x2721   :  { %1487 = vrot.lane.b32.xlu0 %v5679_v36, %s5223_s28  ;;  %v2052_v36 = vld [vmem:[%s6360_s9 + $0x28] sm:$0xff] }
0x2725   :  { %497 = vrot.lane.b32.xlu0 %v5465_v26, %s5223_s28  ;;  %v2053_v26 = vld [vmem:[%s6360_s9 + $0x30] sm:$0xff]  ;;  %s4245_s9 = sshll.u32 %s5225_s0, 4  ;;  %s4246_s9 = int_to_ptr.vmem [resolvable:$true] %s4245_s9 }
0x2726   :  { %4747 = vmatprep.subr.mxu0 %v2053_v26  ;;  %p5203_p1 = scmp.lt.s32.totalorder %s4246_s9, %s4246_s9 }
0x2727   :  { %4748 = vmatpush3.msra.mxu0 %v2053_v26 }
0x2728   :  { %4749 = vmatprep.subr.mxu0 %v2052_v36 }
0x2729   :  { %830 = vrot.lane.b32.xlu0 %v5526_v34, %s5223_s28  ;;  %v2029_v34 = vsub.f32 1.0, %v5099_v2  ;;  %4750 = vmatpush3.msra.mxu0 %v2052_v36 }
0x272a   :  { %4751 = vmatprep.subr.mxu0 %v2051_v58 }
0x272b   :  { %4752 = vmatpush3.msra.mxu0 %v2051_v58 }
0x272c   :  { %4767 = vmatprep.subr.mxu0 %v5220_v3 }
0x272d   :  { %1056 = vrot.lane.b32.xlu0 %v1054_v30, %s5223_s28 }
0x2783   :  { %v2032_v56 = vpop.permute.xlu0 %2031 }
0x2784   :  { %v2034_v22 = vmul.f32 %v2032_v56, %v2029_v34 }
0x2786   :  { %v5802_v60 = vadd.f32 %v2036_v59, %v2034_v22 }
0x2787   :  { %v1706_v9 = vpop.permute.xlu0 %1705 }
0x2788   :  { %1708 = vst.msk [vmem:[#allocation3] sm:$0xc0] %vm614_vm4, %v1706_v9  ;;  %2039 = vrot.lane.b32.xlu1 %v5802_v60, %s5223_s28 }
0x278b   :  { %v1932_v6 = vpop.permute.xlu0 %1931 }
0x278c   :  { %1934 = vst.msk [vmem:[#allocation3] sm:$0xc] %vm386_vm5, %v1932_v6  ;;  %1374 = vrot.lane.b32.xlu1 %v5657_v62, %s5223_s28 }
0x278f   :  { %v1262_v17 = vpop.permute.xlu0 %1261 }
0x2790   :  { %1264 = vst.msk [vmem:[#allocation3 + $0x8] sm:$0xc0] %vm614_vm4, %v1262_v17  ;;  %383 = vrot.lane.b32.xlu1 %v5443_v57, %s5223_s28  ;;  %v4297_v57 = vld [vmem:[%s6363_s12] ss:$0 sm:$0xff] }
0x2793   :  { %v1488_v62 = vpop.permute.xlu0 %1487 }
0x2794   :  { %1490 = vst.msk [vmem:[#allocation3 + $0x8] sm:$0xc] %vm386_vm5, %v1488_v62  ;;  %611 = vrot.lane.b32.xlu1 %v5487_v49, %s5223_s28 }
0x2797   :  { %v498_v21 = vpop.permute.xlu0 %497 }
0x2798   :  { %501 = vst.msk [vmem:[#allocation2] sm:$0x30] %vm500_vm3, %v498_v21  ;;  %943 = vrot.lane.b32.xlu1 %v5563_v63, %s5223_s28 }
0x279b   :  { %v831_v10 = vpop.permute.xlu0 %830 }
0x279c   :  { %833 = vst.msk [vmem:[#allocation2 + $0x8] sm:$0xc] %vm386_vm5, %v831_v10  ;;  %2313 = vrot.lane.b32.xlu1 %v4297_v57, %s5221_s21 }
0x279f   :  { %v5838_v23 = vpop.permute.xlu0 %1056 }
0x27a0   :  { %1059 = vst.msk [vmem:[#allocation2 + $0x8] sm:$0xc0] %vm614_vm4, %v5838_v23 }
0x27fa   :  { %v2040_v49 = vpop.permute.xlu1 %2039 }
0x27fb   :  { %2042 = vst.msk [vmem:[#allocation3] sm:$0x3] %vm275_vm2, %v2040_v49 }
0x27fe   :  { %v1375_v24 = vpop.permute.xlu1 %1374 }
0x27ff   :  { %1377 = vst.msk [vmem:[#allocation3 + $0x8] sm:$0x30] %vm500_vm3, %v1375_v24 }
0x2802   :  { %v384_v63 = vpop.permute.xlu1 %383  ;;  %v5844_v11 = vld [vmem:[#allocation3] sm:$0xff] }
0x2803   :  { %387 = vst.msk [vmem:[#allocation2] sm:$0xc] %vm386_vm5, %v384_v63  ;;  %4753 = vmatprep.mubr.msk.f32.mxu0 %vm76_vm0, %v5844_v11 }
0x2806   :  { %v612_v8 = vpop.permute.xlu1 %611  ;;  %v5854_v40 = vld [vmem:[#allocation3 + $0x8] sm:$0xff] }
0x2807   :  { %615 = vst.msk [vmem:[#allocation2] sm:$0xc0] %vm614_vm4, %v612_v8  ;;  %4754 = vmatmul.mubr.msk.f32.vlgmr.msra.gmra.mxu0 %vm76_vm0, %v5854_v40 }
0x2808   :  { %4768 = vmatpush3.msra.mxu0 %v5852_v25  ;;  %4775 = vmatprep.mubr.msk.f32.mxu0 %vm5222_vm1, %v5220_v3 }
0x2809   :  { %4769 = vmatprep.subr.mxu0 %v5220_v3 }
0x280a   :  { %4770 = vmatpush3.msra.mxu0 %v5862_v27  ;;  %v944_v29 = vpop.permute.xlu1 %943 }
0x280b   :  { %946 = vst.msk [vmem:[#allocation2 + $0x8] sm:$0x30] %vm500_vm3, %v944_v29  ;;  %4771 = vmatprep.subr.mxu0 %v5220_v3 }
0x280c   :  { %4772 = vmatpush3.msra.mxu0 %v5871_v28 }
0x280d   :  { %4773 = vmatprep.subr.mxu0 %v5220_v3 }
0x280e   :  { %4774 = vmatpush3.msra.mxu0 %v5879_v31  ;;  %v5884_v32 = vld [vmem:[#allocation2] sm:$0xff]  ;;  %v5914_v61 = vpop.permute.xlu1 %2313 }
0x280f   :  { %4776 = vmatmul.mubr.f32.vlgmr.msra.gmra.mxu0 %v5220_v3  ;;  %4764 = vmatprep.mubr.msk.f32.mxu1 %vm76_vm0, %v5884_v32 }
0x2810   :  { %4789 = vmatprep.subr.mxu0 %v5220_v3  ;;  %4797 = vmatprep.mubr.msk.f32.mxu0 %vm5222_vm1, %v5220_v3 }
0x2811   :  { %4790 = vmatpush3.msra.mxu0 %v5852_v25 }
0x2812   :  { %v5893_v33 = vld [vmem:[#allocation2 + $0x8] sm:$0xff]  ;;  %4791 = vmatprep.subr.mxu0 %v5220_v3 }
0x2813   :  { %4765 = vmatmul.mubr.msk.f32.vlgmr.msra.gmra.mxu1 %vm76_vm0, %v5893_v33  ;;  %4792 = vmatpush3.msra.mxu0 %v5862_v27 }
0x2814   :  { %4779 = vmatpush3.msra.mxu1 %v5852_v25  ;;  %4786 = vmatprep.mubr.msk.f32.mxu1 %vm5222_vm1, %v5220_v3 }
0x2815   :  { %4780 = vmatprep.subr.mxu1 %v5220_v3  ;;  %4793 = vmatprep.subr.mxu0 %v5220_v3 }
0x2816   :  { %4781 = vmatpush3.msra.mxu1 %v5862_v27  ;;  %4794 = vmatpush3.msra.mxu0 %v5871_v28 }
0x2817   :  { %4782 = vmatprep.subr.mxu1 %v5220_v3  ;;  %4795 = vmatprep.subr.mxu0 %v5220_v3 }
0x2818   :  { %4783 = vmatpush3.msra.mxu1 %v5871_v28  ;;  %4796 = vmatpush3.msra.mxu0 %v5879_v31 }
0x2819   :  { %4784 = vmatprep.subr.mxu1 %v5220_v3  ;;  %4811 = vmatprep.subr.mxu0 %v5220_v3 }
0x281a   :  { %4785 = vmatpush3.msra.mxu1 %v5879_v31 }
0x281b   :  { %4800 = vmatprep.subr.mxu1 %v5220_v3 }
0x28c7   :  { %v4755_v35 = vpop.f32.mrf.mxu0 }
0x28c9   :  { %v2127_v38 = vpop.f32.mrf.mxu0 }
0x28cf   :  { %v2297_v16 = vpop.f32.mrf.mxu0 }
0x28d0   :  { %v2316_v39 = vadd.f32 %v5914_v61, %v2297_v16 }
0x28d1   :  { %v4777_v41 = vpop.f32.mrf.mxu0 }
0x28d2   :  { %2318 = vrot.lane.b32.xlu0 %v2316_v39, %s5221_s21 }
0x28d3   :  { %v4766_v42 = vpop.f32.mrf.mxu1 }
0x28d4   :  { %v2214_v7 = vadd.f32 %v4766_v42, %v4755_v35 }
0x28d5   :  { %v2208_v1 = vpop.f32.mrf.mxu1 }
0x28d6   :  { %v5921_v43 = vadd.f32 %v4295_v0, %v2214_v7  ;;  %v2209_v44 = vadd.f32 %v2208_v1, %v2127_v38 }
0x28d8   :  { %v5923_v45 = vadd.f32 %v4295_v0, %v2209_v44 }
0x28da   :  { %v2301_v4 = vadd.f32 %v2297_v16, %v5923_v45 }
0x28dc   :  { %v4296_v46 = vmul.f32 -1.442695, %v2301_v4 }
0x28de   :  { %5102 = vpow2.f32 %v4296_v46 }
0x28eb   :  { %v5103_v14 = vpop.eup %5102 }
0x28ec   :  { %v2305_v47 = vadd.f32 1.0, %v5103_v14 }
0x28ee   :  { %5104 = vrcp.f32 %v2305_v47 }
0x28fb   :  { %v5105_v48 = vpop.eup %5104 }
0x28fc   :  { %v2328_v52 = vsub.f32 1.0, %v5105_v48  ;;  %v2334_v15 = vmul.f32 0.0, %v5105_v48 }
0x2944   :  { %v2319_v2 = vpop.permute.xlu0 %2318 }
0x2945   :  { %v2321_v50 = vmul.f32 %v5105_v48, %v2319_v2 }
0x2947   :  { %2323 = vrot.lane.b32.xlu1 %v2321_v50, %s5221_s21 }
0x29b9   :  { %v2324_v51 = vpop.permute.xlu1 %2323 }
0x29ba   :  { %v2326_v13 = vadd.f32 %v2324_v51, %v5923_v45 }
0x29bc   :  { %5106 = vtanh.f32 %v2326_v13 }
0x29c9   :  { %v5107_v20 = vpop.eup %5106 }
0x29ca   :  { %2330 = vrot.lane.b32.xlu0 %v5107_v20, %s5223_s28 }
0x2a3c   :  { %v2331_v53 = vpop.permute.xlu0 %2330 }
0x2a3d   :  { %v2333_v54 = vmul.f32 %v2331_v53, %v2328_v52 }
0x2a3f   :  { %v2335_v55 = vadd.f32 %v2334_v15, %v2333_v54 }
0x2a41   :  { %2337 = vrot.lane.b32.xlu1 %v2335_v55, %s5223_s28  ;;  %v2440_v62 = vrot.slane %v2335_v55, 6 }
0x2ab3   :  { %v2338_v30 = vpop.permute.xlu1 %2337 }
0x2ab4   :  { %4787 = vmatmul.mubr.msk.f32.vlgmr.msra.gmra.mxu1 %vm76_vm0, %v2338_v30 }
0x2ab5   :  { %4801 = vmatpush3.msra.mxu1 %v5852_v25  ;;  %4808 = vmatprep.mubr.msk.f32.mxu1 %vm5222_vm1, %v5220_v3 }
0x2ab6   :  { %4802 = vmatprep.subr.mxu1 %v5220_v3 }
0x2ab7   :  { %4803 = vmatpush3.msra.mxu1 %v5862_v27 }
0x2ab8   :  { %4804 = vmatprep.subr.mxu1 %v5220_v3 }
0x2ab9   :  { %4805 = vmatpush3.msra.mxu1 %v5871_v28 }
0x2aba   :  { %4806 = vmatprep.subr.mxu1 %v5220_v3 }
0x2abb   :  { %4807 = vmatpush3.msra.mxu1 %v5879_v31 }
0x2abc   :  { %4822 = vmatprep.subr.mxu1 %v5220_v3 }
0x2b74   :  { %v2407_v37 = vpop.f32.mrf.mxu1 }
0x2b75   :  { %v2421_v26 = vadd.f32 %v2407_v37, %v5914_v61  ;;  %v2412_v56 = vrot.slane %v2407_v37, 6 }
0x2b76   :  { %v4788_v36 = vpop.f32.mrf.mxu1 }
0x2b77   :  { %v2423_v34 = vrot.slane %v2421_v26, 6  ;;  %v2414_v58 = vadd.f32 %v2412_v56, %v5923_v45 }
0x2b79   :  { %2424 = vrot.lane.b32.xlu0 %v2423_v34, %s5221_s21  ;;  %v4299_v59 = vmul.f32 -1.442695, %v2414_v58 }
0x2b7b   :  { %5108 = vpow2.f32 %v4299_v59 }
0x2b88   :  { %v5109_v22 = vpop.eup %5108 }
0x2b89   :  { %v2418_v9 = vadd.f32 1.0, %v5109_v22 }
0x2b8b   :  { %5110 = vrcp.f32 %v2418_v9 }
0x2b98   :  { %v5111_v6 = vpop.eup %5110 }
0x2b99   :  { %v2434_v21 = vsub.f32 1.0, %v5111_v6  ;;  %v2442_v49 = vmul.f32 %v5111_v6, %v2440_v62 }
0x2beb   :  { %v2425_v12 = vpop.permute.xlu0 %2424 }
0x2bec   :  { %v2427_v5 = vmul.f32 %v5111_v6, %v2425_v12 }
0x2bee   :  { %2429 = vrot.lane.b32.xlu1 %v2427_v5, %s5221_s21 }
0x2c60   :  { %v2430_v17 = vpop.permute.xlu1 %2429 }
0x2c61   :  { %v2432_v18 = vadd.f32 %v2430_v17, %v5923_v45 }
0x2c63   :  { %5112 = vtanh.f32 %v2432_v18 }
0x2c70   :  { %v5113_v19 = vpop.eup %5112 }
0x2c71   :  { %2436 = vrot.lane.b32.xlu0 %v5113_v19, %s5223_s28 }
0x2ce3   :  { %v2437_v57 = vpop.permute.xlu0 %2436 }
0x2ce4   :  { %v2439_v10 = vmul.f32 %v2437_v57, %v2434_v21 }
0x2ce6   :  { %v2443_v24 = vadd.f32 %v2442_v49, %v2439_v10 }
0x2ce8   :  { %v2445_v63 = vrot.slane %v2443_v24, 2  ;;  %v2549_v48 = vrot.slane %v2443_v24, 6 }
0x2cea   :  { %2446 = vrot.lane.b32.xlu1 %v2445_v63, %s5223_s28 }
0x2d5c   :  { %v2447_v8 = vpop.permute.xlu1 %2446 }
0x2d5d   :  { %4798 = vmatmul.mubr.msk.f32.vlgmr.msra.gmra.mxu0 %vm76_vm0, %v2447_v8 }
0x2d5e   :  { %4812 = vmatpush3.msra.mxu0 %v5852_v25  ;;  %4819 = vmatprep.mubr.msk.f32.mxu0 %vm5222_vm1, %v5220_v3 }
0x2d5f   :  { %4813 = vmatprep.subr.mxu0 %v5220_v3 }
0x2d60   :  { %4814 = vmatpush3.msra.mxu0 %v5862_v27 }
0x2d61   :  { %4815 = vmatprep.subr.mxu0 %v5220_v3 }
0x2d62   :  { %4816 = vmatpush3.msra.mxu0 %v5871_v28 }
0x2d63   :  { %4817 = vmatprep.subr.mxu0 %v5220_v3 }
0x2d64   :  { %4818 = vmatpush3.msra.mxu0 %v5879_v31 }
0x2d65   :  { %4833 = vmatprep.subr.mxu0 %v5220_v3 }
0x2e1d   :  { %v2516_v29 = vpop.f32.mrf.mxu0 }
0x2e1e   :  { %v2530_v35 = vadd.f32 %v2516_v29, %v5914_v61  ;;  %v2521_v39 = vrot.slane %v2516_v29, 4 }
0x2e1f   :  { %v4799_v38 = vpop.f32.mrf.mxu0 }
0x2e20   :  { %v2532_v16 = vrot.slane %v2530_v35, 4  ;;  %v2523_v41 = vadd.f32 %v2521_v39, %v5923_v45 }
0x2e22   :  { %2533 = vrot.lane.b32.xlu0 %v2532_v16, %s5221_s21  ;;  %v4301_v42 = vmul.f32 -1.442695, %v2523_v41 }
0x2e24   :  { %5114 = vpow2.f32 %v4301_v42 }
0x2e31   :  { %v5115_v0 = vpop.eup %5114 }
0x2e32   :  { %v2527_v7 = vadd.f32 1.0, %v5115_v0 }
0x2e34   :  { %5116 = vrcp.f32 %v2527_v7 }
0x2e41   :  { %v5117_v1 = vpop.eup %5116 }
0x2e42   :  { %v2543_v2 = vsub.f32 1.0, %v5117_v1  ;;  %v2551_v51 = vmul.f32 %v5117_v1, %v2549_v48 }
0x2e94   :  { %v2534_v44 = vpop.permute.xlu0 %2533 }
0x2e95   :  { %v2536_v4 = vmul.f32 %v5117_v1, %v2534_v44 }
0x2e97   :  { %2538 = vrot.lane.b32.xlu1 %v2536_v4, %s5221_s21 }
0x2f09   :  { %v2539_v46 = vpop.permute.xlu1 %2538 }
0x2f0a   :  { %v2541_v14 = vadd.f32 %v2539_v46, %v5923_v45 }
0x2f0c   :  { %5118 = vtanh.f32 %v2541_v14 }
0x2f19   :  { %v5119_v47 = vpop.eup %5118 }
0x2f1a   :  { %2545 = vrot.lane.b32.xlu0 %v5119_v47, %s5223_s28 }
0x2f8c   :  { %v2546_v50 = vpop.permute.xlu0 %2545 }
0x2f8d   :  { %v2548_v13 = vmul.f32 %v2546_v50, %v2543_v2 }
0x2f8f   :  { %v2552_v20 = vadd.f32 %v2551_v51, %v2548_v13 }
0x2f91   :  { %v2554_v52 = vrot.slane %v2552_v20, 4  ;;  %v2658_v5 = vrot.slane %v2552_v20, 6 }
0x2f93   :  { %2555 = vrot.lane.b32.xlu1 %v2554_v52, %s5223_s28 }
0x3005   :  { %v2556_v53 = vpop.permute.xlu1 %2555 }
0x3006   :  { %4809 = vmatmul.mubr.msk.f32.vlgmr.msra.gmra.mxu1 %vm76_vm0, %v2556_v53 }
0x3007   :  { %4823 = vmatpush3.msra.mxu1 %v5852_v25  ;;  %4830 = vmatprep.mubr.msk.f32.mxu1 %vm5222_vm1, %v5220_v3 }
0x3008   :  { %4824 = vmatprep.subr.mxu1 %v5220_v3 }
0x3009   :  { %4825 = vmatpush3.msra.mxu1 %v5862_v27 }
0x300a   :  { %4826 = vmatprep.subr.mxu1 %v5220_v3 }
0x300b   :  { %4827 = vmatpush3.msra.mxu1 %v5871_v28 }
0x300c   :  { %4828 = vmatprep.subr.mxu1 %v5220_v3 }
0x300d   :  { %4829 = vmatpush3.msra.mxu1 %v5879_v31 }
0x300e   :  { %4844 = vmatprep.subr.mxu1 %v5220_v3 }
0x30c6   :  { %v2625_v15 = vpop.f32.mrf.mxu1 }
0x30c7   :  { %v2639_v54 = vadd.f32 %v2625_v15, %v5914_v61  ;;  %v2630_v37 = vrot.slane %v2625_v15, 2 }
0x30c8   :  { %v4810_v55 = vpop.f32.mrf.mxu1 }
0x30c9   :  { %v2641_v30 = vrot.slane %v2639_v54, 2  ;;  %v2632_v26 = vadd.f32 %v2630_v37, %v5923_v45  ;;  %v3099_v54 = vld [vmem:[%s6364_s13 + $0x38] sm:$0xff] }
0x30cb   :  { %2642 = vrot.lane.b32.xlu0 %v2641_v30, %s5221_s21  ;;  %v4303_v36 = vmul.f32 -1.442695, %v2632_v26 }
0x30cd   :  { %5120 = vpow2.f32 %v4303_v36 }
0x30da   :  { %v5121_v34 = vpop.eup %5120 }
0x30db   :  { %v2636_v56 = vadd.f32 1.0, %v5121_v34 }
0x30dd   :  { %5122 = vrcp.f32 %v2636_v56 }
0x30ea   :  { %v5123_v58 = vpop.eup %5122 }
0x30eb   :  { %v2652_v17 = vsub.f32 1.0, %v5123_v58  ;;  %v2660_v19 = vmul.f32 %v5123_v58, %v2658_v5 }
0x313d   :  { %v2643_v59 = vpop.permute.xlu0 %2642 }
0x313e   :  { %v2645_v22 = vmul.f32 %v5123_v58, %v2643_v59 }
0x3140   :  { %2647 = vrot.lane.b32.xlu1 %v2645_v22, %s5221_s21  ;;  %v3098_v22 = vld [vmem:[%s6364_s13 + $0x30] sm:$0xff] }
0x31b2   :  { %v2648_v9 = vpop.permute.xlu1 %2647 }
0x31b3   :  { %v2650_v6 = vadd.f32 %v2648_v9, %v5923_v45  ;;  %v3097_v9 = vld [vmem:[%s6364_s13 + $0x28] sm:$0xff] }
0x31b5   :  { %5124 = vtanh.f32 %v2650_v6  ;;  %v3096_v6 = vld [vmem:[%s6364_s13 + $0x20] sm:$0xff] }
0x31c2   :  { %v5125_v12 = vpop.eup %5124 }
0x31c3   :  { %2654 = vrot.lane.b32.xlu0 %v5125_v12, %s5223_s28 }
0x3235   :  { %v2655_v18 = vpop.permute.xlu0 %2654 }
0x3236   :  { %v2657_v62 = vmul.f32 %v2655_v18, %v2652_v17 }
0x3238   :  { %v2661_v21 = vadd.f32 %v2660_v19, %v2657_v62 }
0x323a   :  { %v2663_v57 = vrot.slane %v2661_v21, 6 }
0x323c   :  { %2664 = vrot.lane.b32.xlu1 %v2663_v57, %s5223_s28 }
0x32ae   :  { %v2665_v10 = vpop.permute.xlu1 %2664 }
0x32af   :  { %4820 = vmatmul.mubr.msk.f32.vlgmr.msra.gmra.mxu0 %vm76_vm0, %v2665_v10 }
0x32b0   :  { %4834 = vmatpush3.msra.mxu0 %v5852_v25  ;;  %4841 = vmatprep.mubr.msk.f32.mxu0 %vm5222_vm1, %v5220_v3 }
0x32b1   :  { %4835 = vmatprep.subr.mxu0 %v5220_v3 }
0x32b2   :  { %4836 = vmatpush3.msra.mxu0 %v5862_v27 }
0x32b3   :  { %4837 = vmatprep.subr.mxu0 %v5220_v3 }
0x32b4   :  { %4838 = vmatpush3.msra.mxu0 %v5871_v28 }
0x32b5   :  { %4839 = vmatprep.subr.mxu0 %v5220_v3 }
0x32b6   :  { %4840 = vmatpush3.msra.mxu0 %v5879_v31 }
0x32b7   :  { %4855 = vmatprep.subr.mxu0 %v3099_v54 }
0x336f   :  { %v2734_v45 = vpop.f32.mrf.mxu0 }
0x3370   :  { %v2745_v49 = vadd.f32 %v2734_v45, %v5914_v61  ;;  %v2738_v63 = vadd.f32 %v2734_v45, %v5921_v43 }
0x3371   :  { %v4821_v24 = vpop.f32.mrf.mxu0 }
0x3372   :  { %2747 = vrot.lane.b32.xlu0 %v2745_v49, %s5221_s21  ;;  %v4305_v8 = vmul.f32 -1.442695, %v2738_v63  ;;  %v6049_v63 = vld [vmem:[%s6365_s14 + $0x18] sm:$0xff] }
0x3374   :  { %5126 = vpow2.f32 %v4305_v8  ;;  %v6054_v8 = vld [vmem:[%s6365_s14 + $0x10] sm:$0xff] }
0x3381   :  { %v5127_v29 = vpop.eup %5126 }
0x3382   :  { %v2742_v35 = vadd.f32 1.0, %v5127_v29  ;;  %v3095_v29 = vld [vmem:[%s6364_s13 + $0x18] sm:$0xff] }
0x3384   :  { %5128 = vrcp.f32 %v2742_v35  ;;  %v6064_v35 = vld [vmem:[%s6365_s14 + $0x8] sm:$0xff] }
0x3391   :  { %v5129_v38 = vpop.eup %5128 }
0x3392   :  { %v2757_v7 = vsub.f32 1.0, %v5129_v38  ;;  %v2764_v44 = vmul.f32 %v5129_v38, %v2663_v57 }
0x33e4   :  { %v2748_v16 = vpop.permute.xlu0 %2747 }
0x33e5   :  { %v2750_v39 = vmul.f32 %v5129_v38, %v2748_v16  ;;  %v6071_v38 = vld [vmem:[%s6365_s14] sm:$0xff] }
0x33e7   :  { %2752 = vrot.lane.b32.xlu1 %v2750_v39, %s5221_s21  ;;  %v4318_v39 = vld [vmem:[%s6367_s16] ss:$0 sm:$0xff] }
0x3459   :  { %v2753_v41 = vpop.permute.xlu1 %2752 }
0x345a   :  { %v2755_v42 = vadd.f32 %v2753_v41, %v5921_v43 }
0x345c   :  { %5130 = vtanh.f32 %v2755_v42 }
0x3469   :  { %v5131_v0 = vpop.eup %5130 }
0x346a   :  { %2759 = vrot.lane.b32.xlu0 %v5131_v0, %s5223_s28 }
0x34dc   :  { %v2760_v1 = vpop.permute.xlu0 %2759 }
0x34dd   :  { %v2762_v4 = vmul.f32 %v2760_v1, %v2757_v7 }
0x34df   :  { %v2765_v46 = vadd.f32 %v2764_v44, %v2762_v4 }
0x34e1   :  { %2767 = vrot.lane.b32.xlu1 %v2765_v46, %s5223_s28  ;;  %v2870_v30 = vrot.slane %v2765_v46, 6 }
0x3553   :  { %v2768_v14 = vpop.permute.xlu1 %2767 }
0x3554   :  { %4831 = vmatmul.mubr.msk.f32.vlgmr.msra.gmra.mxu1 %vm76_vm0, %v2768_v14 }
0x3555   :  { %4845 = vmatpush3.msra.mxu1 %v5852_v25  ;;  %4852 = vmatprep.mubr.msk.f32.mxu1 %vm5222_vm1, %v5220_v3 }
0x3556   :  { %4846 = vmatprep.subr.mxu1 %v5220_v3 }
0x3557   :  { %4847 = vmatpush3.msra.mxu1 %v5862_v27 }
0x3558   :  { %4848 = vmatprep.subr.mxu1 %v5220_v3 }
0x3559   :  { %4849 = vmatpush3.msra.mxu1 %v5871_v28 }
0x355a   :  { %4850 = vmatprep.subr.mxu1 %v5220_v3 }
0x355b   :  { %4851 = vmatpush3.msra.mxu1 %v5879_v31 }
0x355c   :  { %4866 = vmatprep.subr.mxu1 %v3095_v29 }
0x3614   :  { %v2837_v47 = vpop.f32.mrf.mxu1 }
0x3615   :  { %v2851_v48 = vadd.f32 %v2837_v47, %v5914_v61  ;;  %v2842_v50 = vrot.slane %v2837_v47, 6 }
0x3616   :  { %v4832_v2 = vpop.f32.mrf.mxu1 }
0x3617   :  { %v2853_v25 = vrot.slane %v2851_v48, 6  ;;  %v2844_v51 = vadd.f32 %v2842_v50, %v5921_v43 }
0x3619   :  { %2854 = vrot.lane.b32.xlu0 %v2853_v25, %s5221_s21  ;;  %v4307_v13 = vmul.f32 -1.442695, %v2844_v51 }
0x361b   :  { %5132 = vpow2.f32 %v4307_v13  ;;  %v3094_v13 = vld [vmem:[%s6364_s13 + $0x10] sm:$0xff] }
0x3628   :  { %v5133_v27 = vpop.eup %5132 }
0x3629   :  { %v2848_v20 = vadd.f32 1.0, %v5133_v27  ;;  %v3093_v27 = vld [vmem:[%s6364_s13 + $0x8] sm:$0xff] }
0x362b   :  { %5134 = vrcp.f32 %v2848_v20  ;;  %v3092_v20 = vld [vmem:[%s6364_s13] sm:$0xff] }
0x3638   :  { %v5135_v28 = vpop.eup %5134 }
0x3639   :  { %v2864_v37 = vsub.f32 1.0, %v5135_v28  ;;  %v2872_v34 = vmul.f32 %v5135_v28, %v2870_v30 }
0x368b   :  { %v2855_v52 = vpop.permute.xlu0 %2854 }
0x368c   :  { %v2857_v53 = vmul.f32 %v5135_v28, %v2855_v52  ;;  %v6134_v52 = vld [vmem:[%s6366_s15] ss:$0 sm:$0xff] }
0x368e   :  { %2859 = vrot.lane.b32.xlu1 %v2857_v53, %s5221_s21 }
0x3700   :  { %v2860_v31 = vpop.permute.xlu1 %2859 }
0x3701   :  { %v2862_v15 = vadd.f32 %v2860_v31, %v5921_v43 }
0x3703   :  { %5136 = vtanh.f32 %v2862_v15 }
0x3710   :  { %v5137_v55 = vpop.eup %5136 }
0x3711   :  { %2866 = vrot.lane.b32.xlu0 %v5137_v55, %s5223_s28 }
0x3783   :  { %v2867_v26 = vpop.permute.xlu0 %2866 }
0x3784   :  { %v2869_v36 = vmul.f32 %v2867_v26, %v2864_v37 }
0x3786   :  { %v6020_v56 = vadd.f32 %v2872_v34, %v2869_v36 }
0x3788   :  { %v2875_v58 = vrot.slane %v6020_v56, 2  ;;  %v2979_v41 = vrot.slane %v6020_v56, 6 }
0x378a   :  { %2876 = vrot.lane.b32.xlu1 %v2875_v58, %s5223_s28 }
0x37fc   :  { %v2877_v59 = vpop.permute.xlu1 %2876 }
0x37fd   :  { %4842 = vmatmul.mubr.msk.f32.vlgmr.msra.gmra.mxu0 %vm76_vm0, %v2877_v59 }
0x37fe   :  { %4856 = vmatpush3.msra.mxu0 %v3099_v54  ;;  %4863 = vmatprep.mubr.msk.f32.mxu0 %vm76_vm0, %v5844_v11 }
0x37ff   :  { %4857 = vmatprep.subr.mxu0 %v3098_v22 }
0x3800   :  { %4858 = vmatpush3.msra.mxu0 %v3098_v22 }
0x3801   :  { %4859 = vmatprep.subr.mxu0 %v3097_v9 }
0x3802   :  { %4860 = vmatpush3.msra.mxu0 %v3097_v9 }
0x3803   :  { %4861 = vmatprep.subr.mxu0 %v3096_v6 }
0x3804   :  { %4862 = vmatpush3.msra.mxu0 %v3096_v6 }
0x3805   :  { %4864 = vmatmul.mubr.msk.f32.vlgmr.msra.gmra.mxu0 %vm76_vm0, %v5854_v40  ;;  %4877 = vmatprep.subr.mxu0 %v5220_v3 }
0x3806   :  { %4885 = vmatprep.mubr.msk.f32.mxu0 %vm5222_vm1, %v5220_v3  ;;  %4878 = vmatpush3.msra.mxu0 %v6049_v63 }
0x3807   :  { %4879 = vmatprep.subr.mxu0 %v5220_v3 }
0x3808   :  { %4880 = vmatpush3.msra.mxu0 %v6054_v8 }
0x3809   :  { %4881 = vmatprep.subr.mxu0 %v5220_v3 }
0x380a   :  { %4882 = vmatpush3.msra.mxu0 %v6064_v35 }
0x380b   :  { %4883 = vmatprep.subr.mxu0 %v5220_v3 }
0x380c   :  { %4884 = vmatpush3.msra.mxu0 %v6071_v38 }
0x380d   :  { %4886 = vmatmul.mubr.f32.vlgmr.msra.gmra.mxu0 %v5220_v3  ;;  %4899 = vmatprep.subr.mxu0 %v5220_v3 }
0x380e   :  { %4900 = vmatpush3.msra.mxu0 %v6049_v63  ;;  %4907 = vmatprep.mubr.msk.f32.mxu0 %vm5222_vm1, %v5220_v3 }
0x380f   :  { %4901 = vmatprep.subr.mxu0 %v5220_v3 }
0x3810   :  { %4902 = vmatpush3.msra.mxu0 %v6054_v8 }
0x3811   :  { %4903 = vmatprep.subr.mxu0 %v5220_v3 }
0x3812   :  { %4904 = vmatpush3.msra.mxu0 %v6064_v35 }
0x3813   :  { %4905 = vmatprep.subr.mxu0 %v5220_v3 }
0x3814   :  { %4906 = vmatpush3.msra.mxu0 %v6071_v38 }
0x3815   :  { %4921 = vmatprep.subr.mxu0 %v5220_v3 }
0x38bd   :  { %v2946_v11 = vpop.f32.mrf.mxu0 }
0x38be   :  { %v2960_v12 = vadd.f32 %v2946_v11, %v5914_v61  ;;  %v2951_v18 = vrot.slane %v2946_v11, 4 }
0x38bf   :  { %v4843_v5 = vpop.f32.mrf.mxu0 }
0x38c0   :  { %v2962_v17 = vrot.slane %v2960_v12, 4  ;;  %v2953_v19 = vadd.f32 %v2951_v18, %v5921_v43 }
0x38c2   :  { %2963 = vrot.lane.b32.xlu0 %v2962_v17, %s5221_s21  ;;  %v4309_v62 = vmul.f32 -1.442695, %v2953_v19 }
0x38c4   :  { %5138 = vpow2.f32 %v4309_v62 }
0x38c5   :  { %v4865_v46 = vpop.f32.mrf.mxu0 }
0x38c7   :  { %v6098_v14 = vpop.f32.mrf.mxu0 }
0x38cd   :  { %v3330_v47 = vpop.f32.mrf.mxu0 }
0x38ce   :  { %v3335_v31 = vrot.slane %v3330_v47, 2 }
0x38cf   :  { %v4887_v48 = vpop.f32.mrf.mxu0 }
0x38d1   :  { %v5139_v21 = vpop.eup %5138 }
0x38d2   :  { %v2957_v57 = vadd.f32 1.0, %v5139_v21 }
0x38d4   :  { %5140 = vrcp.f32 %v2957_v57 }
0x38e1   :  { %v5141_v40 = vpop.eup %5140 }
0x38e2   :  { %v2973_v42 = vsub.f32 1.0, %v5141_v40  ;;  %v2981_v7 = vmul.f32 %v5141_v40, %v2979_v41 }
0x3934   :  { %v2964_v10 = vpop.permute.xlu0 %2963 }
0x3935   :  { %v2966_v45 = vmul.f32 %v5141_v40, %v2964_v10 }
0x3937   :  { %2968 = vrot.lane.b32.xlu1 %v2966_v45, %s5221_s21 }
0x39a9   :  { %v2969_v49 = vpop.permute.xlu1 %2968 }
0x39aa   :  { %v2971_v24 = vadd.f32 %v2969_v49, %v5921_v43 }
0x39ac   :  { %5142 = vtanh.f32 %v2971_v24 }
0x39b9   :  { %v5143_v16 = vpop.eup %5142 }
0x39ba   :  { %2975 = vrot.lane.b32.xlu0 %v5143_v16, %s5223_s28 }
0x39be   :  { %3349 = vrot.lane.b32.xlu0 %v4318_v39, %s5221_s21 }
0x3a2c   :  { %v2976_v0 = vpop.permute.xlu0 %2975 }
0x3a2d   :  { %v2978_v1 = vmul.f32 %v2976_v0, %v2973_v42 }
0x3a2f   :  { %v6094_v44 = vadd.f32 %v2981_v7, %v2978_v1 }
0x3a30   :  { %v6100_v2 = vpop.permute.xlu0 %3349 }
0x3a31   :  { %v2984_v4 = vrot.slane %v6094_v44, 4  ;;  %v3352_v25 = vadd.f32 %v6100_v2, %v3330_v47 }
0x3a33   :  { %2985 = vrot.lane.b32.xlu1 %v2984_v4, %s5223_s28  ;;  %v3354_v50 = vrot.slane %v3352_v25, 2 }
0x3a37   :  { %3355 = vrot.lane.b32.xlu1 %v3354_v50, %s5221_s21 }
0x3aa5   :  { %v2986_v51 = vpop.permute.xlu1 %2985 }
0x3aa6   :  { %4853 = vmatmul.mubr.msk.f32.vlgmr.msra.gmra.mxu1 %vm76_vm0, %v2986_v51 }
0x3aa7   :  { %4867 = vmatpush3.msra.mxu1 %v3095_v29  ;;  %4874 = vmatprep.mubr.msk.f32.mxu1 %vm76_vm0, %v5884_v32 }
0x3aa8   :  { %4868 = vmatprep.subr.mxu1 %v3094_v13 }
0x3aa9   :  { %4869 = vmatpush3.msra.mxu1 %v3094_v13  ;;  %v3356_v26 = vpop.permute.xlu1 %3355 }
0x3aaa   :  { %4870 = vmatprep.subr.mxu1 %v3093_v27 }
0x3aab   :  { %4871 = vmatpush3.msra.mxu1 %v3093_v27 }
0x3aac   :  { %4872 = vmatprep.subr.mxu1 %v3092_v20 }
0x3aad   :  { %4873 = vmatpush3.msra.mxu1 %v3092_v20 }
0x3aae   :  { %4875 = vmatmul.mubr.msk.f32.vlgmr.msra.gmra.mxu1 %vm76_vm0, %v5893_v33  ;;  %4888 = vmatprep.subr.mxu1 %v5220_v3 }
0x3aaf   :  { %4889 = vmatpush3.msra.mxu1 %v6049_v63  ;;  %4896 = vmatprep.mubr.msk.f32.mxu1 %vm5222_vm1, %v5220_v3 }
0x3ab0   :  { %4890 = vmatprep.subr.mxu1 %v5220_v3 }
0x3ab1   :  { %4891 = vmatpush3.msra.mxu1 %v6054_v8 }
0x3ab2   :  { %4892 = vmatprep.subr.mxu1 %v5220_v3 }
0x3ab3   :  { %4893 = vmatpush3.msra.mxu1 %v6064_v35 }
0x3ab4   :  { %4894 = vmatprep.subr.mxu1 %v5220_v3 }
0x3ab5   :  { %4895 = vmatpush3.msra.mxu1 %v6071_v38 }
0x3ab6   :  { %4910 = vmatprep.subr.mxu1 %v5220_v3 }
0x3b66   :  { %v6129_v32 = vpop.f32.mrf.mxu1 }
0x3b68   :  { %v4854_v33 = vpop.f32.mrf.mxu1 }
0x3b6e   :  { %v4876_v28 = vpop.f32.mrf.mxu1 }
0x3b6f   :  { %v3247_v53 = vadd.f32 %v4876_v28, %v4865_v46 }
0x3b70   :  { %v6155_v18 = vpop.f32.mrf.mxu1 }
0x3b71   :  { %v6137_v15 = vadd.f32 %v6134_v52, %v3247_v53 }
0x3b73   :  { %v3337_v54 = vadd.f32 %v3335_v31, %v6137_v15 }
0x3b75   :  { %v4317_v55 = vmul.f32 -1.442695, %v3337_v54 }
0x3b77   :  { %5144 = vpow2.f32 %v4317_v55 }
0x3b84   :  { %v5145_v30 = vpop.eup %5144 }
0x3b85   :  { %v3341_v37 = vadd.f32 1.0, %v5145_v30 }
0x3b87   :  { %5146 = vrcp.f32 %v3341_v37 }
0x3b94   :  { %v5147_v36 = vpop.eup %5146 }
0x3b95   :  { %v3358_v34 = vmul.f32 %v5147_v36, %v3356_v26  ;;  %v3365_v22 = vsub.f32 1.0, %v5147_v36  ;;  %v3371_v6 = vmul.f32 0.0, %v5147_v36 }
0x3b97   :  { %3360 = vrot.lane.b32.xlu0 %v3358_v34, %s5221_s21 }
0x3c09   :  { %v3361_v56 = vpop.permute.xlu0 %3360 }
0x3c0a   :  { %v3363_v58 = vadd.f32 %v3361_v56, %v6137_v15 }
0x3c0c   :  { %5148 = vtanh.f32 %v3363_v58 }
0x3c19   :  { %v5149_v59 = vpop.eup %5148 }
0x3c1a   :  { %3367 = vrot.lane.b32.xlu1 %v5149_v59, %s5223_s28 }
0x3c8c   :  { %v3368_v9 = vpop.permute.xlu1 %3367 }
0x3c8d   :  { %v3370_v11 = vmul.f32 %v3368_v9, %v3365_v22 }
0x3c8f   :  { %v3372_v12 = vadd.f32 %v3371_v6, %v3370_v11 }
0x3c91   :  { %v3374_v5 = vrot.slane %v3372_v12, 6  ;;  %v3478_v7 = vrot.slane %v3372_v12, 2 }
0x3c93   :  { %3375 = vrot.lane.b32.xlu0 %v3374_v5, %s5223_s28 }
0x3d05   :  { %v3376_v17 = vpop.permute.xlu0 %3375 }
0x3d06   :  { %4897 = vmatmul.mubr.msk.f32.vlgmr.msra.gmra.mxu1 %vm76_vm0, %v3376_v17 }
0x3d07   :  { %4911 = vmatpush3.msra.mxu1 %v6049_v63  ;;  %4918 = vmatprep.mubr.msk.f32.mxu1 %vm5222_vm1, %v5220_v3 }
0x3d08   :  { %4912 = vmatprep.subr.mxu1 %v5220_v3 }
0x3d09   :  { %4913 = vmatpush3.msra.mxu1 %v6054_v8 }
0x3d0a   :  { %4914 = vmatprep.subr.mxu1 %v5220_v3 }
0x3d0b   :  { %4915 = vmatpush3.msra.mxu1 %v6064_v35 }
0x3d0c   :  { %4916 = vmatprep.subr.mxu1 %v5220_v3 }
0x3d0d   :  { %4917 = vmatpush3.msra.mxu1 %v6071_v38 }
0x3d0e   :  { %4932 = vmatprep.subr.mxu1 %v5220_v3 }
0x3dc6   :  { %v3445_v19 = vpop.f32.mrf.mxu1 }
0x3dc7   :  { %v3459_v62 = vadd.f32 %v3445_v19, %v6100_v2  ;;  %v3450_v40 = vrot.slane %v3445_v19, 4 }
0x3dc8   :  { %v4898_v21 = vpop.f32.mrf.mxu1 }
0x3dc9   :  { %v3461_v57 = vrot.slane %v3459_v62, 4  ;;  %v3452_v10 = vadd.f32 %v3450_v40, %v6137_v15 }
0x3dcb   :  { %3462 = vrot.lane.b32.xlu1 %v3461_v57, %s5221_s21  ;;  %v4320_v45 = vmul.f32 -1.442695, %v3452_v10 }
0x3dcd   :  { %5150 = vpow2.f32 %v4320_v45 }
0x3dda   :  { %v5151_v49 = vpop.eup %5150 }
0x3ddb   :  { %v3456_v24 = vadd.f32 1.0, %v5151_v49 }
0x3ddd   :  { %5152 = vrcp.f32 %v3456_v24 }
0x3dea   :  { %v5153_v29 = vpop.eup %5152 }
0x3deb   :  { %v3472_v1 = vsub.f32 1.0, %v5153_v29  ;;  %v3480_v46 = vmul.f32 %v5153_v29, %v3478_v7 }
0x3e3d   :  { %v3463_v16 = vpop.permute.xlu1 %3462 }
0x3e3e   :  { %v3465_v39 = vmul.f32 %v5153_v29, %v3463_v16 }
0x3e40   :  { %3467 = vrot.lane.b32.xlu0 %v3465_v39, %s5221_s21 }
0x3eb2   :  { %v3468_v41 = vpop.permute.xlu0 %3467 }
0x3eb3   :  { %v3470_v42 = vadd.f32 %v3468_v41, %v6137_v15 }
0x3eb5   :  { %5154 = vtanh.f32 %v3470_v42 }
0x3ec2   :  { %v5155_v0 = vpop.eup %5154 }
0x3ec3   :  { %3474 = vrot.lane.b32.xlu1 %v5155_v0, %s5223_s28 }
0x3f35   :  { %v3475_v4 = vpop.permute.xlu1 %3474 }
0x3f36   :  { %v3477_v47 = vmul.f32 %v3475_v4, %v3472_v1 }
0x3f38   :  { %v3481_v48 = vadd.f32 %v3480_v46, %v3477_v47 }
0x3f3a   :  { %v3483_v25 = vrot.slane %v3481_v48, 4  ;;  %v3587_v56 = vrot.slane %v3481_v48, 2  ;;  %v3242_v48 = vadd.f32 %v6155_v18, %v6098_v14 }
0x3f3c   :  { %3484 = vrot.lane.b32.xlu0 %v3483_v25, %s5223_s28 }
0x3fae   :  { %v3485_v50 = vpop.permute.xlu0 %3484 }
0x3faf   :  { %4908 = vmatmul.mubr.msk.f32.vlgmr.msra.gmra.mxu0 %vm76_vm0, %v3485_v50  ;;  %v6216_v50 = vadd.f32 %v6134_v52, %v3242_v48 }
0x3fb0   :  { %4922 = vmatpush3.msra.mxu0 %v6049_v63  ;;  %4929 = vmatprep.mubr.msk.f32.mxu0 %vm5222_vm1, %v5220_v3 }
0x3fb1   :  { %4923 = vmatprep.subr.mxu0 %v5220_v3 }
0x3fb2   :  { %4924 = vmatpush3.msra.mxu0 %v6054_v8 }
0x3fb3   :  { %4925 = vmatprep.subr.mxu0 %v5220_v3 }
0x3fb4   :  { %4926 = vmatpush3.msra.mxu0 %v6064_v35 }
0x3fb5   :  { %4927 = vmatprep.subr.mxu0 %v5220_v3 }
0x3fb6   :  { %4928 = vmatpush3.msra.mxu0 %v6071_v38 }
0x3fb7   :  { %4943 = vmatprep.subr.mxu0 %v5220_v3 }
0x406f   :  { %v3554_v51 = vpop.f32.mrf.mxu0 }
0x4070   :  { %v3568_v13 = vadd.f32 %v3554_v51, %v6100_v2  ;;  %v3559_v33 = vrot.slane %v3554_v51, 6 }
0x4071   :  { %v4909_v27 = vpop.f32.mrf.mxu0 }
0x4072   :  { %v3570_v20 = vrot.slane %v3568_v13, 6  ;;  %v3561_v28 = vadd.f32 %v3559_v33, %v6137_v15 }
0x4074   :  { %3571 = vrot.lane.b32.xlu1 %v3570_v20, %s5221_s21  ;;  %v4322_v53 = vmul.f32 -1.442695, %v3561_v28 }
0x4076   :  { %5156 = vpow2.f32 %v4322_v53 }
0x4083   :  { %v5157_v31 = vpop.eup %5156 }
0x4084   :  { %v3565_v54 = vadd.f32 1.0, %v5157_v31 }
0x4086   :  { %5158 = vrcp.f32 %v3565_v54 }
0x4093   :  { %v5159_v55 = vpop.eup %5158 }
0x4094   :  { %v3581_v58 = vsub.f32 1.0, %v5159_v55  ;;  %v3589_v22 = vmul.f32 %v5159_v55, %v3587_v56 }
0x40e6   :  { %v3572_v30 = vpop.permute.xlu1 %3571 }
0x40e7   :  { %v3574_v37 = vmul.f32 %v5159_v55, %v3572_v30 }
0x40e9   :  { %3576 = vrot.lane.b32.xlu0 %v3574_v37, %s5221_s21 }
0x415b   :  { %v3577_v26 = vpop.permute.xlu0 %3576 }
0x415c   :  { %v3579_v36 = vadd.f32 %v3577_v26, %v6137_v15 }
0x415e   :  { %5160 = vtanh.f32 %v3579_v36 }
0x416b   :  { %v5161_v34 = vpop.eup %5160 }
0x416c   :  { %3583 = vrot.lane.b32.xlu1 %v5161_v34, %s5223_s28 }
0x41de   :  { %v3584_v59 = vpop.permute.xlu1 %3583 }
0x41df   :  { %v3586_v9 = vmul.f32 %v3584_v59, %v3581_v58 }
0x41e1   :  { %v3590_v6 = vadd.f32 %v3589_v22, %v3586_v9 }
0x41e3   :  { %v3592_v11 = vrot.slane %v3590_v6, 2 }
0x41e5   :  { %3593 = vrot.lane.b32.xlu0 %v3592_v11, %s5223_s28 }
0x4257   :  { %v3594_v12 = vpop.permute.xlu0 %3593 }
0x4258   :  { %4919 = vmatmul.mubr.msk.f32.vlgmr.msra.gmra.mxu1 %vm76_vm0, %v3594_v12 }
0x4259   :  { %4933 = vmatpush3.msra.mxu1 %v6049_v63  ;;  %4940 = vmatprep.mubr.msk.f32.mxu1 %vm5222_vm1, %v5220_v3 }
0x425a   :  { %4934 = vmatprep.subr.mxu1 %v5220_v3 }
0x425b   :  { %4935 = vmatpush3.msra.mxu1 %v6054_v8 }
0x425c   :  { %4936 = vmatprep.subr.mxu1 %v5220_v3 }
0x425d   :  { %4937 = vmatpush3.msra.mxu1 %v6064_v35 }
0x425e   :  { %4938 = vmatprep.subr.mxu1 %v5220_v3 }
0x425f   :  { %4939 = vmatpush3.msra.mxu1 %v6071_v38 }
0x4260   :  { %4954 = vmatprep.subr.mxu1 %v5220_v3 }
0x4318   :  { %v3663_v5 = vpop.f32.mrf.mxu1 }
0x4319   :  { %v3674_v17 = vadd.f32 %v3663_v5, %v6100_v2  ;;  %v3667_v62 = vadd.f32 %v3663_v5, %v6137_v15 }
0x431a   :  { %v4920_v19 = vpop.f32.mrf.mxu1 }
0x431b   :  { %3676 = vrot.lane.b32.xlu1 %v3674_v17, %s5221_s21  ;;  %v4324_v21 = vmul.f32 -1.442695, %v3667_v62 }
0x431d   :  { %5162 = vpow2.f32 %v4324_v21 }
0x432a   :  { %v5163_v57 = vpop.eup %5162 }
0x432b   :  { %v3671_v40 = vadd.f32 1.0, %v5163_v57 }
0x432d   :  { %5164 = vrcp.f32 %v3671_v40 }
0x433a   :  { %v5165_v10 = vpop.eup %5164 }
0x433b   :  { %v3686_v39 = vsub.f32 1.0, %v5165_v10  ;;  %v3693_v42 = vmul.f32 %v5165_v10, %v3592_v11 }
0x438d   :  { %v3677_v45 = vpop.permute.xlu1 %3676 }
0x438e   :  { %v3679_v49 = vmul.f32 %v5165_v10, %v3677_v45 }
0x4390   :  { %3681 = vrot.lane.b32.xlu0 %v3679_v49, %s5221_s21 }
0x4402   :  { %v3682_v24 = vpop.permute.xlu0 %3681 }
0x4403   :  { %v3684_v29 = vadd.f32 %v3682_v24, %v6137_v15 }
0x4405   :  { %5166 = vtanh.f32 %v3684_v29 }
0x4412   :  { %v5167_v16 = vpop.eup %5166 }
0x4413   :  { %3688 = vrot.lane.b32.xlu1 %v5167_v16, %s5223_s28 }
0x4485   :  { %v3689_v41 = vpop.permute.xlu1 %3688 }
0x4486   :  { %v3691_v0 = vmul.f32 %v3689_v41, %v3686_v39 }
0x4488   :  { %v3694_v7 = vadd.f32 %v3693_v42, %v3691_v0 }
0x448a   :  { %3696 = vrot.lane.b32.xlu0 %v3694_v7, %s5223_s28  ;;  %v3799_v52 = vrot.slane %v3694_v7, 2 }
0x44fc   :  { %v3697_v1 = vpop.permute.xlu0 %3696 }
0x44fd   :  { %4930 = vmatmul.mubr.msk.f32.vlgmr.msra.gmra.mxu0 %vm76_vm0, %v3697_v1 }
0x44fe   :  { %4944 = vmatpush3.msra.mxu0 %v6049_v63  ;;  %4951 = vmatprep.mubr.msk.f32.mxu0 %vm5222_vm1, %v5220_v3 }
0x44ff   :  { %4945 = vmatprep.subr.mxu0 %v5220_v3 }
0x4500   :  { %4946 = vmatpush3.msra.mxu0 %v6054_v8 }
0x4501   :  { %4947 = vmatprep.subr.mxu0 %v5220_v3 }
0x4502   :  { %4948 = vmatpush3.msra.mxu0 %v6064_v35 }
0x4503   :  { %4949 = vmatprep.subr.mxu0 %v5220_v3 }
0x4504   :  { %4950 = vmatpush3.msra.mxu0 %v6071_v38 }
0x4505   :  { %4965 = vmatprep.subr.mxu0 %v5220_v3 }
0x45bd   :  { %v3766_v15 = vpop.f32.mrf.mxu0 }
0x45be   :  { %v3780_v4 = vadd.f32 %v3766_v15, %v6100_v2  ;;  %v3771_v25 = vrot.slane %v3766_v15, 2 }
0x45bf   :  { %v4931_v46 = vpop.f32.mrf.mxu0 }
0x45c0   :  { %v3782_v47 = vrot.slane %v3780_v4, 2  ;;  %v3773_v51 = vadd.f32 %v3771_v25, %v6216_v50 }
0x45c2   :  { %3783 = vrot.lane.b32.xlu1 %v3782_v47, %s5221_s21  ;;  %v4326_v13 = vmul.f32 -1.442695, %v3773_v51 }
0x45c4   :  { %5168 = vpow2.f32 %v4326_v13 }
0x45d1   :  { %v5169_v27 = vpop.eup %5168 }
0x45d2   :  { %v3777_v20 = vadd.f32 1.0, %v5169_v27 }
0x45d4   :  { %5170 = vrcp.f32 %v3777_v20 }
0x45e1   :  { %v5171_v33 = vpop.eup %5170 }
0x45e2   :  { %v3793_v18 = vsub.f32 1.0, %v5171_v33  ;;  %v3801_v30 = vmul.f32 %v5171_v33, %v3799_v52  ;;  %v3060_v52 = vrot.slane %v6129_v32, 2 }
0x4634   :  { %v3784_v28 = vpop.permute.xlu1 %3783 }
0x4635   :  { %v3786_v53 = vmul.f32 %v5171_v33, %v3784_v28 }
0x4637   :  { %3788 = vrot.lane.b32.xlu0 %v3786_v53, %s5221_s21 }
0x46a9   :  { %v3789_v31 = vpop.permute.xlu0 %3788 }
0x46aa   :  { %v3791_v54 = vadd.f32 %v3789_v31, %v6216_v50  ;;  %v3069_v31 = vadd.f32 %v6129_v32, %v5914_v61 }
0x46ac   :  { %5172 = vtanh.f32 %v3791_v54 }
0x46b9   :  { %v5173_v14 = vpop.eup %5172 }
0x46ba   :  { %3795 = vrot.lane.b32.xlu1 %v5173_v14, %s5223_s28  ;;  %v3071_v14 = vrot.slane %v3069_v31, 2 }
0x472c   :  { %v3796_v55 = vpop.permute.xlu1 %3795 }
0x472d   :  { %v3798_v37 = vmul.f32 %v3796_v55, %v3793_v18  ;;  %v3062_v18 = vadd.f32 %v3060_v52, %v5921_v43 }
0x472f   :  { %v3802_v26 = vadd.f32 %v3801_v30, %v3798_v37  ;;  %v4311_v55 = vmul.f32 -1.442695, %v3062_v18 }
0x4731   :  { %v3804_v36 = vrot.slane %v3802_v26, 6  ;;  %v3908_v62 = vrot.slane %v3802_v26, 2 }
0x4733   :  { %3805 = vrot.lane.b32.xlu0 %v3804_v36, %s5223_s28 }
0x47a5   :  { %v3806_v34 = vpop.permute.xlu0 %3805 }
0x47a6   :  { %4941 = vmatmul.mubr.msk.f32.vlgmr.msra.gmra.mxu1 %vm76_vm0, %v3806_v34 }
0x47a7   :  { %4955 = vmatpush3.msra.mxu1 %v6049_v63  ;;  %4962 = vmatprep.mubr.msk.f32.mxu1 %vm5222_vm1, %v5220_v3 }
0x47a8   :  { %4956 = vmatprep.subr.mxu1 %v5220_v3 }
0x47a9   :  { %4957 = vmatpush3.msra.mxu1 %v6054_v8 }
0x47aa   :  { %4958 = vmatprep.subr.mxu1 %v5220_v3 }
0x47ab   :  { %4959 = vmatpush3.msra.mxu1 %v6064_v35 }
0x47ac   :  { %4960 = vmatprep.subr.mxu1 %v5220_v3 }
0x47ad   :  { %4961 = vmatpush3.msra.mxu1 %v6071_v38 }
0x4866   :  { %v3875_v56 = vpop.f32.mrf.mxu1 }
0x4867   :  { %v3889_v58 = vadd.f32 %v3875_v56, %v6100_v2  ;;  %v3880_v22 = vrot.slane %v3875_v56, 4 }
0x4868   :  { %v4942_v59 = vpop.f32.mrf.mxu1 }
0x4869   :  { %v3891_v63 = vrot.slane %v3889_v58, 4  ;;  %v3882_v9 = vadd.f32 %v3880_v22, %v6216_v50 }
0x486b   :  { %3892 = vrot.lane.b32.xlu1 %v3891_v63, %s5221_s21  ;;  %v4328_v6 = vmul.f32 -1.442695, %v3882_v9 }
0x486d   :  { %5174 = vpow2.f32 %v4328_v6 }
0x487a   :  { %v5175_v8 = vpop.eup %5174 }
0x487b   :  { %v3886_v11 = vadd.f32 1.0, %v5175_v8 }
0x487d   :  { %5176 = vrcp.f32 %v3886_v11 }
0x488a   :  { %v5177_v35 = vpop.eup %5176 }
0x488b   :  { %v3902_v21 = vsub.f32 1.0, %v5177_v35  ;;  %v3910_v40 = vmul.f32 %v5177_v35, %v3908_v62  ;;  %v4154_v62 = vld [vmem:[%s6368_s17 + $0x68] sm:$0xff] }
0x48dd   :  { %v3893_v12 = vpop.permute.xlu1 %3892 }
0x48de   :  { %v3895_v5 = vmul.f32 %v5177_v35, %v3893_v12 }
0x48e0   :  { %3897 = vrot.lane.b32.xlu0 %v3895_v5, %s5221_s21 }
0x4952   :  { %v3898_v38 = vpop.permute.xlu0 %3897 }
0x4953   :  { %v3900_v17 = vadd.f32 %v3898_v38, %v6216_v50  ;;  %v4156_v38 = vld [vmem:[%s6368_s17 + $0x78] sm:$0xff] }
0x4955   :  { %5178 = vtanh.f32 %v3900_v17  ;;  %v4155_v17 = vld [vmem:[%s6368_s17 + $0x70] sm:$0xff] }
0x4962   :  { %v5179_v19 = vpop.eup %5178 }
0x4963   :  { %3904 = vrot.lane.b32.xlu1 %v5179_v19, %s5223_s28 }
0x49d5   :  { %v3905_v57 = vpop.permute.xlu1 %3904 }
0x49d6   :  { %v3907_v10 = vmul.f32 %v3905_v57, %v3902_v21  ;;  %v3088_v57 = vrot.slane %v6094_v44, 6 }
0x49d8   :  { %v3911_v45 = vadd.f32 %v3910_v40, %v3907_v10 }
0x49da   :  { %v3913_v49 = vrot.slane %v3911_v45, 4  ;;  %v4017_v13 = vrot.slane %v3911_v45, 2  ;;  %v4152_v45 = vld [vmem:[%s6368_s17 + $0x58] sm:$0xff] }
0x49dc   :  { %3914 = vrot.lane.b32.xlu0 %v3913_v49, %s5223_s28 }
0x4a4e   :  { %v3915_v24 = vpop.permute.xlu0 %3914 }
0x4a4f   :  { %4952 = vmatmul.mubr.msk.f32.vlgmr.msra.gmra.mxu0 %vm76_vm0, %v3915_v24  ;;  %v4151_v24 = vld [vmem:[%s6368_s17 + $0x50] sm:$0xff] }
0x4a50   :  { %4997 = vmatprep.mubr.msk.f32.mxu0 %vm5222_vm1, %v5220_v3  ;;  %4966 = vmatpush3.msra.mxu0 %v4156_v38 }
0x4a51   :  { %4967 = vmatprep.subr.mxu0 %v5220_v3 }
0x4a52   :  { %4968 = vmatpush3.msra.mxu0 %v4155_v17 }
0x4a53   :  { %4969 = vmatprep.subr.mxu0 %v5220_v3 }
0x4a54   :  { %4970 = vmatpush3.msra.mxu0 %v4154_v62 }
0x4a55   :  { %4971 = vmatprep.subr.mxu0 %v5220_v3 }
0x4b0f   :  { %v3984_v29 = vpop.f32.mrf.mxu0 }
0x4b10   :  { %v3998_v16 = vadd.f32 %v3984_v29, %v6100_v2  ;;  %v3989_v42 = vrot.slane %v3984_v29, 6  ;;  %v4150_v29 = vld [vmem:[%s6368_s17 + $0x48] sm:$0xff] }
0x4b11   :  { %v4953_v39 = vpop.f32.mrf.mxu0 }
0x4b12   :  { %v4000_v41 = vrot.slane %v3998_v16, 6  ;;  %v3991_v0 = vadd.f32 %v3989_v42, %v6216_v50  ;;  %v4149_v16 = vld [vmem:[%s6368_s17 + $0x40] sm:$0xff]  ;;  %v4148_v39 = vld [vmem:[%s6368_s17 + $0x38] sm:$0xff]  ;;  %v4146_v42 = vld [vmem:[%s6368_s17 + $0x28] sm:$0xff] }
0x4b14   :  { %4001 = vrot.lane.b32.xlu1 %v4000_v41, %s5221_s21  ;;  %v4330_v7 = vmul.f32 -1.442695, %v3991_v0  ;;  %v4147_v41 = vld [vmem:[%s6368_s17 + $0x30] sm:$0xff]  ;;  %v4145_v0 = vld [vmem:[%s6368_s17 + $0x20] sm:$0xff] }
0x4b16   :  { %5180 = vpow2.f32 %v4330_v7  ;;  %v4144_v7 = vld [vmem:[%s6368_s17 + $0x18] sm:$0xff] }
0x4b23   :  { %v5181_v1 = vpop.eup %5180 }
0x4b24   :  { %v3995_v15 = vadd.f32 1.0, %v5181_v1  ;;  %v4143_v1 = vld [vmem:[%s6368_s17 + $0x10] sm:$0xff] }
0x4b26   :  { %5182 = vrcp.f32 %v3995_v15  ;;  %v4142_v15 = vld [vmem:[%s6368_s17 + $0x8] sm:$0xff] }
0x4b33   :  { %v5183_v4 = vpop.eup %5182 }
0x4b34   :  { %v4011_v27 = vsub.f32 1.0, %v5183_v4  ;;  %v4019_v33 = vmul.f32 %v5183_v4, %v4017_v13 }
0x4b86   :  { %v4002_v46 = vpop.permute.xlu1 %4001 }
0x4b87   :  { %v4004_v47 = vmul.f32 %v5183_v4, %v4002_v46  ;;  %v4141_v4 = vld [vmem:[%s6368_s17] sm:$0xff] }
0x4b89   :  { %4006 = vrot.lane.b32.xlu0 %v4004_v47, %s5221_s21 }
0x4bfb   :  { %v4007_v48 = vpop.permute.xlu0 %4006 }
0x4bfc   :  { %v4009_v25 = vadd.f32 %v4007_v48, %v6216_v50 }
0x4bfe   :  { %5184 = vtanh.f32 %v4009_v25 }
0x4bff   :  { %5186 = vpow2.f32 %v4311_v55 }
0x4c0b   :  { %v5185_v51 = vpop.eup %5184 }
0x4c0c   :  { %4013 = vrot.lane.b32.xlu1 %v5185_v51, %s5223_s28  ;;  %v5187_v30 = vpop.eup %5186 }
0x4c0d   :  { %v3066_v37 = vadd.f32 1.0, %v5187_v30 }
0x4c0f   :  { %5188 = vrcp.f32 %v3066_v37 }
0x4c1c   :  { %v5189_v61 = vpop.eup %5188 }
0x4c1d   :  { %v3082_v21 = vsub.f32 1.0, %v5189_v61  ;;  %v3090_v49 = vmul.f32 %v5189_v61, %v3088_v57 }
0x4c7e   :  { %v4014_v20 = vpop.permute.xlu1 %4013 }
0x4c7f   :  { %v4016_v28 = vmul.f32 %v4014_v20, %v4011_v27  ;;  %v4125_v27 = vrot.slane %v5802_v60, 2 }
0x4c81   :  { %v6249_v53 = vadd.f32 %v4019_v33, %v4016_v28  ;;  %v4136_v20 = vsel %vm76_vm0, %v5838_v23, %v4125_v27 }
0x4c83   :  { %v4022_v54 = vrot.slane %v6249_v53, 2  ;;  %v4333_v53 = vld [vmem:[%s6369_s18] ss:$0 sm:$0xff] }
0x4c85   :  { %4023 = vrot.lane.b32.xlu0 %v4022_v54, %s5223_s28 }
0x4c89   :  { %3072 = vrot.lane.b32.xlu0 %v3071_v14, %s5221_s21 }
0x4cf7   :  { %v4024_v26 = vpop.permute.xlu0 %4023 }
0x4cf8   :  { %4963 = vmatmul.mubr.msk.f32.vlgmr.msra.gmra.mxu1 %vm76_vm0, %v4024_v26 }
0x4cfb   :  { %v3073_v36 = vpop.permute.xlu0 %3072 }
0x4cfc   :  { %v3075_v34 = vmul.f32 %v5189_v61, %v3073_v36 }
0x4cfe   :  { %3077 = vrot.lane.b32.xlu0 %v3075_v34, %s5221_s21 }
0x4d70   :  { %v3078_v56 = vpop.permute.xlu0 %3077 }
0x4d71   :  { %v3080_v58 = vadd.f32 %v3078_v56, %v5921_v43 }
0x4d73   :  { %5190 = vtanh.f32 %v3080_v58 }
0x4d80   :  { %v5191_v32 = vpop.eup %5190 }
0x4d81   :  { %3084 = vrot.lane.b32.xlu0 %v5191_v32, %s5223_s28 }
0x4db8   :  { %v4093_v59 = vpop.f32.mrf.mxu1 }
0x4db9   :  { %v4104_v63 = vadd.f32 %v4093_v59, %v6100_v2  ;;  %v4097_v9 = vadd.f32 %v4093_v59, %v6216_v50 }
0x4dba   :  { %v4964_v22 = vpop.f32.mrf.mxu1 }
0x4dbb   :  { %4106 = vrot.lane.b32.xlu1 %v4104_v63, %s5221_s21  ;;  %v4332_v6 = vmul.f32 -1.442695, %v4097_v9 }
0x4dbd   :  { %5192 = vpow2.f32 %v4332_v6 }
0x4dca   :  { %v5193_v8 = vpop.eup %5192 }
0x4dcb   :  { %v4101_v11 = vadd.f32 1.0, %v5193_v8 }
0x4dcd   :  { %5194 = vrcp.f32 %v4101_v11 }
0x4dda   :  { %v6267_v35 = vpop.eup %5194 }
0x4ddb   :  { %v4116_v46 = vsub.f32 1.0, %v6267_v35  ;;  %v4123_v48 = vmul.f32 %v6267_v35, %v4022_v54 }
0x4df3   :  { %v3085_v19 = vpop.permute.xlu0 %3084 }
0x4df4   :  { %v3087_v40 = vmul.f32 %v3085_v19, %v3082_v21 }
0x4df6   :  { %v3091_v44 = vadd.f32 %v3090_v49, %v3087_v40 }
0x4e2d   :  { %v4107_v43 = vpop.permute.xlu1 %4106 }
0x4e2e   :  { %v4109_v12 = vmul.f32 %v6267_v35, %v4107_v43 }
0x4e30   :  { %4111 = vrot.lane.b32.xlu1 %v4109_v12, %s5221_s21 }
0x4ea2   :  { %v4112_v5 = vpop.permute.xlu1 %4111 }
0x4ea3   :  { %v4114_v2 = vadd.f32 %v4112_v5, %v6216_v50  ;;  %v4153_v50 = vld [vmem:[%s6368_s17 + $0x60] sm:$0xff] }
0x4ea4   :  { %4972 = vmatpush3.msra.mxu0 %v4153_v50 }
0x4ea5   :  { %5196 = vtanh.f32 %v4114_v2  ;;  %4973 = vmatprep.subr.mxu0 %v5220_v3 }
0x4ea6   :  { %4974 = vmatpush3.msra.mxu0 %v4152_v45 }
0x4ea7   :  { %4975 = vmatprep.subr.mxu0 %v5220_v3 }
0x4ea8   :  { %4976 = vmatpush3.msra.mxu0 %v4151_v24 }
0x4ea9   :  { %4977 = vmatprep.subr.mxu0 %v5220_v3 }
0x4eaa   :  { %4978 = vmatpush3.msra.mxu0 %v4150_v29 }
0x4eab   :  { %4979 = vmatprep.subr.mxu0 %v5220_v3 }
0x4eac   :  { %4980 = vmatpush3.msra.mxu0 %v4149_v16 }
0x4ead   :  { %4981 = vmatprep.subr.mxu0 %v5220_v3 }
0x4eae   :  { %4982 = vmatpush3.msra.mxu0 %v4148_v39 }
0x4eaf   :  { %4983 = vmatprep.subr.mxu0 %v5220_v3 }
0x4eb0   :  { %4984 = vmatpush3.msra.mxu0 %v4147_v41 }
0x4eb1   :  { %4985 = vmatprep.subr.mxu0 %v5220_v3 }
0x4eb2   :  { %v5197_v10 = vpop.eup %5196  ;;  %4986 = vmatpush3.msra.mxu0 %v4146_v42 }
0x4eb3   :  { %4118 = vrot.lane.b32.xlu1 %v5197_v10, %s5223_s28  ;;  %4987 = vmatprep.subr.mxu0 %v5220_v3 }
0x4eb4   :  { %4988 = vmatpush3.msra.mxu0 %v4145_v0 }
0x4eb5   :  { %4989 = vmatprep.subr.mxu0 %v5220_v3 }
0x4eb6   :  { %4990 = vmatpush3.msra.mxu0 %v4144_v7 }
0x4eb7   :  { %4128 = vrot.lane.b32.xlu1 %v3091_v44, %s5224_s22  ;;  %4991 = vmatprep.subr.mxu0 %v5220_v3 }
0x4eb8   :  { %4992 = vmatpush3.msra.mxu0 %v4143_v1 }
0x4eb9   :  { %4993 = vmatprep.subr.mxu0 %v5220_v3 }
0x4eba   :  { %4994 = vmatpush3.msra.mxu0 %v4142_v15 }
0x4ebb   :  { %4995 = vmatprep.subr.mxu0 %v5220_v3 }
0x4ebc   :  { %4996 = vmatpush3.msra.mxu0 %v4141_v4 }
0x4f25   :  { %v4119_v47 = vpop.permute.xlu1 %4118 }
0x4f26   :  { %v4121_v25 = vmul.f32 %v4119_v47, %v4116_v46 }
0x4f28   :  { %v4124_v51 = vadd.f32 %v4123_v48, %v4121_v25 }
0x4f29   :  { %v4129_v3 = vpop.permute.xlu1 %4128 }
0x4f2a   :  { %v4132_v13 = vrot.slane %v4124_v51, 2  ;;  %v4138_v33 = vsel %vm4137_vm6, %v4136_v20, %v4129_v3 }
0x4f2c   :  { %4133 = vrot.lane.b32.xlu0 %v4132_v13, %s5221_s21  ;;  %s5198_s21 = scalar_lea.vmem %s4246_s9, 32 }
0x4f2d   :  { %p5199_p0 = scmp.ne.s32.totalorder %s4246_s9, %s5198_s21  ;;  %p5204_p2 = scmp.lt.s32.totalorder %s5198_s21, %s5198_s21 }
0x4f2f   :  { %p5205_p3 = por %p5204_p2, %p5203_p1 }
0x4f31   :  { %p5206_p4 = pnand %p5205_p3, %p5199_p0 }
0x4f9e   :  { %v4134_v28 = vpop.permute.xlu0 %4133 }
0x4f9f   :  { %v4140_v31 = vsel %vm4139_vm7, %v4138_v33, %v4134_v28 }
0x4fa0   :  { %v4165_v14 = vrot.slane %v4140_v31, 6 }
0x4fa2   :  { %4998 = vmatmul.mubr.f32.vlgmr.msra.gmra.mxu0 %v4165_v14 }
0x5062   :  { %v4233_v54 = vpop.f32.mrf.mxu0 }
0x5063   :  { %v4234_v60 = vadd.f32 %v4333_v53, %v4233_v54 }
0x5064   :  { %v4999_v52 = vpop.f32.mrf.mxu0 }
0x5065   :  { %4238 = vst.msk [vmem:[#allocation4] sm:$0x3] %vm4237_vm8, %v4234_v60 }
0x5066   :  { %5209 = shalt.err (!%p5206_p4)
}
0x5067   :  { %4248 = dma.vmem_to_hbm [thread:$0]  %s4246_s9, 32, %s6370_s19, [#allocation5]  }
0x5068   :  { %5218 = dma.done.wait [#allocation5], 32  }
0x5069   :  { %5219 = vsyncadd [#allocation5], 4294967264 }
0x506a   :  { %4252 = vsyncpa [#allocation5], 1 }

</bundles_post_ra>
